<compile_context>
chip_gen: v7x
topology: tpu7x:2x2x1
jax: 0.10.0
libtpu: 0.0.40
codegen_flags: <defaults>
</compile_context>

<pallas_src>
import jax
import jax.numpy as jnp
from jax.experimental import pallas as pl
from jax.experimental.pallas import tpu as pltpu

TB = 128  # batch rows per grid step (B=200 -> 2 batch tiles, both v7x TCs busy)


def _round_up(n, m):
    return (n + m - 1) // m * m


def _tile_m(m):
    # Vocab tile width: 128 for small models (also exercises the tiled path in
    # the test); 512 at production vocab sizes to amortize per-step overhead.
    return 128 if m <= 2048 else 512


def _pad2(a, rows, cols, value=0.0):
    pr, pc = rows - a.shape[0], cols - a.shape[1]
    if pr == 0 and pc == 0:
        return a
    return jnp.pad(a, ((0, pr), (0, pc)), constant_values=value)


def _vmem_budget(resident_bytes):
    # Actual resident set + 50% headroom; never below the 32 MiB scoped default,
    # capped below v7x's 64 MiB physical per-TC VMEM.
    return max(32 * 1024 * 1024,
               min(int(resident_bytes * 1.5) + (2 << 20), 56 * 1024 * 1024))


# --------------------------------------------------------------------------- #
# One-time parameter preparation (runs OUTSIDE the jitted forward).
# --------------------------------------------------------------------------- #
def prepare_params(params):
    """Pad to 128/TM multiples, fuse mean|var weights, cast big weights to bf16."""
    w1, b1, wm, bm, wv, bv, wd2, bd2, wd1, bd1 = params
    M, eh1 = w1.shape
    eh2 = wm.shape[1]
    dh2 = wd2.shape[1]
    tm = _tile_m(M)
    Mp = _round_up(M, tm)
    EH1p, EH2p, DH2p = (_round_up(d, 128) for d in (eh1, eh2, dh2))

    w1p = _pad2(w1, Mp, EH1p).astype(jnp.bfloat16)
    b1p = _pad2(b1, 1, EH1p)                                        # f32
    wmvp = jnp.concatenate(
        [_pad2(wm, EH1p, EH2p), _pad2(wv, EH1p, EH2p)], axis=1).astype(jnp.bfloat16)
    bmvp = jnp.concatenate([_pad2(bm, 1, EH2p), _pad2(bv, 1, EH2p)], axis=1)
    wd2p = _pad2(wd2, EH2p, DH2p).astype(jnp.bfloat16)
    bd2p = _pad2(bd2, 1, DH2p)
    wd1p = _pad2(wd1, DH2p, Mp).astype(jnp.bfloat16)
    bd1p = _pad2(bd1, 1, Mp, value=-1e30)   # padded vocab cols vanish in softmax
    return (w1p, b1p, wmvp, bmvp, wd2p, bd2p, wd1p, bd1p)


# --------------------------------------------------------------------------- #
# Kernels
# --------------------------------------------------------------------------- #
def encoder_kernel(x_ref, w1_ref, b1_ref, wmv_ref, bmv_ref, wd2_ref, bd2_ref,
                   eps_ref, d1_ref, kl_ref, acc_ref):
    """Grid (batch tile i, vocab K-tile k): accumulate x@w1, finish at last k."""
    k = pl.program_id(1)

    @pl.when(k == 0)
    def _():
        acc_ref[...] = jnp.zeros(acc_ref.shape, jnp.float32)

    acc_ref[...] += jnp.dot(x_ref[...], w1_ref[...],
                            preferred_element_type=jnp.float32)

    @pl.when(k == pl.num_programs(1) - 1)
    def _():
        e2 = jnp.tanh(acc_ref[...] + b1_ref[...]).astype(jnp.bfloat16)
        # fused mean|logvar projection: one MXU pass, 2*EH2p lanes
        mv = jnp.dot(e2, wmv_ref[...], preferred_element_type=jnp.float32) + bmv_ref[...]
        eh2p = mv.shape[1] // 2
        mean, varlog = mv[:, :eh2p], mv[:, eh2p:]
        var = jnp.exp(varlog)
        std = jnp.sqrt(var)                        # == exp(0.5 * varlog)
        # KL: each padded latent col contributes exactly +1, cancelled by -eh2p.
        kl_ref[...] = 0.5 * (jnp.sum(mean * mean + var - varlog,
                                     axis=1, keepdims=True) - jnp.float32(eh2p))
        z = (mean + std * eps_ref[...].astype(jnp.float32)).astype(jnp.bfloat16)
        d2 = jnp.dot(z, wd2_ref[...], preferred_element_type=jnp.float32) + bd2_ref[...]
        d1_ref[...] = jnp.tanh(d2).astype(jnp.bfloat16)


def decoder_kernel(d1_ref, wd1_ref, bd1_ref, logits_ref, mlse_ref, m_ref, s_ref):
    """Grid (batch tile i, vocab N-tile n): logits tile + online log-softmax stats."""
    n = pl.program_id(1)

    @pl.when(n == 0)
    def _():
        m_ref[...] = jnp.full(m_ref.shape, -jnp.inf, jnp.float32)
        s_ref[...] = jnp.zeros(s_ref.shape, jnp.float32)

    d0 = jnp.dot(d1_ref[...], wd1_ref[...],
                 preferred_element_type=jnp.float32) + bd1_ref[...]
    d0b = d0.astype(jnp.bfloat16)
    logits_ref[...] = d0b                         # bf16, lane-dense store
    d0q = d0b.astype(jnp.float32)                 # stats from stored values -> consistent lse
    m_new = jnp.maximum(m_ref[...], jnp.max(d0q, axis=1, keepdims=True))
    s_ref[...] = (s_ref[...] * jnp.exp(m_ref[...] - m_new)
                  + jnp.sum(jnp.exp(d0q - m_new), axis=1, keepdims=True))
    m_ref[...] = m_new

    @pl.when(n == pl.num_programs(1) - 1)
    def _():
        mlse_ref[...] = m_ref[...] + jnp.log(s_ref[...])


def normalize_kernel(logits_ref, mlse_ref, xlog_ref):
    """xlog = logits - (rowmax + log-sum-exp), written lane-dense in bf16."""
    xlog_ref[...] = (logits_ref[...].astype(jnp.float32)
                     - mlse_ref[...]).astype(jnp.bfloat16)


# --------------------------------------------------------------------------- #
# Forward wrapper
# --------------------------------------------------------------------------- #
@jax.jit
def vae_forward(x, pparams, eps):
    """x: (B, M), eps: (B, eh2); pparams from prepare_params() (done once)."""
    w1p, b1p, wmvp, bmvp, wd2p, bd2p, wd1p, bd1p = pparams
    B, M = x.shape
    Mp, EH1p = w1p.shape
    EH2p = wmvp.shape[1] // 2
    DH2p = wd2p.shape[1]
    tm = _tile_m(Mp)
    Bp = _round_up(B, TB)
    nb, nm = Bp // TB, Mp // tm

    xp = _pad2(x, Bp, Mp).astype(jnp.bfloat16)
    epsp = _pad2(eps, Bp, EH2p).astype(jnp.bfloat16)   # bf16 noise, upcast in-kernel

    # ---- call 1: encoder (K-reduction over Mp) + KL + reparameterize + dhl2 ----
    small_bytes = (b1p.size * 4 + wmvp.size * 2 + bmvp.size * 4
                   + wd2p.size * 2 + bd2p.size * 4)
    vmem1 = _vmem_budget(2 * TB * tm * 2          # x tile (double-buffered)
                         + 2 * tm * EH1p * 2      # w1 tile
                         + 2 * TB * EH2p * 2      # eps tile
                         + 2 * small_bytes        # resident small weights (x2 conservatively)
                         + 2 * TB * DH2p * 2      # d1 output tile
                         + 2 * TB * 128 * 4       # kl output tile (lane-padded)
                         + TB * EH1p * 4)         # f32 accumulator scratch

    d1, kl = pl.pallas_call(
        encoder_kernel,
        out_shape=(jax.ShapeDtypeStruct((Bp, DH2p), jnp.bfloat16),
                   jax.ShapeDtypeStruct((Bp, 1), jnp.float32)),
        grid=(nb, nm),
        in_specs=[
            pl.BlockSpec((TB, tm), lambda i, k: (i, k)),           # x (streamed)
            pl.BlockSpec((tm, EH1p), lambda i, k: (k, 0)),         # w1 (streamed)
            pl.BlockSpec((1, EH1p), lambda i, k: (0, 0)),          # b1   (resident)
            pl.BlockSpec((EH1p, 2 * EH2p), lambda i, k: (0, 0)),   # wmv  (resident)
            pl.BlockSpec((1, 2 * EH2p), lambda i, k: (0, 0)),      # bmv  (resident)
            pl.BlockSpec((EH2p, DH2p), lambda i, k: (0, 0)),       # wd2  (resident)
            pl.BlockSpec((1, DH2p), lambda i, k: (0, 0)),          # bd2  (resident)
            pl.BlockSpec((TB, EH2p), lambda i, k: (i, 0)),         # eps
        ],
        out_specs=(pl.BlockSpec((TB, DH2p), lambda i, k: (i, 0)),
                   pl.BlockSpec((TB, 1), lambda i, k: (i, 0))),
        scratch_shapes=[pltpu.VMEM((TB, EH1p), jnp.float32)],
        compiler_params=pltpu.CompilerParams(
            dimension_semantics=("parallel", "arbitrary"),
            vmem_limit_bytes=vmem1),
        cost_estimate=pl.CostEstimate(
            flops=2 * Bp * (Mp * EH1p + EH1p * 2 * EH2p + EH2p * DH2p),
            transcendentals=Bp * (EH1p + 2 * EH2p + DH2p),
            bytes_accessed=(Bp * Mp * 2 + Mp * EH1p * 2 + small_bytes
                            + Bp * EH2p * 2 + Bp * DH2p * 2 + Bp * 4)),
    )(xp, w1p, b1p, wmvp, bmvp, wd2p, bd2p, epsp)

    # ---- call 2: decoder logits (N-tiled over Mp) + online log-softmax stats ----
    vmem2 = _vmem_budget(2 * TB * DH2p * 2        # d1 tile
                         + 2 * DH2p * tm * 2      # wd1 tile
                         + 2 * 8 * tm * 4         # bd1 tile (sublane-padded)
                         + 2 * TB * tm * 2        # logits output tile
                         + 2 * TB * 128 * 4       # mlse output tile (lane-padded)
                         + 2 * TB * 128 * 4)      # running max/sum scratch

    logits, mlse = pl.pallas_call(
        decoder_kernel,
        out_shape=(jax.ShapeDtypeStruct((Bp, Mp), jnp.bfloat16),
                   jax.ShapeDtypeStruct((Bp, 1), jnp.float32)),
        grid=(nb, nm),
        in_specs=[
            pl.BlockSpec((TB, DH2p), lambda i, n: (i, 0)),  # d1
            pl.BlockSpec((DH2p, tm), lambda i, n: (0, n)),  # wd1 (streamed)
            pl.BlockSpec((1, tm), lambda i, n: (0, n)),     # bd1 (streamed)
        ],
        out_specs=(pl.BlockSpec((TB, tm), lambda i, n: (i, n)),
                   pl.BlockSpec((TB, 1), lambda i, n: (i, 0))),
        scratch_shapes=[pltpu.VMEM((TB, 1), jnp.float32),
                        pltpu.VMEM((TB, 1), jnp.float32)],
        compiler_params=pltpu.CompilerParams(
            dimension_semantics=("parallel", "arbitrary"),
            vmem_limit_bytes=vmem2),
        cost_estimate=pl.CostEstimate(
            flops=2 * Bp * DH2p * Mp,
            transcendentals=Bp * Mp + Bp,        # exp per logit + one log per row
            bytes_accessed=(Bp * DH2p * 2 + nb * Mp * DH2p * 2 + nb * Mp * 4
                            + Bp * Mp * 2 + Bp * 4)),
    )(d1, wd1p, bd1p)

    # ---- call 3: normalize to log-probs (bf16, lane-dense) ----
    vmem3 = _vmem_budget(2 * TB * tm * 2 + 2 * TB * 128 * 4 + 2 * TB * tm * 2)
    xlog = pl.pallas_call(
        normalize_kernel,
        out_shape=jax.ShapeDtypeStruct((Bp, Mp), jnp.bfloat16),
        grid=(nb, nm),
        in_specs=[pl.BlockSpec((TB, tm), lambda i, n: (i, n)),
                  pl.BlockSpec((TB, 1), lambda i, n: (i, 0))],
        out_specs=pl.BlockSpec((TB, tm), lambda i, n: (i, n)),
        compiler_params=pltpu.CompilerParams(
            dimension_semantics=("parallel", "parallel"),
            vmem_limit_bytes=vmem3),
    )(logits, mlse)

    return xlog[:B, :M], kl[:B, 0]


# --------------------------------------------------------------------------- #
# Parameter init + pure-JAX reference
# --------------------------------------------------------------------------- #
def init_linear(key, fan_in, fan_out):
    # PyTorch nn.Linear default: U(-1/sqrt(fan_in), 1/sqrt(fan_in)) for W and b.
    kw, kb = jax.random.split(key)
    bound = 1.0 / (fan_in ** 0.5)
    w = jax.random.uniform(kw, (fan_in, fan_out), jnp.float32, -bound, bound)
    b = jax.random.uniform(kb, (1, fan_out), jnp.float32, -bound, bound)
    return w, b


def make_params(key, M, eh1, eh2, dh2):
    k1, k2, k3, k4, k5 = jax.random.split(key, 5)
    w1, b1 = init_linear(k1, M, eh1)      # ehl1
    wm, bm = init_linear(k2, eh1, eh2)    # ehl2mean
    wv, bv = init_linear(k3, eh1, eh2)    # ehl2var
    wd2, bd2 = init_linear(k4, eh2, dh2)  # dhl2
    wd1, bd1 = init_linear(k5, dh2, M)    # dhl1
    return (w1, b1, wm, bm, wv, bv, wd2, bd2, wd1, bd1)


def reference_forward(x, params, eps):
    w1, b1, wm, bm, wv, bv, wd2, bd2, wd1, bd1 = params
    e2 = jnp.tanh(x @ w1 + b1)
    mean = e2 @ wm + bm
    varlog = e2 @ wv + bv
    std = jnp.exp(0.5 * varlog)
    kl = 0.5 * (jnp.sum(mean * mean + std * std - varlog, axis=1) - mean.shape[1])
    z = mean + std * eps
    d1 = jnp.tanh(z @ wd2 + bd2)
    d0 = d1 @ wd1 + bd1
    xlog = jax.nn.log_softmax(d0, axis=1)
    return xlog, kl


if __name__ == "__main__":
    # Small shapes consistent with the module (hidden sizes scaled down); dims
    # deliberately NOT multiples of 128 so the exact-math padding and the tiled
    # (2 K-tiles x 2 N-tiles, 2 batch tiles) path are both exercised.
    B, M, EH1, EH2, DH2 = 200, 200, 96, 48, 96

    key = jax.random.PRNGKey(0)
    k_x, k_p, k_eps = jax.random.split(key, 3)

    x = jax.random.normal(k_x, (B, M), jnp.float32)
    params = make_params(k_p, M, EH1, EH2, DH2)
    # reparameterization noise (torch.randn_like equivalent, fixed seed)
    eps = jax.random.normal(k_eps, (B, EH2), jnp.float32)

    pparams = prepare_params(params)          # one-time, outside the jitted forward
    xlog, kl = vae_forward(x, pparams, eps)
    jax.block_until_ready((xlog, kl))

    xlog_f32 = xlog.astype(jnp.float32)
    xlog_ref, kl_ref = reference_forward(x, params, eps)
    # bf16 weights/activations/log-prob output with f32 accumulation -> relaxed tol.
    assert jnp.allclose(xlog_f32, xlog_ref, atol=5e-2, rtol=5e-2), \
        float(jnp.max(jnp.abs(xlog_f32 - xlog_ref)))
    assert jnp.allclose(kl, kl_ref, atol=1e-1, rtol=5e-2), \
        float(jnp.max(jnp.abs(kl - kl_ref)))
    # exp(log-probs) over the real vocabulary must sum to ~1 (padded cols inert)
    assert jnp.allclose(jnp.sum(jnp.exp(xlog_f32), axis=1), 1.0, atol=1e-2)

    print("KERNEL_OK")
</pallas_src>

<mosaic_0001>
module attributes {stable_mosaic.version = 11 : i64} {
  func.func @decoder_kernel(%arg0: i32, %arg1: i32, %arg2: memref<128x128xbf16, #tpu.memory_space<vmem>>, %arg3: memref<128x128xbf16, #tpu.memory_space<vmem>>, %arg4: memref<1x128xf32, #tpu.memory_space<vmem>>, %arg5: memref<128x128xbf16, #tpu.memory_space<vmem>>, %arg6: memref<128x1xf32, #tpu.memory_space<vmem>>, %arg7: memref<128x1xf32, #tpu.memory_space<vmem>>, %arg8: memref<128x1xf32, #tpu.memory_space<vmem>>) attributes {dimension_semantics = [#tpu.dimension_semantics<parallel>, #tpu.dimension_semantics<arbitrary>], iteration_bounds = array<i64: 2, 2>, scalar_prefetch = 0 : i64, scratch_operands = 2 : i64, tpu.core_type = #tpu.core_type<tc>, window_params = [{transform_indices = @transform_0, window_bounds = array<i64: 128, 128>}, {transform_indices = @transform_1, window_bounds = array<i64: 128, 128>}, {transform_indices = @transform_2, window_bounds = array<i64: 1, 128>}, {transform_indices = @transform_3, window_bounds = array<i64: 128, 128>}, {transform_indices = @transform_4, window_bounds = array<i64: 128, 1>}]} {
    %c0_i32 = arith.constant 0 : i32
    %0 = arith.cmpi eq, %arg1, %c0_i32 : i32
    %1 = arith.extui %0 : i1 to i32
    %c0_i32_0 = arith.constant 0 : i32
    %2 = arith.cmpi ne, %1, %c0_i32_0 : i32
    scf.if %2 {
      %cst_21 = arith.constant 0xFF800000 : f32
      %32 = vector.broadcast %cst_21 : f32 to vector<128x1xf32>
      %c0_22 = arith.constant 0 : index
      %c0_23 = arith.constant 0 : index
      %33 = vector.load %arg7[%c0_22, %c0_23] : memref<128x1xf32, #tpu.memory_space<vmem>>, vector<128x1xf32>
      tpu.vector_store %arg7[%c0_22, %c0_23], %32 {strides = array<i32>} : memref<128x1xf32, #tpu.memory_space<vmem>>, vector<128x1xf32>,
      %cst_24 = arith.constant 0.000000e+00 : f32
      %34 = vector.broadcast %cst_24 : f32 to vector<128x1xf32>
      %c0_25 = arith.constant 0 : index
      %c0_26 = arith.constant 0 : index
      %35 = vector.load %arg8[%c0_25, %c0_26] : memref<128x1xf32, #tpu.memory_space<vmem>>, vector<128x1xf32>
      tpu.vector_store %arg8[%c0_25, %c0_26], %34 {strides = array<i32>} : memref<128x1xf32, #tpu.memory_space<vmem>>, vector<128x1xf32>,
    } else {
    }
    %c0 = arith.constant 0 : index
    %c0_1 = arith.constant 0 : index
    %3 = vector.load %arg2[%c0, %c0_1] : memref<128x128xbf16, #tpu.memory_space<vmem>>, vector<128x128xbf16>
    %c0_2 = arith.constant 0 : index
    %c0_3 = arith.constant 0 : index
    %4 = vector.load %arg3[%c0_2, %c0_3] : memref<128x128xbf16, #tpu.memory_space<vmem>>, vector<128x128xbf16>
    %cst = arith.constant dense<0.000000e+00> : vector<128x128xf32>
    %5 = tpu.matmul %3, %4, %cst {dimension_numbers = #tpu.dot_dimension_numbers<[1], [0], [0], [1], [0, 0, 1, 1], [], []>} : vector<128x128xbf16>, vector<128x128xbf16>, vector<128x128xf32> -> vector<128x128xf32>
    %c0_4 = arith.constant 0 : index
    %c0_5 = arith.constant 0 : index
    %6 = vector.load %arg4[%c0_4, %c0_5] : memref<1x128xf32, #tpu.memory_space<vmem>>, vector<1x128xf32>
    %7 = vector.broadcast %6 : vector<1x128xf32> to vector<128x128xf32>
    %8 = arith.addf %5, %7 : vector<128x128xf32>
    %9 = arith.truncf %8 : vector<128x128xf32> to vector<128x128xbf16>
    %c0_6 = arith.constant 0 : index
    %c0_7 = arith.constant 0 : index
    %10 = vector.load %arg5[%c0_6, %c0_7] : memref<128x128xbf16, #tpu.memory_space<vmem>>, vector<128x128xbf16>
    tpu.vector_store %arg5[%c0_6, %c0_7], %9 {strides = array<i32>} : memref<128x128xbf16, #tpu.memory_space<vmem>>, vector<128x128xbf16>,
    %11 = arith.extf %9 : vector<128x128xbf16> to vector<128x128xf32>
    %c0_8 = arith.constant 0 : index
    %c0_9 = arith.constant 0 : index
    %12 = vector.load %arg7[%c0_8, %c0_9] : memref<128x1xf32, #tpu.memory_space<vmem>>, vector<128x1xf32>
    %cst_10 = arith.constant dense<0xFF800000> : vector<128xf32>
    %13 = vector.multi_reduction <maximumf>, %11, %cst_10 [1] : vector<128x128xf32> to vector<128xf32>
    %14 = vector.shape_cast %13 : vector<128xf32> to vector<128x1xf32>
    %15 = arith.maximumf %12, %14 : vector<128x1xf32>
    %c0_11 = arith.constant 0 : index
    %c0_12 = arith.constant 0 : index
    %16 = vector.load %arg8[%c0_11, %c0_12] : memref<128x1xf32, #tpu.memory_space<vmem>>, vector<128x1xf32>
    %c0_13 = arith.constant 0 : index
    %c0_14 = arith.constant 0 : index
    %17 = vector.load %arg7[%c0_13, %c0_14] : memref<128x1xf32, #tpu.memory_space<vmem>>, vector<128x1xf32>
    %18 = arith.subf %17, %15 : vector<128x1xf32>
    %19 = math.exp %18 : vector<128x1xf32>
    %20 = arith.mulf %16, %19 : vector<128x1xf32>
    %21 = vector.broadcast %15 : vector<128x1xf32> to vector<128x128xf32>
    %22 = arith.subf %11, %21 : vector<128x128xf32>
    %23 = math.exp %22 : vector<128x128xf32>
    %cst_15 = arith.constant dense<0.000000e+00> : vector<128xf32>
    %24 = vector.multi_reduction <add>, %23, %cst_15 [1] : vector<128x128xf32> to vector<128xf32>
    %25 = vector.shape_cast %24 : vector<128xf32> to vector<128x1xf32>
    %26 = arith.addf %20, %25 : vector<128x1xf32>
    %c0_16 = arith.constant 0 : index
    %c0_17 = arith.constant 0 : index
    %27 = vector.load %arg8[%c0_16, %c0_17] : memref<128x1xf32, #tpu.memory_space<vmem>>, vector<128x1xf32>
    tpu.vector_store %arg8[%c0_16, %c0_17], %26 {strides = array<i32>} : memref<128x1xf32, #tpu.memory_space<vmem>>, vector<128x1xf32>,
    %c0_18 = arith.constant 0 : index
    %c0_19 = arith.constant 0 : index
    %28 = vector.load %arg7[%c0_18, %c0_19] : memref<128x1xf32, #tpu.memory_space<vmem>>, vector<128x1xf32>
    tpu.vector_store %arg7[%c0_18, %c0_19], %15 {strides = array<i32>} : memref<128x1xf32, #tpu.memory_space<vmem>>, vector<128x1xf32>,
    %c1_i32 = arith.constant 1 : i32
    %29 = arith.cmpi eq, %arg1, %c1_i32 : i32
    %30 = arith.extui %29 : i1 to i32
    %c0_i32_20 = arith.constant 0 : i32
    %31 = arith.cmpi ne, %30, %c0_i32_20 : i32
    scf.if %31 {
      %c0_21 = arith.constant 0 : index
      %c0_22 = arith.constant 0 : index
      %32 = vector.load %arg7[%c0_21, %c0_22] : memref<128x1xf32, #tpu.memory_space<vmem>>, vector<128x1xf32>
      %c0_23 = arith.constant 0 : index
      %c0_24 = arith.constant 0 : index
      %33 = vector.load %arg8[%c0_23, %c0_24] : memref<128x1xf32, #tpu.memory_space<vmem>>, vector<128x1xf32>
      %34 = math.log %33 : vector<128x1xf32>
      %35 = arith.addf %32, %34 : vector<128x1xf32>
      %c0_25 = arith.constant 0 : index
      %c0_26 = arith.constant 0 : index
      %36 = vector.load %arg6[%c0_25, %c0_26] : memref<128x1xf32, #tpu.memory_space<vmem>>, vector<128x1xf32>
      tpu.vector_store %arg6[%c0_25, %c0_26], %35 {strides = array<i32>} : memref<128x1xf32, #tpu.memory_space<vmem>>, vector<128x1xf32>,
    } else {
    }
    return
  }
  func.func @transform_0(%arg0: i32, %arg1: i32) -> (i32, i32) {
    %c0_i32 = arith.constant 0 : i32
    %c0_i32_0 = arith.constant 0 : i32
    return %arg0, %c0_i32 : i32, i32
  }
  func.func @transform_1(%arg0: i32, %arg1: i32) -> (i32, i32) {
    %c0_i32 = arith.constant 0 : i32
    %c0_i32_0 = arith.constant 0 : i32
    return %c0_i32, %arg1 : i32, i32
  }
  func.func @transform_2(%arg0: i32, %arg1: i32) -> (i32, i32) {
    %c0_i32 = arith.constant 0 : i32
    %c0_i32_0 = arith.constant 0 : i32
    return %c0_i32, %arg1 : i32, i32
  }
  func.func @transform_3(%arg0: i32, %arg1: i32) -> (i32, i32) {
    %c0_i32 = arith.constant 0 : i32
    return %arg0, %arg1 : i32, i32
  }
  func.func @transform_4(%arg0: i32, %arg1: i32) -> (i32, i32) {
    %c0_i32 = arith.constant 0 : i32
    %c0_i32_0 = arith.constant 0 : i32
    return %arg0, %c0_i32 : i32, i32
  }
}

module attributes {stable_mosaic.version = 11 : i64} {
  func.func @encoder_kernel(%arg0: i32, %arg1: i32, %arg2: memref<128x128xbf16, #tpu.memory_space<vmem>>, %arg3: memref<128x128xbf16, #tpu.memory_space<vmem>>, %arg4: memref<1x128xf32, #tpu.memory_space<vmem>>, %arg5: memref<128x256xbf16, #tpu.memory_space<vmem>>, %arg6: memref<1x256xf32, #tpu.memory_space<vmem>>, %arg7: memref<128x128xbf16, #tpu.memory_space<vmem>>, %arg8: memref<1x128xf32, #tpu.memory_space<vmem>>, %arg9: memref<128x128xbf16, #tpu.memory_space<vmem>>, %arg10: memref<128x128xbf16, #tpu.memory_space<vmem>>, %arg11: memref<128x1xf32, #tpu.memory_space<vmem>>, %arg12: memref<128x128xf32, #tpu.memory_space<vmem>>) attributes {dimension_semantics = [#tpu.dimension_semantics<parallel>, #tpu.dimension_semantics<arbitrary>], iteration_bounds = array<i64: 2, 2>, scalar_prefetch = 0 : i64, scratch_operands = 1 : i64, tpu.core_type = #tpu.core_type<tc>, window_params = [{transform_indices = @transform_0, window_bounds = array<i64: 128, 128>}, {transform_indices = @transform_1, window_bounds = array<i64: 128, 128>}, {pipeline_mode = #tpu.pipeline_mode<synchronous>, transform_indices = @transform_2, window_bounds = array<i64: 1, 128>}, {pipeline_mode = #tpu.pipeline_mode<synchronous>, transform_indices = @transform_3, window_bounds = array<i64: 128, 256>}, {pipeline_mode = #tpu.pipeline_mode<synchronous>, transform_indices = @transform_4, window_bounds = array<i64: 1, 256>}, {pipeline_mode = #tpu.pipeline_mode<synchronous>, transform_indices = @transform_5, window_bounds = array<i64: 128, 128>}, {pipeline_mode = #tpu.pipeline_mode<synchronous>, transform_indices = @transform_6, window_bounds = array<i64: 1, 128>}, {transform_indices = @transform_7, window_bounds = array<i64: 128, 128>}, {transform_indices = @transform_8, window_bounds = array<i64: 128, 128>}, {transform_indices = @transform_9, window_bounds = array<i64: 128, 1>}]} {
    %c0_i32 = arith.constant 0 : i32
    %0 = arith.cmpi eq, %arg1, %c0_i32 : i32
    %1 = arith.extui %0 : i1 to i32
    %c0_i32_0 = arith.constant 0 : i32
    %2 = arith.cmpi ne, %1, %c0_i32_0 : i32
    scf.if %2 {
      %cst_9 = arith.constant 0.000000e+00 : f32
      %12 = vector.broadcast %cst_9 : f32 to vector<128x128xf32>
      %c0_10 = arith.constant 0 : index
      %c0_11 = arith.constant 0 : index
      %13 = vector.load %arg12[%c0_10, %c0_11] : memref<128x128xf32, #tpu.memory_space<vmem>>, vector<128x128xf32>
      tpu.vector_store %arg12[%c0_10, %c0_11], %12 {strides = array<i32>} : memref<128x128xf32, #tpu.memory_space<vmem>>, vector<128x128xf32>,
    } else {
    }
    %c0 = arith.constant 0 : index
    %c0_1 = arith.constant 0 : index
    %3 = vector.load %arg12[%c0, %c0_1] : memref<128x128xf32, #tpu.memory_space<vmem>>, vector<128x128xf32>
    %c0_2 = arith.constant 0 : index
    %c0_3 = arith.constant 0 : index
    %4 = vector.load %arg2[%c0_2, %c0_3] : memref<128x128xbf16, #tpu.memory_space<vmem>>, vector<128x128xbf16>
    %c0_4 = arith.constant 0 : index
    %c0_5 = arith.constant 0 : index
    %5 = vector.load %arg3[%c0_4, %c0_5] : memref<128x128xbf16, #tpu.memory_space<vmem>>, vector<128x128xbf16>
    %cst = arith.constant dense<0.000000e+00> : vector<128x128xf32>
    %6 = tpu.matmul %4, %5, %cst {dimension_numbers = #tpu.dot_dimension_numbers<[1], [0], [0], [1], [0, 0, 1, 1], [], []>} : vector<128x128xbf16>, vector<128x128xbf16>, vector<128x128xf32> -> vector<128x128xf32>
    %7 = arith.addf %3, %6 : vector<128x128xf32>
    %c0_6 = arith.constant 0 : index
    %c0_7 = arith.constant 0 : index
    %8 = vector.load %arg12[%c0_6, %c0_7] : memref<128x128xf32, #tpu.memory_space<vmem>>, vector<128x128xf32>
    tpu.vector_store %arg12[%c0_6, %c0_7], %7 {strides = array<i32>} : memref<128x128xf32, #tpu.memory_space<vmem>>, vector<128x128xf32>,
    %c1_i32 = arith.constant 1 : i32
    %9 = arith.cmpi eq, %arg1, %c1_i32 : i32
    %10 = arith.extui %9 : i1 to i32
    %c0_i32_8 = arith.constant 0 : i32
    %11 = arith.cmpi ne, %10, %c0_i32_8 : i32
    scf.if %11 {
      %c0_9 = arith.constant 0 : index
      %c0_10 = arith.constant 0 : index
      %12 = vector.load %arg12[%c0_9, %c0_10] : memref<128x128xf32, #tpu.memory_space<vmem>>, vector<128x128xf32>
      %c0_11 = arith.constant 0 : index
      %c0_12 = arith.constant 0 : index
      %13 = vector.load %arg4[%c0_11, %c0_12] : memref<1x128xf32, #tpu.memory_space<vmem>>, vector<1x128xf32>
      %14 = vector.broadcast %13 : vector<1x128xf32> to vector<128x128xf32>
      %15 = arith.addf %12, %14 : vector<128x128xf32>
      %16 = math.tanh %15 : vector<128x128xf32>
      %17 = arith.truncf %16 : vector<128x128xf32> to vector<128x128xbf16>
      %c0_13 = arith.constant 0 : index
      %c0_14 = arith.constant 0 : index
      %18 = vector.load %arg5[%c0_13, %c0_14] : memref<128x256xbf16, #tpu.memory_space<vmem>>, vector<128x256xbf16>
      %cst_15 = arith.constant dense<0.000000e+00> : vector<128x256xf32>
      %19 = tpu.matmul %17, %18, %cst_15 {dimension_numbers = #tpu.dot_dimension_numbers<[1], [0], [0], [1], [0, 0, 1, 1], [], []>} : vector<128x128xbf16>, vector<128x256xbf16>, vector<128x256xf32> -> vector<128x256xf32>
      %c0_16 = arith.constant 0 : index
      %c0_17 = arith.constant 0 : index
      %20 = vector.load %arg6[%c0_16, %c0_17] : memref<1x256xf32, #tpu.memory_space<vmem>>, vector<1x256xf32>
      %21 = vector.broadcast %20 : vector<1x256xf32> to vector<128x256xf32>
      %22 = arith.addf %19, %21 : vector<128x256xf32>
      %23 = vector.extract_strided_slice %22 {offsets = [0, 0], sizes = [128, 128], strides = [1, 1]} : vector<128x256xf32> to vector<128x128xf32>
      %24 = vector.extract_strided_slice %22 {offsets = [0, 128], sizes = [128, 128], strides = [1, 1]} : vector<128x256xf32> to vector<128x128xf32>
      %25 = math.exp %24 : vector<128x128xf32>
      %26 = math.sqrt %25 : vector<128x128xf32>
      %27 = arith.mulf %23, %23 : vector<128x128xf32>
      %28 = arith.addf %27, %25 : vector<128x128xf32>
      %29 = arith.subf %28, %24 : vector<128x128xf32>
      %cst_18 = arith.constant dense<0.000000e+00> : vector<128xf32>
      %30 = vector.multi_reduction <add>, %29, %cst_18 [1] : vector<128x128xf32> to vector<128xf32>
      %31 = vector.shape_cast %30 : vector<128xf32> to vector<128x1xf32>
      %cst_19 = arith.constant 1.280000e+02 : f32
      %32 = vector.broadcast %cst_19 : f32 to vector<128x1xf32>
      %33 = arith.subf %31, %32 : vector<128x1xf32>
      %cst_20 = arith.constant 5.000000e-01 : f32
      %34 = vector.broadcast %cst_20 : f32 to vector<128x1xf32>
      %35 = arith.mulf %34, %33 : vector<128x1xf32>
      %c0_21 = arith.constant 0 : index
      %c0_22 = arith.constant 0 : index
      %36 = vector.load %arg11[%c0_21, %c0_22] : memref<128x1xf32, #tpu.memory_space<vmem>>, vector<128x1xf32>
      tpu.vector_store %arg11[%c0_21, %c0_22], %35 {strides = array<i32>} : memref<128x1xf32, #tpu.memory_space<vmem>>, vector<128x1xf32>,
      %c0_23 = arith.constant 0 : index
      %c0_24 = arith.constant 0 : index
      %37 = vector.load %arg9[%c0_23, %c0_24] : memref<128x128xbf16, #tpu.memory_space<vmem>>, vector<128x128xbf16>
      %38 = arith.extf %37 : vector<128x128xbf16> to vector<128x128xf32>
      %39 = arith.mulf %26, %38 : vector<128x128xf32>
      %40 = arith.addf %23, %39 : vector<128x128xf32>
      %41 = arith.truncf %40 : vector<128x128xf32> to vector<128x128xbf16>
      %c0_25 = arith.constant 0 : index
      %c0_26 = arith.constant 0 : index
      %42 = vector.load %arg7[%c0_25, %c0_26] : memref<128x128xbf16, #tpu.memory_space<vmem>>, vector<128x128xbf16>
      %cst_27 = arith.constant dense<0.000000e+00> : vector<128x128xf32>
      %43 = tpu.matmul %41, %42, %cst_27 {dimension_numbers = #tpu.dot_dimension_numbers<[1], [0], [0], [1], [0, 0, 1, 1], [], []>} : vector<128x128xbf16>, vector<128x128xbf16>, vector<128x128xf32> -> vector<128x128xf32>
      %c0_28 = arith.constant 0 : index
      %c0_29 = arith.constant 0 : index
      %44 = vector.load %arg8[%c0_28, %c0_29] : memref<1x128xf32, #tpu.memory_space<vmem>>, vector<1x128xf32>
      %45 = vector.broadcast %44 : vector<1x128xf32> to vector<128x128xf32>
      %46 = arith.addf %43, %45 : vector<128x128xf32>
      %47 = math.tanh %46 : vector<128x128xf32>
      %48 = arith.truncf %47 : vector<128x128xf32> to vector<128x128xbf16>
      %c0_30 = arith.constant 0 : index
      %c0_31 = arith.constant 0 : index
      %49 = vector.load %arg10[%c0_30, %c0_31] : memref<128x128xbf16, #tpu.memory_space<vmem>>, vector<128x128xbf16>
      tpu.vector_store %arg10[%c0_30, %c0_31], %48 {strides = array<i32>} : memref<128x128xbf16, #tpu.memory_space<vmem>>, vector<128x128xbf16>,
    } else {
    }
    return
  }
  func.func @transform_0(%arg0: i32, %arg1: i32) -> (i32, i32) {
    %c0_i32 = arith.constant 0 : i32
    return %arg0, %arg1 : i32, i32
  }
  func.func @transform_1(%arg0: i32, %arg1: i32) -> (i32, i32) {
    %c0_i32 = arith.constant 0 : i32
    %c0_i32_0 = arith.constant 0 : i32
    return %arg1, %c0_i32 : i32, i32
  }
  func.func @transform_2(%arg0: i32, %arg1: i32) -> (i32, i32) {
    %c0_i32 = arith.constant 0 : i32
    %c0_i32_0 = arith.constant 0 : i32
    %c0_i32_1 = arith.constant 0 : i32
    return %c0_i32, %c0_i32_0 : i32, i32
  }
  func.func @transform_3(%arg0: i32, %arg1: i32) -> (i32, i32) {
    %c0_i32 = arith.constant 0 : i32
    %c0_i32_0 = arith.constant 0 : i32
    %c0_i32_1 = arith.constant 0 : i32
    return %c0_i32, %c0_i32_0 : i32, i32
  }
  func.func @transform_4(%arg0: i32, %arg1: i32) -> (i32, i32) {
    %c0_i32 = arith.constant 0 : i32
    %c0_i32_0 = arith.constant 0 : i32
    %c0_i32_1 = arith.constant 0 : i32
    return %c0_i32, %c0_i32_0 : i32, i32
  }
  func.func @transform_5(%arg0: i32, %arg1: i32) -> (i32, i32) {
    %c0_i32 = arith.constant 0 : i32
    %c0_i32_0 = arith.constant 0 : i32
    %c0_i32_1 = arith.constant 0 : i32
    return %c0_i32, %c0_i32_0 : i32, i32
  }
  func.func @transform_6(%arg0: i32, %arg1: i32) -> (i32, i32) {
    %c0_i32 = arith.constant 0 : i32
    %c0_i32_0 = arith.constant 0 : i32
    %c0_i32_1 = arith.constant 0 : i32
    return %c0_i32, %c0_i32_0 : i32, i32
  }
  func.func @transform_7(%arg0: i32, %arg1: i32) -> (i32, i32) {
    %c0_i32 = arith.constant 0 : i32
    %c0_i32_0 = arith.constant 0 : i32
    return %arg0, %c0_i32 : i32, i32
  }
  func.func @transform_8(%arg0: i32, %arg1: i32) -> (i32, i32) {
    %c0_i32 = arith.constant 0 : i32
    %c0_i32_0 = arith.constant 0 : i32
    return %arg0, %c0_i32 : i32, i32
  }
  func.func @transform_9(%arg0: i32, %arg1: i32) -> (i32, i32) {
    %c0_i32 = arith.constant 0 : i32
    %c0_i32_0 = arith.constant 0 : i32
    return %arg0, %c0_i32 : i32, i32
  }
}

module attributes {stable_mosaic.version = 11 : i64} {
  func.func @normalize_kernel(%arg0: i32, %arg1: i32, %arg2: memref<128x128xbf16, #tpu.memory_space<vmem>>, %arg3: memref<128x1xf32, #tpu.memory_space<vmem>>, %arg4: memref<128x128xbf16, #tpu.memory_space<vmem>>) attributes {dimension_semantics = [#tpu.dimension_semantics<parallel>, #tpu.dimension_semantics<parallel>], iteration_bounds = array<i64: 2, 2>, scalar_prefetch = 0 : i64, scratch_operands = 0 : i64, tpu.core_type = #tpu.core_type<tc>, window_params = [{transform_indices = @transform_0, window_bounds = array<i64: 128, 128>}, {transform_indices = @transform_1, window_bounds = array<i64: 128, 1>}, {transform_indices = @transform_2, window_bounds = array<i64: 128, 128>}]} {
    %c0 = arith.constant 0 : index
    %c0_0 = arith.constant 0 : index
    %0 = vector.load %arg2[%c0, %c0_0] : memref<128x128xbf16, #tpu.memory_space<vmem>>, vector<128x128xbf16>
    %1 = arith.extf %0 : vector<128x128xbf16> to vector<128x128xf32>
    %c0_1 = arith.constant 0 : index
    %c0_2 = arith.constant 0 : index
    %2 = vector.load %arg3[%c0_1, %c0_2] : memref<128x1xf32, #tpu.memory_space<vmem>>, vector<128x1xf32>
    %3 = vector.broadcast %2 : vector<128x1xf32> to vector<128x128xf32>
    %4 = arith.subf %1, %3 : vector<128x128xf32>
    %5 = arith.truncf %4 : vector<128x128xf32> to vector<128x128xbf16>
    %c0_3 = arith.constant 0 : index
    %c0_4 = arith.constant 0 : index
    %6 = vector.load %arg4[%c0_3, %c0_4] : memref<128x128xbf16, #tpu.memory_space<vmem>>, vector<128x128xbf16>
    tpu.vector_store %arg4[%c0_3, %c0_4], %5 {strides = array<i32>} : memref<128x128xbf16, #tpu.memory_space<vmem>>, vector<128x128xbf16>,
    return
  }
  func.func @transform_0(%arg0: i32, %arg1: i32) -> (i32, i32) {
    %c0_i32 = arith.constant 0 : i32
    return %arg0, %arg1 : i32, i32
  }
  func.func @transform_1(%arg0: i32, %arg1: i32) -> (i32, i32) {
    %c0_i32 = arith.constant 0 : i32
    %c0_i32_0 = arith.constant 0 : i32
    return %arg0, %c0_i32 : i32, i32
  }
  func.func @transform_2(%arg0: i32, %arg1: i32) -> (i32, i32) {
    %c0_i32 = arith.constant 0 : i32
    return %arg0, %arg1 : i32, i32
  }
}

</mosaic_0001>

<bundles_post_ra>
// kernel: vae_forward.5
= control target key start
LH: loop header
LB: loop body
LE: loop exit
PB: predicated region body
PF: predicated region fallthrough
CT: control target
= control target key end

     0   :  { %s971_s9 = smov 0   ;;  %s973_s10 = smov 0   ;;  %s1125_s0 = inlined_call_operand.vmem [shape: bf16[256,256], index: 0, kind: input, shape index: {}]   ;;  %s1126_s1 = inlined_call_operand.vmem [shape: f32[256,1], index: 1, kind: input, shape index: {}]   ;;  %s1127_s2 = inlined_call_operand.vmem [shape: bf16[256,256], index: 2, kind: output, shape index: {}]  }
   0x1   :  { %s975_s11 = smov 0   ;;  %s977_s12 = smov 0  }
   0x2   :  { %s979_s13 = smov 0   ;;  %s981_s14 = smov 0  }
   0x3   :  { %s983_s15 = smov 0  }
   0x4 LB: > { %s21_s16 = sadd.s32 1, %s945_s13  ;;  %s24_s17 = sadd.s32 1, %s949_s14  ;;  %s953_s15 = sphi %s983_s15, %s12_s15   ;;  %s949_s14 = sphi %s981_s14, %s1134_s14   ;;  %s945_s13 = sphi %s979_s13, %s1133_s13   ;;  %s941_s12 = sphi %s977_s12, %s1132_s12   ;;  %s937_s11 = sphi %s975_s11, %s1131_s11   ;;  %s933_s10 = sphi %s973_s10, %s1130_s10   ;;  %s929_s9 = sphi %s971_s9, %s1129_s9  }
   0x5   : > { %p22_p0 = scmp.ge.s32.totalorder %s21_s16, 2  ;;  %s701_s18 = sadd.s32 4294967295, %s953_s15  }
   0x6   : > { %p40_p1 = scmp.ne.s32.totalorder %s933_s10, %s929_s9  ;;  %p41_p2 = scmp.eq.s32.totalorder %s953_s15, 0 }
   0x7   : > { %s1136_s16 = smov (%p22_p0, %s21_s16), 0  ;;  %s1138_s17 = smov (!%p22_p0, %s24_s17), %s949_s14 }
   0x8   : > { %p26_p3 = scmp.ge.s32.totalorder %s1138_s17, 2  ;;  %p98_p4 = scmp.eq.s32.totalorder %s701_s18, 3 }
   0x9   : > { %s29_s19 = ssub.s32 %s945_s13, %s1136_s16  ;;  %p42_p5 = por %p41_p2, %p40_p1 }
   0xa   : > { %s1140_s17 = smov (%p26_p3, %s1138_s17), 0  ;;  %p1019_p6 = por %p98_p4, %p40_p1 }
   0xb   : > { %s28_s21 = ssub.s32 %s949_s14, %s1140_s17  ;;  %s33_s23 = sadd.s32 1, %s933_s10 }
   0xc   : > { %s30_s22 = sor.u32 %s29_s19, %s28_s21  ;;  %p704_p8 = scmp.ge.s32.totalorder %s953_s15, 4 }
   0xd   : > { %p31_p7 = scmp.eq.s32.totalorder %s30_s22, 0 }
   0xe   : > { %120 = sbr.rel (%p704_p8) target bundleno = 37 (0x25), region = 16 }
   0xf   : > { %s1027_s24 = scalar_select %p31_p7, %s933_s10, %s33_s23  }
  0x15   : > { %123 = sbr.rel (!%p42_p5) target bundleno = 37 (0x25), region = 20  ;;  %s125_s25 = sand.u32 (%p42_p5), 1, %s933_s10  }
  0x16   : > { %s736_s26 = sshll.u32 (%p42_p5), %s949_s14, 5  ;;  %s705_s27 = sshll.u32 (%p42_p5), %s125_s25, 6 }
  0x17   : > { %s130_s28 = sadd.s32 (%p42_p5), %s945_s13, %s736_s26  ;;  %s127_s5 = scalar_lea.vmem (%p42_p5), [#allocation2], %s705_s27 }
  0x18   : > { %s708_s29 = sshll.u32 (%p42_p5), %s130_s28, 2 }
  0x19   : > { %s1036_s4 = scalar_lea.vmem (%p42_p5), %s1125_s0, %s708_s29 }
  0x1a   : > { %v148_v0 = vld [vmem:[%s1036_s4] sm:$0xf] (%p42_p5)  ;;  %v150_v1 = vld [vmem:[%s1036_s4 + $0x8] sm:$0xf] (%p42_p5)  ;;  %v152_v2 = vld [vmem:[%s1036_s4 + $0x10] sm:$0xf] (%p42_p5) }
  0x1b   : > { %149 = vst [vmem:[%s127_s5] sm:$0xf] (%p42_p5), %v148_v0  ;;  %151 = vst [vmem:[%s127_s5 + $0x4] sm:$0xf] (%p42_p5), %v150_v1  ;;  %v154_v3 = vld [vmem:[%s1036_s4 + $0x18] sm:$0xf] (%p42_p5) }
  0x1c   : > { %153 = vst [vmem:[%s127_s5 + $0x8] sm:$0xf] %v152_v2  ;;  %v156_v4 = vld [vmem:[%s1036_s4 + $0x20] sm:$0xf]  ;;  %v158_v5 = vld [vmem:[%s1036_s4 + $0x28] sm:$0xf] }
  0x1d   : > { %155 = vst [vmem:[%s127_s5 + $0xc] sm:$0xf] %v154_v3  ;;  %157 = vst [vmem:[%s127_s5 + $0x10] sm:$0xf] %v156_v4  ;;  %v160_v6 = vld [vmem:[%s1036_s4 + $0x30] sm:$0xf] }
  0x1e   : > { %159 = vst [vmem:[%s127_s5 + $0x14] sm:$0xf] %v158_v5  ;;  %v162_v7 = vld [vmem:[%s1036_s4 + $0x38] sm:$0xf]  ;;  %v164_v8 = vld [vmem:[%s1036_s4 + $0x40] sm:$0xf] }
  0x1f   : > { %161 = vst [vmem:[%s127_s5 + $0x18] sm:$0xf] %v160_v6  ;;  %163 = vst [vmem:[%s127_s5 + $0x1c] sm:$0xf] %v162_v7  ;;  %v166_v9 = vld [vmem:[%s1036_s4 + $0x48] sm:$0xf] }
  0x20   : > { %165 = vst [vmem:[%s127_s5 + $0x20] sm:$0xf] %v164_v8  ;;  %v168_v10 = vld [vmem:[%s1036_s4 + $0x50] sm:$0xf]  ;;  %v170_v11 = vld [vmem:[%s1036_s4 + $0x58] sm:$0xf] }
  0x21   : > { %167 = vst [vmem:[%s127_s5 + $0x24] sm:$0xf] %v166_v9  ;;  %169 = vst [vmem:[%s127_s5 + $0x28] sm:$0xf] %v168_v10  ;;  %v172_v12 = vld [vmem:[%s1036_s4 + $0x60] sm:$0xf] }
  0x22   : > { %171 = vst [vmem:[%s127_s5 + $0x2c] sm:$0xf] %v170_v11  ;;  %v174_v13 = vld [vmem:[%s1036_s4 + $0x68] sm:$0xf]  ;;  %v176_v14 = vld [vmem:[%s1036_s4 + $0x70] sm:$0xf] }
  0x23   : > { %173 = vst [vmem:[%s127_s5 + $0x30] sm:$0xf] %v172_v12  ;;  %175 = vst [vmem:[%s127_s5 + $0x34] sm:$0xf] %v174_v13  ;;  %v178_v15 = vld [vmem:[%s1036_s4 + $0x78] sm:$0xf] }
  0x24   : > { %177 = vst [vmem:[%s127_s5 + $0x38] sm:$0xf] %v176_v14  ;;  %179 = vst [vmem:[%s127_s5 + $0x3c] sm:$0xf] %v178_v15 }
  0x25 PF: > { %p709_p9 = scmp.ge.s32.totalorder %s953_s15, 1  ;;  %p242_p10 = scmp.lt.s32.totalorder %s953_s15, 5 }
  0x27   : > { %p243_p11 = pnand %p709_p9, %p242_p10 }
  0x28   : > { %s712_s6 = sshll.u32 (!%p243_p11), %s941_s12, 4  ;;  %v955_v16 = vmov (!%p243_p11), 0   ;;  %s249_s21 = sand.u32 (!%p243_p11), 1, %s929_s9  }
  0x29   : > { %246 = sbr.rel (%p243_p11) target bundleno = 221 (0xdd), region = 65  ;;  %898 = vset.pattern.permute.xlu1 (!%p243_p11), %v955_v16  ;;  %897 = vset.pattern.permute.xlu0 (!%p243_p11), %v955_v16  ;;  %p276_p12 = scmp.lt.s32.totalorder (!%p243_p11), %s712_s6, 31 }
  0x2a   : > { %s710_s22 = sshll.u32 (!%p243_p11), %s249_s21, 6 }
  0x2b   : > { %s1061_s23 = scalar_lea.vmem (!%p243_p11), [#allocation2], %s710_s22  ;;  %s1067_s9 = scalar_lea.vmem (!%p243_p11), [#allocation3], %s710_s22 }
  0x2c   : > { %v826_v33 = vld [vmem:[%s1061_s23 + $0x8] sm:$0xff] (!%p243_p11)   ;;  %v755_v34 = vld [vmem:[%s1061_s23] sm:$0xff] (!%p243_p11)   ;;  %v827_v41 = vld [vmem:[%s1061_s23 + $0x10] sm:$0xff] (!%p243_p11)  }
  0x2d   : > { %v760_v37 = vunpack.c.l.bf16 (!%p243_p11), %v826_v33  ;;  %v756_v38 = vunpack.c.l.bf16 (!%p243_p11), %v755_v34  ;;  %v761_v39 = vunpack.c.h.bf16 (!%p243_p11), %v826_v33  ;;  %v757_v40 = vunpack.c.h.bf16 (!%p243_p11), %v755_v34  ;;  %v828_v50 = vld [vmem:[%s1061_s23 + $0x18] sm:$0xff] (!%p243_p11)   ;;  %v829_v59 = vld [vmem:[%s1061_s23 + $0x20] sm:$0xff] (!%p243_p11)   ;;  %v830_v3 = vld [vmem:[%s1061_s23 + $0x28] sm:$0xff] (!%p243_p11)  }
  0x2e   : > { %v765_v44 = vunpack.c.h.bf16 (!%p243_p11), %v827_v41  ;;  %v764_v45 = vunpack.c.l.bf16 (!%p243_p11), %v827_v41  ;;  %v769_v57 = vunpack.c.h.bf16 (!%p243_p11), %v828_v50  ;;  %v768_v58 = vunpack.c.l.bf16 (!%p243_p11), %v828_v50  ;;  %v831_v11 = vld [vmem:[%s1061_s23 + $0x30] sm:$0xff] (!%p243_p11)  }
  0x2f   : > { %v773_v1 = vunpack.c.h.bf16 (!%p243_p11), %v829_v59  ;;  %v772_v2 = vunpack.c.l.bf16 (!%p243_p11), %v829_v59  ;;  %v777_v9 = vunpack.c.h.bf16 (!%p243_p11), %v830_v3  ;;  %v776_v10 = vunpack.c.l.bf16 (!%p243_p11), %v830_v3 }
  0x30   : > { %s1142_s6 = smov (!%p276_p12, %s712_s6), 31  ;;  %s753_s25 = sshll.u32 (%p1019_p6), %s941_s12, 5 }
  0x31   : > { %s713_s7 = sshll.u32 %s1142_s6, 3  ;;  %s515_s26 = sadd.s32 (%p1019_p6), %s937_s11, %s753_s25 }
  0x32   : > { %s279_s19 = scalar_lea.vmem %s1126_s1, %s713_s7  ;;  %s733_s20 = sshll.u32 (%p1019_p6), %s515_s26, 2 }
  0x33   : > { %v316_v17 = vld [vmem:[%s279_s19 + $0x10] sm:$0xff]  ;;  %v314_v18 = vld [vmem:[%s279_s19] sm:$0xff]  ;;  %v317_v19 = vld [vmem:[%s279_s19 + $0x18] sm:$0xff]  ;;  %s517_s29 = scalar_lea.vmem (%p1019_p6), %s1127_s2, %s733_s20 }
  0x34   : > { %342 = vperm.xlu1 %898, %v316_v17   ;;  %332 = vperm.xlu0 %897, %v314_v18   ;;  %v315_v20 = vld [vmem:[%s279_s19 + $0x8] sm:$0xff]  ;;  %v318_v22 = vld [vmem:[%s279_s19 + $0x20] sm:$0xff]  ;;  %v321_v23 = vld [vmem:[%s279_s19 + $0x38] sm:$0xff]  ;;  %v781_v17 = vunpack.c.h.bf16 %v831_v11  ;;  %v780_v18 = vunpack.c.l.bf16 %v831_v11 }
  0x35   : > { %v319_v21 = vld [vmem:[%s279_s19 + $0x28] sm:$0xff]  ;;  %v320_v24 = vld [vmem:[%s279_s19 + $0x30] sm:$0xff]  ;;  %v322_v26 = vld [vmem:[%s279_s19 + $0x40] sm:$0xff] }
  0x36   : > { %v323_v25 = vld [vmem:[%s279_s19 + $0x48] sm:$0xff]  ;;  %v325_v27 = vld [vmem:[%s279_s19 + $0x58] sm:$0xff]  ;;  %v324_v28 = vld [vmem:[%s279_s19 + $0x50] sm:$0xff] }
  0x37   : > { %v327_v29 = vld [vmem:[%s279_s19 + $0x68] sm:$0xff]  ;;  %v326_v30 = vld [vmem:[%s279_s19 + $0x60] sm:$0xff]  ;;  %v329_v31 = vld [vmem:[%s279_s19 + $0x78] sm:$0xff] }
  0x38   : > { %347 = vperm.xlu1 %898, %v317_v19   ;;  %337 = vperm.xlu0 %897, %v315_v20   ;;  %v328_v32 = vld [vmem:[%s279_s19 + $0x70] sm:$0xff]  ;;  %v832_v19 = vld [vmem:[%s1061_s23 + $0x38] sm:$0xff]  }
  0x3c   : > { %357 = vperm.xlu1 %898, %v319_v21   ;;  %352 = vperm.xlu0 %897, %v318_v22  }
  0x40   : > { %367 = vperm.xlu1 %898, %v321_v23   ;;  %362 = vperm.xlu0 %897, %v320_v24  }
  0x44   : > { %377 = vperm.xlu1 %898, %v323_v25   ;;  %372 = vperm.xlu0 %897, %v322_v26   ;;  %v785_v25 = vunpack.c.h.bf16 %v832_v19  ;;  %v784_v26 = vunpack.c.l.bf16 %v832_v19 }
  0x48   : > { %387 = vperm.xlu1 %898, %v325_v27   ;;  %382 = vperm.xlu0 %897, %v324_v28  }
  0x4c   : > { %397 = vperm.xlu1 %898, %v327_v29   ;;  %392 = vperm.xlu0 %897, %v326_v30  }
  0x50   : > { %407 = vperm.xlu1 %898, %v329_v31   ;;  %402 = vperm.xlu0 %897, %v328_v32  }
  0xb3   : > { %v343_v35 = vpop.permute.xlu1 %342  ;;  %v333_v36 = vpop.permute.xlu0 %332 }
  0xb4   : > { %v412_v46 = vsub.f32 %v760_v37, %v343_v35  ;;  %v410_v47 = vsub.f32 %v756_v38, %v333_v36 }
  0xb7   : > { %v348_v42 = vpop.permute.xlu1 %347  ;;  %v338_v43 = vpop.permute.xlu0 %337 }
  0xb8   : > { %v413_v48 = vsub.f32 %v761_v39, %v348_v42  ;;  %v411_v49 = vsub.f32 %v757_v40, %v338_v43 }
  0xba   : > { %v794_v51 = vpack.c.bf16 %v413_v48, %v412_v46  ;;  %v789_v52 = vpack.c.bf16 %v411_v49, %v410_v47 }
  0xbb   : > { %v358_v53 = vpop.permute.xlu1 %357  ;;  %v353_v54 = vpop.permute.xlu0 %352 }
  0xbc   : > { %833 = vst [vmem:[%s1067_s9 + $0x8] sm:$0xff] %v794_v51   ;;  %790 = vst [vmem:[%s1067_s9] sm:$0xff] %v789_v52   ;;  %v415_v55 = vsub.f32 %v765_v44, %v358_v53  ;;  %v414_v56 = vsub.f32 %v764_v45, %v353_v54 }
  0xbe   : > { %v799_v60 = vpack.c.bf16 %v415_v55, %v414_v56 }
  0xbf   : > { %v368_v61 = vpop.permute.xlu1 %367  ;;  %v363_v62 = vpop.permute.xlu0 %362 }
  0xc0   : > { %834 = vst [vmem:[%s1067_s9 + $0x10] sm:$0xff] %v799_v60   ;;  %v417_v63 = vsub.f32 %v769_v57, %v368_v61  ;;  %v416_v0 = vsub.f32 %v768_v58, %v363_v62 }
  0xc2   : > { %v804_v4 = vpack.c.bf16 %v417_v63, %v416_v0 }
  0xc3   : > { %v378_v5 = vpop.permute.xlu1 %377  ;;  %v373_v6 = vpop.permute.xlu0 %372  ;;  %v533_v33 = vld [vmem:[%s1067_s9] sm:$0xf] (%p1019_p6)  ;;  %v535_v34 = vld [vmem:[%s1067_s9 + $0x4] sm:$0xf] (%p1019_p6)  ;;  %v537_v35 = vld [vmem:[%s1067_s9 + $0x8] sm:$0xf] (%p1019_p6) }
  0xc4   : > { %835 = vst [vmem:[%s1067_s9 + $0x18] sm:$0xff] %v804_v4   ;;  %v419_v7 = vsub.f32 %v773_v1, %v378_v5  ;;  %v418_v8 = vsub.f32 %v772_v2, %v373_v6  ;;  %v539_v36 = vld [vmem:[%s1067_s9 + $0xc] sm:$0xf] (%p1019_p6)  ;;  %534 = vst [vmem:[%s517_s29] sm:$0xf] (%p1019_p6), %v533_v33 }
  0xc5   : > { %536 = vst [vmem:[%s517_s29 + $0x8] sm:$0xf] (%p1019_p6), %v535_v34  ;;  %538 = vst [vmem:[%s517_s29 + $0x10] sm:$0xf] (%p1019_p6), %v537_v35 }
  0xc6   : > { %v809_v12 = vpack.c.bf16 %v419_v7, %v418_v8  ;;  %540 = vst [vmem:[%s517_s29 + $0x18] sm:$0xf] (%p1019_p6), %v539_v36 }
  0xc7   : > { %v388_v13 = vpop.permute.xlu1 %387  ;;  %v383_v14 = vpop.permute.xlu0 %382  ;;  %v541_v37 = vld [vmem:[%s1067_s9 + $0x10] sm:$0xf] (%p1019_p6)  ;;  %v543_v38 = vld [vmem:[%s1067_s9 + $0x14] sm:$0xf] (%p1019_p6) }
  0xc8   : > { %836 = vst [vmem:[%s1067_s9 + $0x20] sm:$0xff] %v809_v12   ;;  %v421_v15 = vsub.f32 %v777_v9, %v388_v13  ;;  %v420_v16 = vsub.f32 %v776_v10, %v383_v14  ;;  %542 = vst [vmem:[%s517_s29 + $0x20] sm:$0xf] (%p1019_p6), %v541_v37 }
  0xc9   : > { %544 = vst [vmem:[%s517_s29 + $0x28] sm:$0xf] (%p1019_p6), %v543_v38 }
  0xca   : > { %v814_v20 = vpack.c.bf16 %v421_v15, %v420_v16 }
  0xcb   : > { %v398_v21 = vpop.permute.xlu1 %397  ;;  %v393_v22 = vpop.permute.xlu0 %392  ;;  %v545_v39 = vld [vmem:[%s1067_s9 + $0x18] sm:$0xf] (%p1019_p6)  ;;  %v547_v40 = vld [vmem:[%s1067_s9 + $0x1c] sm:$0xf] (%p1019_p6) }
  0xcc   : > { %837 = vst [vmem:[%s1067_s9 + $0x28] sm:$0xff] %v814_v20   ;;  %v423_v23 = vsub.f32 %v781_v17, %v398_v21  ;;  %v422_v24 = vsub.f32 %v780_v18, %v393_v22  ;;  %546 = vst [vmem:[%s517_s29 + $0x30] sm:$0xf] (%p1019_p6), %v545_v39 }
  0xcd   : > { %548 = vst [vmem:[%s517_s29 + $0x38] sm:$0xf] (%p1019_p6), %v547_v40 }
  0xce   : > { %v819_v27 = vpack.c.bf16 %v423_v23, %v422_v24  ;;  %512 = sbr.rel (!%p1019_p6) target bundleno = 221 (0xdd), region = 73 }
  0xcf   : > { %v408_v28 = vpop.permute.xlu1 %407  ;;  %v403_v29 = vpop.permute.xlu0 %402  ;;  %v549_v41 = vld [vmem:[%s1067_s9 + $0x20] sm:$0xf] (%p1019_p6)  ;;  %v551_v42 = vld [vmem:[%s1067_s9 + $0x24] sm:$0xf] (%p1019_p6) }
  0xd0   : > { %838 = vst [vmem:[%s1067_s9 + $0x30] sm:$0xff] %v819_v27   ;;  %v425_v30 = vsub.f32 %v785_v25, %v408_v28  ;;  %v424_v31 = vsub.f32 %v784_v26, %v403_v29  ;;  %550 = vst [vmem:[%s517_s29 + $0x40] sm:$0xf] (%p1019_p6), %v549_v41 }
  0xd1   : > { %552 = vst [vmem:[%s517_s29 + $0x48] sm:$0xf] (%p1019_p6), %v551_v42 }
  0xd2   : > { %v824_v32 = vpack.c.bf16 %v425_v30, %v424_v31 }
  0xd3   : > { %v553_v43 = vld [vmem:[%s1067_s9 + $0x28] sm:$0xf] (%p1019_p6)  ;;  %v555_v44 = vld [vmem:[%s1067_s9 + $0x2c] sm:$0xf] (%p1019_p6) }
  0xd4   : > { %839 = vst [vmem:[%s1067_s9 + $0x38] sm:$0xff] %v824_v32   ;;  %554 = vst [vmem:[%s517_s29 + $0x50] sm:$0xf] (%p1019_p6), %v553_v43 }
  0xd5   : > { %556 = vst [vmem:[%s517_s29 + $0x58] sm:$0xf] %v555_v44 }
  0xd7   : > { %v557_v45 = vld [vmem:[%s1067_s9 + $0x30] sm:$0xf]  ;;  %v559_v46 = vld [vmem:[%s1067_s9 + $0x34] sm:$0xf] }
  0xd8   : > { %558 = vst [vmem:[%s517_s29 + $0x60] sm:$0xf] %v557_v45  ;;  %560 = vst [vmem:[%s517_s29 + $0x68] sm:$0xf] %v559_v46 }
  0xdb   : > { %v561_v47 = vld [vmem:[%s1067_s9 + $0x38] sm:$0xf]  ;;  %v563_v48 = vld [vmem:[%s1067_s9 + $0x3c] sm:$0xf] }
  0xdc   : > { %562 = vst [vmem:[%s517_s29 + $0x70] sm:$0xf] %v561_v47  ;;  %564 = vst [vmem:[%s517_s29 + $0x78] sm:$0xf] %v563_v48 }
  0xdd PF: > { %s12_s15 = sadd.s32 1, %s953_s15   ;;  %s1129_s9 = smov %s933_s10 }
  0xde   : > { %p9_p13 = scmp.ge.s32.totalorder %s12_s15, 6   ;;  %s1130_s10 = smov %s1027_s24 }
  0xdf   : > { %s1131_s11 = smov %s945_s13  ;;  %s1132_s12 = smov %s949_s14 }
  0xe0   : > { %s1133_s13 = smov %s1136_s16  ;;  %s1134_s14 = smov %s1140_s17 }
  0xe1   :  { %11 = sbr.rel (!%p9_p13) target bundleno = 4 (0x4), region = 148 }

// kernel: vae_forward.4
= control target key start
LH: loop header
LB: loop body
LE: loop exit
PB: predicated region body
PF: predicated region fallthrough
CT: control target
= control target key end

     0   :  { %s2482_s0 = inlined_call_operand.vmem [shape: bf16[256,128], index: 0, kind: input, shape index: {}]   ;;  %s2483_s1 = inlined_call_operand.vmem [shape: bf16[128,256], index: 1, kind: input, shape index: {}]   ;;  %s2484_s2 = inlined_call_operand.vmem [shape: f32[1,256], index: 2, kind: input, shape index: {}]   ;;  %s2485_s3 = inlined_call_operand.vmem [shape: bf16[256,256], index: 3, kind: output, shape index: {0}]   ;;  %s2486_s4 = inlined_call_operand.vmem [shape: f32[256,1], index: 4, kind: output, shape index: {1}]  }
   0x1   :  { %2494 = sst [smem:[#allocation8_spill]] %s2483_s1 }
   0x2   :  { %s1884_s15 = smov 0   ;;  %s1886_s16 = smov 0  }
   0x3   :  { %s1888_s17 = smov 0   ;;  %s1890_s18 = smov 0  }
   0x4   :  { %s1892_s19 = smov 0   ;;  %s1894_s20 = smov 0  }
   0x5   :  { %s1896_s21 = smov 0   ;;  %s1898_s22 = smov 0  }
   0x6   :  { %s1900_s23 = smov 0  }
   0x7 LB: > { %s1413_s24 = sadd.s32 4294967295, %s1854_s23   ;;  %s24_s25 = sadd.s32 1, %s1846_s21  ;;  %s1854_s23 = sphi %s1900_s23, %s15_s23   ;;  %s1850_s22 = sphi %s1898_s22, %s2529_s22   ;;  %s1846_s21 = sphi %s1896_s21, %s2528_s21   ;;  %s1842_s20 = sphi %s1894_s20, %s2527_s20   ;;  %s1838_s19 = sphi %s1892_s19, %s2526_s19   ;;  %s1834_s18 = sphi %s1890_s18, %s2525_s18   ;;  %s1830_s17 = sphi %s1888_s17, %s2524_s17   ;;  %s1826_s16 = sphi %s1886_s16, %s2523_s16   ;;  %s1822_s15 = sphi %s1884_s15, %s2522_s15  }
   0x8   : > { %p25_p0 = scmp.ge.s32.totalorder %s24_s25, 2  ;;  %s27_s26 = sadd.s32 1, %s1850_s22 }
   0x9   : > { %s60_s27 = sadd.s32 1, %s1834_s18  ;;  %p67_p1 = scmp.ne.s32.totalorder %s1834_s18, %s1830_s17 }
   0xa   : > { %s2531_s25 = smov (%p25_p0, %s24_s25), 0  ;;  %s2533_s26 = smov (!%p25_p0, %s27_s26), %s1850_s22 }
   0xb   : > { %2495 = sst [smem:[#allocation6_spill]] %s2531_s25  ;;  %s57_s28 = ssub.s32 %s1846_s21, %s2531_s25 }
   0xc   : > { %p68_p2 = scmp.eq.s32.totalorder %s1854_s23, 0  ;;  %p29_p3 = scmp.ge.s32.totalorder %s2533_s26, 2 }
   0xd   : > { %p58_p4 = scmp.eq.s32.totalorder %s57_s28, 0  ;;  %s114_s29 = sadd.s32 1, %s1826_s16 }
   0xe   : > { %p69_p5 = por %p68_p2, %p67_p1  ;;  %s2535_s26 = smov (%p29_p3, %s2533_s26), 0 }
   0xf   : > { %2496 = sst [smem:[#allocation7_spill]] %s2535_s26  ;;  %s109_s5 = ssub.s32 %s1850_s22, %s2535_s26 }
  0x10   : > { %s1945_s30 = scalar_select %p58_p4, %s1834_s18, %s60_s27  }
  0x11   : > { %p124_p6 = scmp.ne.s32.totalorder %s1826_s16, %s1822_s15  ;;  %s111_s6 = sor.u32 %s109_s5, %s57_s28 }
  0x12   : > { %p125_p7 = scmp.eq.s32.totalorder %s1413_s24, 3  ;;  %p112_p8 = scmp.eq.s32.totalorder %s111_s6, 0 }
  0x13   : > { %p1416_p10 = scmp.ge.s32.totalorder %s1854_s23, 4 }
  0x14   : > { %p1951_p9 = por %p125_p7, %p124_p6 }
  0x15   : > { %s1956_s8 = scalar_select %p112_p8, %s1826_s16, %s114_s29  }
  0x16   : > { %173 = sbr.rel (%p1416_p10) target bundleno = 49 (0x31), region = 16 }
  0x1d   : > { %185 = sbr.rel (!%p69_p5) target bundleno = 49 (0x31), region = 24  ;;  %s187_s9 = sand.u32 (%p69_p5), 1, %s1834_s18  }
  0x1e   : > { %s1418_s10 = sshll.u32 (%p69_p5), %s1846_s21, 2  ;;  %s1417_s11 = sshll.u32 (%p69_p5), %s187_s9, 6 }
  0x1f   : > { %s2498_s1 = sld [smem:[#allocation8_spill]] (%p69_p5)  ;;  %s189_s24 = scalar_lea.vmem (%p69_p5), [#allocation4], %s1417_s11 }
  0x25   : > { %s1964_s14 = scalar_lea.vmem %s2498_s1, %s1418_s10 }
  0x26   : > { %v207_v0 = vld [vmem:[%s1964_s14] sm:$0xf]  ;;  %v209_v1 = vld [vmem:[%s1964_s14 + $0x8] sm:$0xf]  ;;  %v211_v2 = vld [vmem:[%s1964_s14 + $0x10] sm:$0xf] }
  0x27   : > { %208 = vst [vmem:[%s189_s24] sm:$0xf] %v207_v0  ;;  %210 = vst [vmem:[%s189_s24 + $0x4] sm:$0xf] %v209_v1  ;;  %v213_v3 = vld [vmem:[%s1964_s14 + $0x18] sm:$0xf] }
  0x28   : > { %v215_v4 = vld [vmem:[%s1964_s14 + $0x20] sm:$0xf]  ;;  %212 = vst [vmem:[%s189_s24 + $0x8] sm:$0xf] %v211_v2  ;;  %214 = vst [vmem:[%s189_s24 + $0xc] sm:$0xf] %v213_v3 }
  0x29   : > { %216 = vst [vmem:[%s189_s24 + $0x10] sm:$0xf] %v215_v4  ;;  %v217_v5 = vld [vmem:[%s1964_s14 + $0x28] sm:$0xf]  ;;  %v219_v6 = vld [vmem:[%s1964_s14 + $0x30] sm:$0xf] }
  0x2a   : > { %v221_v7 = vld [vmem:[%s1964_s14 + $0x38] sm:$0xf]  ;;  %218 = vst [vmem:[%s189_s24 + $0x14] sm:$0xf] %v217_v5  ;;  %220 = vst [vmem:[%s189_s24 + $0x18] sm:$0xf] %v219_v6 }
  0x2b   : > { %222 = vst [vmem:[%s189_s24 + $0x1c] sm:$0xf] %v221_v7  ;;  %v223_v8 = vld [vmem:[%s1964_s14 + $0x40] sm:$0xf]  ;;  %v225_v9 = vld [vmem:[%s1964_s14 + $0x48] sm:$0xf] }
  0x2c   : > { %v227_v10 = vld [vmem:[%s1964_s14 + $0x50] sm:$0xf]  ;;  %224 = vst [vmem:[%s189_s24 + $0x20] sm:$0xf] %v223_v8  ;;  %226 = vst [vmem:[%s189_s24 + $0x24] sm:$0xf] %v225_v9 }
  0x2d   : > { %228 = vst [vmem:[%s189_s24 + $0x28] sm:$0xf] %v227_v10  ;;  %v229_v11 = vld [vmem:[%s1964_s14 + $0x58] sm:$0xf]  ;;  %v231_v12 = vld [vmem:[%s1964_s14 + $0x60] sm:$0xf] }
  0x2e   : > { %v233_v13 = vld [vmem:[%s1964_s14 + $0x68] sm:$0xf]  ;;  %230 = vst [vmem:[%s189_s24 + $0x2c] sm:$0xf] %v229_v11  ;;  %232 = vst [vmem:[%s189_s24 + $0x30] sm:$0xf] %v231_v12 }
  0x2f   : > { %234 = vst [vmem:[%s189_s24 + $0x34] sm:$0xf] %v233_v13  ;;  %v235_v14 = vld [vmem:[%s1964_s14 + $0x70] sm:$0xf]  ;;  %v237_v15 = vld [vmem:[%s1964_s14 + $0x78] sm:$0xf] }
  0x30   : > { %236 = vst [vmem:[%s189_s24 + $0x38] sm:$0xf] %v235_v14  ;;  %238 = vst [vmem:[%s189_s24 + $0x3c] sm:$0xf] %v237_v15 }
  0x31 PF: > { %p1419_p11 = scmp.ge.s32.totalorder %s1854_s23, 1  ;;  %p298_p12 = scmp.lt.s32.totalorder %s1854_s23, 5 }
  0x33   : > { %p299_p13 = pnand %p1419_p11, %p298_p12 }
  0x34   : > { %s305_s27 = sand.u32 (!%p299_p13), 1, %s1830_s17   ;;  %s332_s28 = sand.u32 (!%p299_p13), 1, %s1822_s15  }
  0x35   : > { %302 = sbr.rel (%p299_p13) target bundleno = 841 (0x349), region = 69  ;;  %s1420_s29 = sshll.u32 (!%p299_p13), %s305_s27, 6 }
  0x36   : > { %s1421_s5 = sshll.u32 (!%p299_p13), %s332_s28, 6  ;;  %s1422_s6 = sshll.u32 (!%p299_p13), %s1842_s20, 4 }
  0x37   : > { %p348_p0 = scmp.lt.s32.totalorder (!%p299_p13), %s1838_s19, 1  ;;  %p343_p1 = scmp.lt.s32.totalorder (!%p299_p13), %s1422_s6, 31 }
  0x38   : > { %s2005_s26 = scalar_lea.vmem (!%p299_p13), [#allocation4], %s1420_s29  ;;  %s2007_s25 = scalar_lea.vmem (!%p299_p13), [#allocation5], %s1421_s5 }
  0x39   : > { %p1426_p2 = scmp.ne.s32.totalorder (!%p299_p13), %s1838_s19, 0 }
  0x3c   : > { %s1989_s9 = scalar_select %p348_p0, %s1838_s19, 1 }
  0x3d   : > { %s2537_s6 = smov (!%p343_p1, %s1422_s6), 31  ;;  %362 = sbr.rel (%p1426_p2) target bundleno = 79 (0x4f), region = 77 }
  0x3e   : > { %s350_s12 = scalar_lea.vmem %s2484_s2, %s1989_s9  ;;  %s1423_s13 = sshll.u32 %s2537_s6, 2  ;;  %vm363_vm0 = vcmask (!%p1426_p2), 7168   ;;  %v1856_v16 = vmov (!%p1426_p2), -inf   ;;  %v1857_v17 = vmov (!%p1426_p2), 0.0  }
  0x3f   : > { %s1425_s14 = sshll.u32 %s2537_s6, 3  ;;  %s1998_s17 = scalar_lea.vmem %s2482_s0, %s1423_s13  ;;  %364 = vst.msk [vmem:[#allocation2] sm:$0xff] (!%p1426_p2), %vm363_vm0, %v1856_v16  ;;  %365 = vst.msk [vmem:[#allocation2 + $0x8] sm:$0xff] (!%p1426_p2), %vm363_vm0, %v1856_v16 }
  0x40   : > { %s2003_s28 = scalar_lea.vmem %s2486_s4, %s1425_s14  ;;  %366 = vst.msk [vmem:[#allocation2 + $0x10] sm:$0xff] (!%p1426_p2), %vm363_vm0, %v1856_v16  ;;  %367 = vst.msk [vmem:[#allocation2 + $0x18] sm:$0xff] (!%p1426_p2), %vm363_vm0, %v1856_v16 }
  0x41   : > { %368 = vst.msk [vmem:[#allocation2 + $0x20] sm:$0xff] (!%p1426_p2), %vm363_vm0, %v1856_v16  ;;  %369 = vst.msk [vmem:[#allocation2 + $0x28] sm:$0xff] (!%p1426_p2), %vm363_vm0, %v1856_v16 }
  0x42   : > { %370 = vst.msk [vmem:[#allocation2 + $0x30] sm:$0xff] (!%p1426_p2), %vm363_vm0, %v1856_v16  ;;  %371 = vst.msk [vmem:[#allocation2 + $0x38] sm:$0xff] (!%p1426_p2), %vm363_vm0, %v1856_v16 }
  0x43   : > { %372 = vst.msk [vmem:[#allocation2 + $0x40] sm:$0xff] (!%p1426_p2), %vm363_vm0, %v1856_v16  ;;  %373 = vst.msk [vmem:[#allocation2 + $0x48] sm:$0xff] (!%p1426_p2), %vm363_vm0, %v1856_v16 }
  0x44   : > { %374 = vst.msk [vmem:[#allocation2 + $0x50] sm:$0xff] %vm363_vm0, %v1856_v16  ;;  %375 = vst.msk [vmem:[#allocation2 + $0x58] sm:$0xff] %vm363_vm0, %v1856_v16 }
  0x45   : > { %376 = vst.msk [vmem:[#allocation2 + $0x60] sm:$0xff] %vm363_vm0, %v1856_v16  ;;  %377 = vst.msk [vmem:[#allocation2 + $0x68] sm:$0xff] %vm363_vm0, %v1856_v16 }
  0x46   : > { %378 = vst.msk [vmem:[#allocation2 + $0x70] sm:$0xff] %vm363_vm0, %v1856_v16  ;;  %379 = vst.msk [vmem:[#allocation2 + $0x78] sm:$0xff] %vm363_vm0, %v1856_v16 }
  0x47   : > { %380 = vst.msk [vmem:[#allocation3] sm:$0xff] %vm363_vm0, %v1857_v17  ;;  %381 = vst.msk [vmem:[#allocation3 + $0x8] sm:$0xff] %vm363_vm0, %v1857_v17 }
  0x48   : > { %382 = vst.msk [vmem:[#allocation3 + $0x10] sm:$0xff] %vm363_vm0, %v1857_v17  ;;  %383 = vst.msk [vmem:[#allocation3 + $0x18] sm:$0xff] %vm363_vm0, %v1857_v17 }
  0x49   : > { %384 = vst.msk [vmem:[#allocation3 + $0x20] sm:$0xff] %vm363_vm0, %v1857_v17  ;;  %385 = vst.msk [vmem:[#allocation3 + $0x28] sm:$0xff] %vm363_vm0, %v1857_v17 }
  0x4a   : > { %386 = vst.msk [vmem:[#allocation3 + $0x30] sm:$0xff] %vm363_vm0, %v1857_v17  ;;  %387 = vst.msk [vmem:[#allocation3 + $0x38] sm:$0xff] %vm363_vm0, %v1857_v17 }
  0x4b   : > { %388 = vst.msk [vmem:[#allocation3 + $0x40] sm:$0xff] %vm363_vm0, %v1857_v17  ;;  %389 = vst.msk [vmem:[#allocation3 + $0x48] sm:$0xff] %vm363_vm0, %v1857_v17 }
  0x4c   : > { %390 = vst.msk [vmem:[#allocation3 + $0x50] sm:$0xff] %vm363_vm0, %v1857_v17  ;;  %391 = vst.msk [vmem:[#allocation3 + $0x58] sm:$0xff] %vm363_vm0, %v1857_v17 }
  0x4d   : > { %392 = vst.msk [vmem:[#allocation3 + $0x60] sm:$0xff] %vm363_vm0, %v1857_v17  ;;  %393 = vst.msk [vmem:[#allocation3 + $0x68] sm:$0xff] %vm363_vm0, %v1857_v17 }
  0x4e   : > { %394 = vst.msk [vmem:[#allocation3 + $0x70] sm:$0xff] %vm363_vm0, %v1857_v17  ;;  %395 = vst.msk [vmem:[#allocation3 + $0x78] sm:$0xff] %vm363_vm0, %v1857_v17 }
  0x4f PF: > { %v1672_v18 = vld [vmem:[%s2005_s26] sm:$0xff]   ;;  %v1673_v19 = vld [vmem:[%s2005_s26 + $0x8] sm:$0xff]   ;;  %v1674_v20 = vld [vmem:[%s2005_s26 + $0x10] sm:$0xff]   ;;  %vm1044_vm1 = vcmask 7168   ;;  %p1460_p3 = scmp.ne.s32.totalorder %s1838_s19, 1 }
  0x50   : > { %1547 = vmatprep.subr.bf16.mxu0 %v1672_v18  ;;  %1579 = vmatprep.subr.bf16.mxu1 %v1672_v18  ;;  %v1675_v21 = vld [vmem:[%s2005_s26 + $0x18] sm:$0xff]   ;;  %v1680_v22 = vld [vmem:[%s1998_s17] sm:$0xff]   ;;  %v1677_v25 = vld [vmem:[%s2005_s26 + $0x28] sm:$0xff]  }
  0x51   : > { %1548 = vmatpush3.bf16.msra.mxu0 %v1672_v18  ;;  %1587 = vmatpush3.bf16.msra.mxu1 %v1672_v18  ;;  %v1681_v23 = vld [vmem:[%s1998_s17 + $0x20] sm:$0xff]   ;;  %v1678_v26 = vld [vmem:[%s2005_s26 + $0x30] sm:$0xff]   ;;  %v1679_v27 = vld [vmem:[%s2005_s26 + $0x38] sm:$0xff]  }
  0x52   : > { %1549 = vmatprep.subr.bf16.mxu0 %v1673_v19  ;;  %1580 = vmatprep.subr.bf16.mxu1 %v1673_v19  ;;  %v1676_v24 = vld [vmem:[%s2005_s26 + $0x20] sm:$0xff]   ;;  %v1682_v28 = vld [vmem:[%s1998_s17 + $0x8] sm:$0xff]   ;;  %v1684_v30 = vld [vmem:[%s1998_s17 + $0x10] sm:$0xff]  }
  0x53   : > { %1563 = vmatprep.mubr.bf16.mxu0 %v1680_v22  ;;  %1571 = vmatprep.mubr.bf16.mxu1 %v1681_v23  ;;  %v1683_v29 = vld [vmem:[%s1998_s17 + $0x28] sm:$0xff]   ;;  %v1686_v31 = vld [vmem:[%s1998_s17 + $0x30] sm:$0xff]   ;;  %v1685_v32 = vld [vmem:[%s1998_s17 + $0x18] sm:$0xff]  }
  0x54   : > { %v1687_v33 = vld [vmem:[%s1998_s17 + $0x38] sm:$0xff]   ;;  %v1427_v35 = vld [vmem:[%s350_s12] ss:$0 sm:$0xff] }
  0x55   : > { %1550 = vmatpush3.bf16.msra.mxu0 %v1673_v19  ;;  %1588 = vmatpush3.bf16.msra.mxu1 %v1673_v19 }
  0x56   : > { %1551 = vmatprep.subr.bf16.mxu0 %v1674_v20  ;;  %1581 = vmatprep.subr.bf16.mxu1 %v1674_v20 }
  0x59   : > { %1552 = vmatpush3.bf16.msra.mxu0 %v1674_v20  ;;  %1589 = vmatpush3.bf16.msra.mxu1 %v1674_v20 }
  0x5a   : > { %1553 = vmatprep.subr.bf16.mxu0 %v1675_v21  ;;  %1582 = vmatprep.subr.bf16.mxu1 %v1675_v21 }
  0x5d   : > { %1554 = vmatpush3.bf16.msra.mxu0 %v1675_v21  ;;  %1590 = vmatpush3.bf16.msra.mxu1 %v1675_v21  ;;  %v1858_v21 = vmov 0  }
  0x5e   : > { %1555 = vmatprep.subr.bf16.mxu0 %v1676_v24  ;;  %1583 = vmatprep.subr.bf16.mxu1 %v1676_v24 }
  0x5f   : > { %1670 = vset.pattern.permute.xlu1 %v1858_v21  ;;  %1671 = vset.pattern.permute.xlu0 %v1858_v21  ;;  %v2233_v21 = vld [vmem:[#allocation2 + $0x20] sm:$0xff] }
  0x61   : > { %1556 = vmatpush3.bf16.msra.mxu0 %v1676_v24  ;;  %1591 = vmatpush3.bf16.msra.mxu1 %v1676_v24 }
  0x62   : > { %1557 = vmatprep.subr.bf16.mxu0 %v1677_v25  ;;  %1584 = vmatprep.subr.bf16.mxu1 %v1677_v25 }
  0x65   : > { %1558 = vmatpush3.bf16.msra.mxu0 %v1677_v25  ;;  %1592 = vmatpush3.bf16.msra.mxu1 %v1677_v25 }
  0x66   : > { %1559 = vmatprep.subr.bf16.mxu0 %v1678_v26  ;;  %1585 = vmatprep.subr.bf16.mxu1 %v1678_v26 }
  0x69   : > { %1560 = vmatpush3.bf16.msra.mxu0 %v1678_v26  ;;  %1593 = vmatpush3.bf16.msra.mxu1 %v1678_v26 }
  0x6a   : > { %1561 = vmatprep.subr.bf16.mxu0 %v1679_v27  ;;  %1586 = vmatprep.subr.bf16.mxu1 %v1679_v27 }
  0x6d   : > { %1562 = vmatpush3.bf16.msra.mxu0 %v1679_v27  ;;  %1594 = vmatpush3.bf16.msra.mxu1 %v1679_v27 }
  0x70   : > { %1564 = vmatmul.mubr.bf16.vlgmr.msra.gmra.mrb[0].mxu0 %v1682_v28  ;;  %1572 = vmatmul.mubr.bf16.vlgmr.msra.gmra.mrb[0].mxu1 %v1683_v29  ;;  %v2143_v28 = vld [vmem:[#allocation2 + $0x50] sm:$0xff] }
  0x71   : > { %1567 = vmatprep.mubr.bf16.mxu0 %v1684_v30  ;;  %1575 = vmatprep.mubr.bf16.mxu1 %v1686_v31  ;;  %v2145_v29 = vld [vmem:[#allocation2 + $0x10] sm:$0xff] }
  0x78   : > { %1568 = vmatmul.mubr.bf16.gmra.mrb[4].mxu0 %v1685_v32  ;;  %1576 = vmatmul.mubr.bf16.gmra.mrb[4].mxu1 %v1687_v33 }
 0x143   : > { %v1565_v34 = vpop.f32.mrb[0].mxu0  ;;  %v1573_v36 = vpop.f32.mrb[0].mxu1 }
 0x144   : > { %v606_v37 = vadd.f32 %v1573_v36, %v1427_v35  ;;  %v565_v38 = vpop.f32.mrb[1].mxu0  ;;  %v597_v39 = vpop.f32.mrb[1].mxu1  ;;  %v574_v43 = vadd.f32 %v1565_v34, %v1427_v35  ;;  %v2153_v34 = vld [vmem:[#allocation2 + $0x18] sm:$0xff] }
 0x145   : > { %v598_v40 = vadd.f32 %v1427_v35, %v597_v39  ;;  %v1566_v41 = vpop.f32.mrb[2].mxu0  ;;  %v1574_v42 = vpop.f32.mrb[2].mxu1  ;;  %v566_v48 = vadd.f32 %v1427_v35, %v565_v38 }
 0x146   : > { %v577_v44 = vadd.f32 %v1566_v41, %v1427_v35  ;;  %v609_v45 = vadd.f32 %v1574_v42, %v1427_v35  ;;  %v568_v46 = vpop.f32.mrb[3].mxu0  ;;  %v600_v47 = vpop.f32.mrb[3].mxu1  ;;  %v2172_v42 = vld [vmem:[#allocation2 + $0x58] sm:$0xff] }
 0x147   : > { %v569_v49 = vadd.f32 %v1427_v35, %v568_v46  ;;  %v601_v50 = vadd.f32 %v1427_v35, %v600_v47 }
 0x148   : > { %v2063_v51 = vpack.c.bf16 %v577_v44, %v574_v43  ;;  %v2065_v52 = vpack.c.bf16 %v609_v45, %v606_v37  ;;  %v2174_v43 = vld [vmem:[#allocation2 + $0x8] sm:$0xff] }
 0x149   : > { %v2067_v53 = vpack.c.bf16 %v569_v49, %v566_v48  ;;  %v2069_v54 = vpack.c.bf16 %v601_v50, %v598_v40  ;;  %v2191_v50 = vld [vmem:[#allocation2 + $0x48] sm:$0xff] }
 0x14a   : > { %1524 = vst [vmem:[%s2007_s25 + $0x8] sm:$0xff] %v2063_v51   ;;  %1528 = vst [vmem:[%s2007_s25 + $0x28] sm:$0xff] %v2065_v52   ;;  %v718_v55 = vunpack.c.l.bf16 %v2065_v52  ;;  %v710_v56 = vunpack.c.l.bf16 %v2063_v51  ;;  %v711_v3 = vunpack.c.h.bf16 %v2063_v51  ;;  %v719_v15 = vunpack.c.h.bf16 %v2065_v52 }
 0x14b   : > { %1488 = vst [vmem:[%s2007_s25] sm:$0xff] %v2067_v53   ;;  %1527 = vst [vmem:[%s2007_s25 + $0x20] sm:$0xff] %v2069_v54   ;;  %v1569_v57 = vpop.f32.mrb[4].mxu0  ;;  %v1577_v58 = vpop.f32.mrb[4].mxu1  ;;  %v708_v4 = vunpack.c.l.bf16 %v2067_v53  ;;  %v709_v16 = vunpack.c.h.bf16 %v2067_v53  ;;  %v717_v17 = vunpack.c.h.bf16 %v2069_v54  ;;  %v716_v18 = vunpack.c.l.bf16 %v2069_v54 }
 0x14c   : > { %760 = vmax.xlane.f32.xlu0 %v718_v55  ;;  %744 = vmax.xlane.f32.xlu1 %v710_v56  ;;  %v590_v59 = vadd.f32 %v1569_v57, %v1427_v35  ;;  %v581_v60 = vpop.f32.mrb[5].mxu0  ;;  %v622_v61 = vadd.f32 %v1577_v58, %v1427_v35  ;;  %v613_v62 = vpop.f32.mrb[5].mxu1  ;;  %v2193_v57 = vld [vmem:[#allocation2 + $0x40] sm:$0xff] }
 0x14d   : > { %v582_v63 = vadd.f32 %v1427_v35, %v581_v60  ;;  %v1570_v0 = vpop.f32.mrb[6].mxu0  ;;  %v614_v1 = vadd.f32 %v1427_v35, %v613_v62  ;;  %v1578_v2 = vpop.f32.mrb[6].mxu1 }
 0x14e   : > { %v593_v5 = vadd.f32 %v1570_v0, %v1427_v35  ;;  %v584_v6 = vpop.f32.mrb[7].mxu0  ;;  %v625_v7 = vadd.f32 %v1578_v2, %v1427_v35  ;;  %v616_v8 = vpop.f32.mrb[7].mxu1  ;;  %v2211_v0 = vld [vmem:[#allocation2 + $0x38] sm:$0xff]  ;;  %v2272_v2 = vld [vmem:[#allocation2 + $0x70] sm:$0xff] }
 0x14f   : > { %v585_v9 = vadd.f32 %v1427_v35, %v584_v6  ;;  %v617_v10 = vadd.f32 %v1427_v35, %v616_v8  ;;  %v2155_v35 = vld [vmem:[#allocation2] sm:$0xff] }
 0x150   : > { %746 = vmax.xlane.f32.xlu1 %v711_v3  ;;  %740 = vmax.xlane.f32.xlu0 %v708_v4  ;;  %v2091_v11 = vpack.c.bf16 %v593_v5, %v590_v59  ;;  %v2093_v12 = vpack.c.bf16 %v625_v7, %v622_v61 }
 0x151   : > { %v2095_v13 = vpack.c.bf16 %v585_v9, %v582_v63  ;;  %v2097_v14 = vpack.c.bf16 %v617_v10, %v614_v1  ;;  %v2213_v1 = vld [vmem:[#allocation2 + $0x30] sm:$0xff]  ;;  %v2231_v10 = vld [vmem:[#allocation2 + $0x28] sm:$0xff] }
 0x152   : > { %1526 = vst [vmem:[%s2007_s25 + $0x18] sm:$0xff] %v2091_v11   ;;  %1530 = vst [vmem:[%s2007_s25 + $0x38] sm:$0xff] %v2093_v12   ;;  %v715_v19 = vunpack.c.h.bf16 %v2091_v11  ;;  %v714_v20 = vunpack.c.l.bf16 %v2091_v11  ;;  %v2491_v24 = vunpack.c.h.bf16 %v2093_v12  ;;  %v2489_v27 = vunpack.c.l.bf16 %v2093_v12 }
 0x153   : > { %1525 = vst [vmem:[%s2007_s25 + $0x10] sm:$0xff] %v2095_v13   ;;  %1529 = vst [vmem:[%s2007_s25 + $0x30] sm:$0xff] %v2097_v14   ;;  %v2492_v22 = vunpack.c.h.bf16 %v2095_v13  ;;  %v712_v23 = vunpack.c.l.bf16 %v2095_v13  ;;  %v2490_v25 = vunpack.c.l.bf16 %v2097_v14  ;;  %v2493_v26 = vunpack.c.h.bf16 %v2097_v14 }
 0x154   : > { %762 = vmax.xlane.f32.xlu1 %v719_v15  ;;  %742 = vmax.xlane.f32.xlu0 %v709_v16 }
 0x158   : > { %758 = vmax.xlane.f32.xlu1 %v717_v17  ;;  %756 = vmax.xlane.f32.xlu0 %v716_v18 }
 0x15c   : > { %754 = vmax.xlane.f32.xlu1 %v715_v19  ;;  %752 = vmax.xlane.f32.xlu0 %v714_v20 }
 0x160   : > { %750 = vmax.xlane.f32.xlu1 %v2492_v22  ;;  %748 = vmax.xlane.f32.xlu0 %v712_v23 }
 0x164   : > { %770 = vmax.xlane.f32.xlu1 %v2491_v24  ;;  %764 = vmax.xlane.f32.xlu0 %v2490_v25 }
 0x168   : > { %766 = vmax.xlane.f32.xlu1 %v2493_v26  ;;  %768 = vmax.xlane.f32.xlu0 %v2489_v27 }
 0x1d9   : > { %v761_v30 = vpop.xlane.xlu0 %760  ;;  %v745_v31 = vpop.xlane.xlu1 %744 }
 0x1da   : > { %v2148_v32 = vmax.f32 %v2143_v28, %v761_v30  ;;  %v2151_v33 = vmax.f32 %v2145_v29, %v745_v31 }
 0x1dc   : > { %1071 = vst.msk [vmem:[#allocation2 + $0x50] sm:$0xff] %vm1044_vm1, %v2148_v32  ;;  %1063 = vst.msk [vmem:[#allocation2 + $0x10] sm:$0xff] %vm1044_vm1, %v2151_v33  ;;  %880 = vperm.xlu1 %1670, %v2151_v33  }
 0x1dd   : > { %v747_v38 = vpop.xlane.xlu1 %746  ;;  %v741_v39 = vpop.xlane.xlu0 %740 }
 0x1de   : > { %v2167_v40 = vmax.f32 %v2153_v34, %v747_v38  ;;  %v2170_v41 = vmax.f32 %v2155_v35, %v741_v39 }
 0x1e0   : > { %1064 = vst.msk [vmem:[#allocation2 + $0x18] sm:$0xff] %vm1044_vm1, %v2167_v40  ;;  %1061 = vst.msk [vmem:[#allocation2] sm:$0xff] %vm1044_vm1, %v2170_v41  ;;  %885 = vperm.xlu1 %1670, %v2167_v40  }
 0x1e1   : > { %v763_v46 = vpop.xlane.xlu1 %762  ;;  %v743_v47 = vpop.xlane.xlu0 %742 }
 0x1e2   : > { %v2186_v48 = vmax.f32 %v2172_v42, %v763_v46  ;;  %v2189_v49 = vmax.f32 %v2174_v43, %v743_v47 }
 0x1e4   : > { %1072 = vst.msk [vmem:[#allocation2 + $0x58] sm:$0xff] %vm1044_vm1, %v2186_v48  ;;  %1062 = vst.msk [vmem:[#allocation2 + $0x8] sm:$0xff] %vm1044_vm1, %v2189_v49  ;;  %920 = vperm.xlu1 %1670, %v2148_v32   ;;  %925 = vperm.xlu0 %1671, %v2186_v48  }
 0x1e5   : > { %v759_v60 = vpop.xlane.xlu1 %758  ;;  %v757_v61 = vpop.xlane.xlu0 %756 }
 0x1e6   : > { %v2206_v62 = vmax.f32 %v2191_v50, %v759_v60  ;;  %v2209_v63 = vmax.f32 %v2193_v57, %v757_v61  ;;  %v2251_v60 = vld [vmem:[#allocation2 + $0x78] sm:$0xff]  ;;  %v2253_v61 = vld [vmem:[#allocation2 + $0x60] sm:$0xff] }
 0x1e8   : > { %1070 = vst.msk [vmem:[#allocation2 + $0x48] sm:$0xff] %vm1044_vm1, %v2206_v62  ;;  %1069 = vst.msk [vmem:[#allocation2 + $0x40] sm:$0xff] %vm1044_vm1, %v2209_v63  ;;  %870 = vperm.xlu0 %1671, %v2170_v41   ;;  %875 = vperm.xlu1 %1670, %v2189_v49  }
 0x1e9   : > { %v755_v6 = vpop.xlane.xlu1 %754  ;;  %v753_v7 = vpop.xlane.xlu0 %752 }
 0x1ea   : > { %v2226_v8 = vmax.f32 %v2211_v0, %v755_v6  ;;  %v2229_v9 = vmax.f32 %v2213_v1, %v753_v7  ;;  %v2270_v6 = vld [vmem:[#allocation2 + $0x68] sm:$0xff] }
 0x1ec   : > { %1068 = vst.msk [vmem:[#allocation2 + $0x38] sm:$0xff] %vm1044_vm1, %v2226_v8  ;;  %1067 = vst.msk [vmem:[#allocation2 + $0x30] sm:$0xff] %vm1044_vm1, %v2229_v9  ;;  %915 = vperm.xlu0 %1671, %v2206_v62   ;;  %910 = vperm.xlu1 %1670, %v2209_v63  }
 0x1ed   : > { %v751_v38 = vpop.xlane.xlu1 %750  ;;  %v749_v39 = vpop.xlane.xlu0 %748 }
 0x1ee   : > { %v2246_v46 = vmax.f32 %v2231_v10, %v751_v38  ;;  %v2249_v47 = vmax.f32 %v2233_v21, %v749_v39 }
 0x1f0   : > { %1066 = vst.msk [vmem:[#allocation2 + $0x28] sm:$0xff] %vm1044_vm1, %v2246_v46  ;;  %1065 = vst.msk [vmem:[#allocation2 + $0x20] sm:$0xff] %vm1044_vm1, %v2249_v47  ;;  %900 = vperm.xlu1 %1670, %v2229_v9  }
 0x1f1   : > { %v771_v38 = vpop.xlane.xlu1 %770  ;;  %v765_v39 = vpop.xlane.xlu0 %764 }
 0x1f2   : > { %v2265_v30 = vmax.f32 %v2251_v60, %v771_v38  ;;  %v2268_v31 = vmax.f32 %v2253_v61, %v765_v39 }
 0x1f4   : > { %1076 = vst.msk [vmem:[#allocation2 + $0x78] sm:$0xff] %vm1044_vm1, %v2265_v30  ;;  %1073 = vst.msk [vmem:[#allocation2 + $0x60] sm:$0xff] %vm1044_vm1, %v2268_v31  ;;  %905 = vperm.xlu1 %1670, %v2226_v8  }
 0x1f5   : > { %v767_v38 = vpop.xlane.xlu1 %766  ;;  %v769_v39 = vpop.xlane.xlu0 %768 }
 0x1f6   : > { %v2284_v45 = vmax.f32 %v2270_v6, %v767_v38  ;;  %v2287_v59 = vmax.f32 %v2272_v2, %v769_v39 }
 0x1f8   : > { %1074 = vst.msk [vmem:[#allocation2 + $0x68] sm:$0xff] %vm1044_vm1, %v2284_v45  ;;  %1075 = vst.msk [vmem:[#allocation2 + $0x70] sm:$0xff] %vm1044_vm1, %v2287_v59  ;;  %935 = vperm.xlu0 %1671, %v2284_v45   ;;  %890 = vperm.xlu1 %1670, %v2249_v47  }
 0x1fc   : > { %945 = vperm.xlu0 %1671, %v2265_v30   ;;  %895 = vperm.xlu1 %1670, %v2246_v46  }
 0x200   : > { %930 = vperm.xlu1 %1670, %v2268_v31  }
 0x204   : > { %940 = vperm.xlu1 %1670, %v2287_v59  }
 0x25b   : > { %v881_v38 = vpop.permute.xlu1 %880 }
 0x25c   : > { %v950_v39 = vsub.f32 %v710_v56, %v881_v38 }
 0x25e   : > { %v968_v5 = vmul.f32 1.442695, %v950_v39 }
 0x25f   : > { %v886_v7 = vpop.permute.xlu1 %885 }
 0x260   : > { %1688 = vpow2.f32 %v968_v5  ;;  %v951_v58 = vsub.f32 %v711_v3, %v886_v7 }
 0x262   : > { %v970_v36 = vmul.f32 1.442695, %v951_v58 }
 0x263   : > { %v921_v44 = vpop.permute.xlu1 %920  ;;  %v926_v37 = vpop.permute.xlu0 %925 }
 0x264   : > { %1690 = vpow2.f32 %v970_v36  ;;  %v958_v27 = vsub.f32 %v718_v55, %v921_v44  ;;  %v959_v25 = vsub.f32 %v719_v15, %v926_v37 }
 0x266   : > { %v984_v24 = vmul.f32 1.442695, %v958_v27  ;;  %v986_v22 = vmul.f32 1.442695, %v959_v25 }
 0x267   : > { %v876_v26 = vpop.permute.xlu1 %875  ;;  %v871_v56 = vpop.permute.xlu0 %870 }
 0x268   : > { %1692 = vpow2.f32 %v984_v24  ;;  %v949_v5 = vsub.f32 %v709_v16, %v876_v26  ;;  %v948_v51 = vsub.f32 %v708_v4, %v871_v56 }
 0x269   : > { %1694 = vpow2.f32 %v986_v22 }
 0x26a   : > { %v1689_v3 = vpop.eup %1688  ;;  %v966_v36 = vmul.f32 1.442695, %v949_v5  ;;  %v964_v58 = vmul.f32 1.442695, %v948_v51 }
 0x26b   : > { %1000 = vadd.xlane.f32.xlu0 %v1689_v3  ;;  %v911_v55 = vpop.permute.xlu1 %910  ;;  %v916_v44 = vpop.permute.xlu0 %915  ;;  %v2499_v3 = vunpack.c.h.bf16 %v2097_v14 }
 0x26c   : > { %1696 = vpow2.f32 %v966_v36  ;;  %v956_v52 = vsub.f32 %v716_v18, %v911_v55  ;;  %v957_v15 = vsub.f32 %v717_v17, %v916_v44 }
 0x26d   : > { %1698 = vpow2.f32 %v964_v58 }
 0x26e   : > { %v1691_v24 = vpop.eup %1690  ;;  %v980_v16 = vmul.f32 1.442695, %v956_v52  ;;  %v982_v25 = vmul.f32 1.442695, %v957_v15 }
 0x26f   : > { %v901_v53 = vpop.permute.xlu1 %900  ;;  %1002 = vadd.xlane.f32.xlu1 %v1691_v24 }
 0x270   : > { %1700 = vpow2.f32 %v980_v16  ;;  %v954_v4 = vsub.f32 %v714_v20, %v901_v53 }
 0x271   : > { %1702 = vpow2.f32 %v982_v25  ;;  %v2502_v25 = vunpack.c.l.bf16 %v2097_v14 }
 0x272   : > { %v1693_v22 = vpop.eup %1692  ;;  %v976_v26 = vmul.f32 1.442695, %v954_v4 }
 0x273   : > { %v1695_v27 = vpop.eup %1694  ;;  %1016 = vadd.xlane.f32.xlu0 %v1693_v22  ;;  %v906_v37 = vpop.permute.xlu1 %905 }
 0x274   : > { %1704 = vpow2.f32 %v976_v26  ;;  %v955_v54 = vsub.f32 %v715_v19, %v906_v37  ;;  %1018 = vadd.xlane.f32.xlu1 %v1695_v27  ;;  %v2500_v19 = vunpack.c.h.bf16 %v2095_v13  ;;  %v2503_v27 = vunpack.c.l.bf16 %v2093_v12 }
 0x276   : > { %v1697_v17 = vpop.eup %1696  ;;  %v978_v18 = vmul.f32 1.442695, %v955_v54 }
 0x277   : > { %v1699_v7 = vpop.eup %1698  ;;  %998 = vadd.xlane.f32.xlu0 %v1697_v17  ;;  %v891_v38 = vpop.permute.xlu1 %890 }
 0x278   : > { %v936_v39 = vpop.permute.xlu0 %935  ;;  %1706 = vpow2.f32 %v978_v18  ;;  %v952_v20 = vsub.f32 %v712_v23, %v891_v38  ;;  %996 = vadd.xlane.f32.xlu1 %v1699_v7  ;;  %v2501_v23 = vunpack.c.h.bf16 %v2093_v12 }
 0x279   : > { %v961_v36 = vsub.f32 %v2499_v3, %v936_v39 }
 0x27a   : > { %v1701_v56 = vpop.eup %1700  ;;  %v972_v5 = vmul.f32 1.442695, %v952_v20  ;;  %v2504_v20 = vsub.f32 %v2145_v29, %v2151_v33  ;;  %v2509_v33 = vsub.f32 %v2155_v35, %v2170_v41  ;;  %v2512_v35 = vsub.f32 %v2213_v1, %v2229_v9 }
 0x27b   : > { %v1703_v51 = vpop.eup %1702  ;;  %1012 = vadd.xlane.f32.xlu0 %v1701_v56  ;;  %v896_v11 = vpop.permute.xlu1 %895  ;;  %v990_v15 = vmul.f32 1.442695, %v961_v36  ;;  %v2505_v56 = vsub.f32 %v2153_v34, %v2167_v40  ;;  %v2507_v36 = vsub.f32 %v2172_v42, %v2186_v48  ;;  %v790_v40 = vld [vmem:[#allocation3 + $0x10] sm:$0xff]  ;;  %v2511_v42 = vsub.f32 %v2191_v50, %v2206_v62  ;;  %v799_v62 = vld [vmem:[#allocation3 + $0x58] sm:$0xff] }
 0x27c   : > { %1708 = vpow2.f32 %v972_v5  ;;  %v953_v58 = vsub.f32 %v2500_v19, %v896_v11  ;;  %1014 = vadd.xlane.f32.xlu1 %v1703_v51  ;;  %v946_v55 = vpop.permute.xlu0 %945  ;;  %v824_v12 = vmul.f32 1.442695, %v2504_v20  ;;  %v2506_v51 = vsub.f32 %v2143_v28, %v2148_v32 }
 0x27d   : > { %v963_v24 = vsub.f32 %v2501_v23, %v946_v55  ;;  %v826_v5 = vmul.f32 1.442695, %v2505_v56  ;;  %v842_v11 = vmul.f32 1.442695, %v2507_v36  ;;  %v2508_v19 = vsub.f32 %v2174_v43, %v2189_v49  ;;  %v798_v23 = vld [vmem:[#allocation3 + $0x50] sm:$0xff]  ;;  %v797_v56 = vld [vmem:[#allocation3 + $0x48] sm:$0xff] }
 0x27e   : > { %v1705_v44 = vpop.eup %1704  ;;  %v974_v52 = vmul.f32 1.442695, %v953_v58  ;;  %v840_v3 = vmul.f32 1.442695, %v2506_v51  ;;  %v820_v58 = vmul.f32 1.442695, %v2509_v33  ;;  %v2510_v28 = vsub.f32 %v2193_v57, %v2209_v63 }
 0x27f   : > { %1008 = vadd.xlane.f32.xlu0 %v1705_v44  ;;  %v931_v16 = vpop.permute.xlu1 %930  ;;  %v994_v26 = vmul.f32 1.442695, %v963_v24  ;;  %v822_v29 = vmul.f32 1.442695, %v2508_v19  ;;  %v838_v48 = vmul.f32 1.442695, %v2511_v42 }
 0x280   : > { %1710 = vpow2.f32 %v974_v52  ;;  %v960_v53 = vsub.f32 %v2502_v25, %v931_v16  ;;  %v836_v32 = vmul.f32 1.442695, %v2510_v28  ;;  %v791_v44 = vld [vmem:[#allocation3 + $0x18] sm:$0xff]  ;;  %v832_v41 = vmul.f32 1.442695, %v2512_v35  ;;  %v794_v19 = vld [vmem:[#allocation3 + $0x30] sm:$0xff] }
 0x281   : > { %1712 = vpow2.f32 %v990_v15  ;;  %v2513_v16 = vsub.f32 %v2211_v0, %v2226_v8 }
 0x282   : > { %v1707_v4 = vpop.eup %1706  ;;  %v988_v22 = vmul.f32 1.442695, %v960_v53 }
 0x283   : > { %v941_v13 = vpop.permute.xlu1 %940  ;;  %1010 = vadd.xlane.f32.xlu1 %v1707_v4  ;;  %v834_v25 = vmul.f32 1.442695, %v2513_v16 }
 0x284   : > { %1714 = vpow2.f32 %v988_v22  ;;  %v962_v37 = vsub.f32 %v2503_v27, %v941_v13  ;;  %v789_v22 = vld [vmem:[#allocation3 + $0x8] sm:$0xff] }
 0x285   : > { %1716 = vpow2.f32 %v994_v26 }
 0x286   : > { %v1709_v54 = vpop.eup %1708  ;;  %v992_v17 = vmul.f32 1.442695, %v962_v37  ;;  %v788_v37 = vld [vmem:[#allocation3] sm:$0xff] }
 0x287   : > { %1004 = vadd.xlane.f32.xlu0 %v1709_v54  ;;  %v2514_v54 = vsub.f32 %v2233_v21, %v2249_v47 }
 0x288   : > { %1718 = vpow2.f32 %v992_v17 }
 0x289   : > { %1720 = vpow2.f32 %v824_v12  ;;  %v828_v17 = vmul.f32 1.442695, %v2514_v54 }
 0x28a   : > { %v1711_v18 = vpop.eup %1710  ;;  %1722 = vpow2.f32 %v826_v5  ;;  %v2515_v5 = vsub.f32 %v2231_v10, %v2246_v46  ;;  %v2517_v10 = vsub.f32 %v2270_v6, %v2284_v45  ;;  %v2519_v45 = vsub.f32 %v2272_v2, %v2287_v59 }
 0x28b   : > { %1006 = vadd.xlane.f32.xlu1 %v1711_v18  ;;  %v1713_v7 = vpop.eup %1712  ;;  %1724 = vpow2.f32 %v840_v3 }
 0x28c   : > { %1726 = vpow2.f32 %v842_v11  ;;  %v830_v51 = vmul.f32 1.442695, %v2515_v5  ;;  %v846_v46 = vmul.f32 1.442695, %v2517_v10  ;;  %v848_v6 = vmul.f32 1.442695, %v2519_v45 }
 0x28d   : > { %1728 = vpow2.f32 %v822_v29  ;;  %v2516_v29 = vsub.f32 %v2253_v61, %v2268_v31  ;;  %v2518_v31 = vsub.f32 %v2251_v60, %v2265_v30 }
 0x28e   : > { %v1715_v14 = vpop.eup %1714  ;;  %1730 = vpow2.f32 %v820_v58 }
 0x28f   : > { %1020 = vadd.xlane.f32.xlu0 %v1715_v14  ;;  %1022 = vadd.xlane.f32.xlu1 %v1713_v7  ;;  %v1717_v38 = vpop.eup %1716  ;;  %1732 = vpow2.f32 %v836_v32  ;;  %v844_v33 = vmul.f32 1.442695, %v2516_v29  ;;  %v850_v61 = vmul.f32 1.442695, %v2518_v31 }
 0x290   : > { %1734 = vpow2.f32 %v838_v48  ;;  %v795_v48 = vld [vmem:[#allocation3 + $0x38] sm:$0xff] }
 0x291   : > { %1736 = vpow2.f32 %v832_v41 }
 0x292   : > { %v1719_v39 = vpop.eup %1718  ;;  %1738 = vpow2.f32 %v834_v25 }
 0x293   : > { %1024 = vadd.xlane.f32.xlu0 %v1719_v39  ;;  %1026 = vadd.xlane.f32.xlu1 %v1717_v38  ;;  %v1721_v34 = vpop.eup %1720  ;;  %v796_v38 = vld [vmem:[#allocation3 + $0x40] sm:$0xff]  ;;  %1740 = vpow2.f32 %v828_v17 }
 0x294   : > { %v854_v55 = vmul.f32 %v1721_v34, %v790_v40  ;;  %v1723_v43 = vpop.eup %1722  ;;  %1742 = vpow2.f32 %v830_v51 }
 0x295   : > { %v855_v57 = vmul.f32 %v1723_v43, %v791_v44  ;;  %v1725_v63 = vpop.eup %1724  ;;  %1744 = vpow2.f32 %v844_v33 }
 0x296   : > { %v1727_v24 = vpop.eup %1726  ;;  %v862_v53 = vmul.f32 %v1725_v63, %v798_v23  ;;  %1746 = vpow2.f32 %v846_v46 }
 0x297   : > { %v1729_v1 = vpop.eup %1728  ;;  %v863_v9 = vmul.f32 %v1727_v24, %v799_v62  ;;  %1748 = vpow2.f32 %v850_v61  ;;  %v801_v24 = vld [vmem:[#allocation3 + $0x68] sm:$0xff]  ;;  %v1084_v61 = vld [vmem:[#allocation2 + $0x18] sm:$0xff] (!%p1460_p3) }
 0x298   : > { %v1731_v26 = vpop.eup %1730  ;;  %v853_v0 = vmul.f32 %v1729_v1, %v789_v22  ;;  %1750 = vpow2.f32 %v848_v6  ;;  %v803_v22 = vld [vmem:[#allocation3 + $0x78] sm:$0xff] }
 0x299   : > { %v1733_v8 = vpop.eup %1732  ;;  %v852_v7 = vmul.f32 %v1731_v26, %v788_v37  ;;  %v802_v26 = vld [vmem:[#allocation3 + $0x70] sm:$0xff] }
 0x29a   : > { %v1735_v39 = vpop.eup %1734  ;;  %v860_v47 = vmul.f32 %v1733_v8, %v796_v38 }
 0x29b   : > { %v1737_v3 = vpop.eup %1736  ;;  %v861_v36 = vmul.f32 %v1735_v39, %v797_v56 }
 0x29c   : > { %v858_v28 = vmul.f32 %v1737_v3, %v794_v19  ;;  %v1739_v32 = vpop.eup %1738  ;;  %v1081_v19 = vld [vmem:[#allocation2] sm:$0xff] (!%p1460_p3) }
 0x29d   : > { %v859_v43 = vmul.f32 %v1739_v32, %v795_v48 }
 0x2f8   : > { %v1001_v49 = vpop.xlane.xlu0 %1000 }
 0x2f9   : > { %v1030_v52 = vadd.f32 %v1001_v49, %v854_v55  ;;  %v1741_v49 = vpop.eup %1740 }
 0x2fa   : > { %v1743_v60 = vpop.eup %1742 }
 0x2fb   : > { %1047 = vst.msk [vmem:[#allocation3 + $0x10] sm:$0xff] %vm1044_vm1, %v1030_v52  ;;  %v792_v52 = vld [vmem:[#allocation3 + $0x20] sm:$0xff] }
 0x2fc   : > { %v1003_v15 = vpop.xlane.xlu1 %1002  ;;  %v856_v30 = vmul.f32 %v1741_v49, %v792_v52 }
 0x2fd   : > { %v1031_v50 = vadd.f32 %v1003_v15, %v855_v57  ;;  %v793_v57 = vld [vmem:[#allocation3 + $0x28] sm:$0xff]  ;;  %v1745_v15 = vpop.eup %1744 }
 0x2fe   : > { %v857_v59 = vmul.f32 %v1743_v60, %v793_v57  ;;  %v1747_v2 = vpop.eup %1746  ;;  %v1087_v57 = vld [vmem:[#allocation2 + $0x30] sm:$0xff] (!%p1460_p3) }
 0x2ff   : > { %1048 = vst.msk [vmem:[#allocation3 + $0x18] sm:$0xff] %vm1044_vm1, %v1031_v50  ;;  %v800_v50 = vld [vmem:[#allocation3 + $0x60] sm:$0xff]  ;;  %v1749_v16 = vpop.eup %1748  ;;  %v865_v25 = vmul.f32 %v1747_v2, %v801_v24  ;;  %v1088_v2 = vld [vmem:[#allocation2 + $0x38] sm:$0xff] (!%p1460_p3) }
 0x300   : > { %v1017_v4 = vpop.xlane.xlu0 %1016  ;;  %v1751_v1 = vpop.eup %1750  ;;  %v867_v37 = vmul.f32 %v1749_v16, %v803_v22 }
 0x301   : > { %v1019_v13 = vpop.xlane.xlu1 %1018  ;;  %v1038_v27 = vadd.f32 %v1017_v4, %v862_v53  ;;  %v864_v53 = vmul.f32 %v1745_v15, %v800_v50  ;;  %v866_v54 = vmul.f32 %v1751_v1, %v802_v26  ;;  %v1090_v1 = vld [vmem:[#allocation2 + $0x48] sm:$0xff] (!%p1460_p3)  ;;  %v1091_v26 = vld [vmem:[#allocation2 + $0x50] sm:$0xff] (!%p1460_p3) }
 0x302   : > { %v1039_v18 = vadd.f32 %v1019_v13, %v863_v9  ;;  %v1099_v38 = vld [vmem:[#allocation3 + $0x10] sm:$0xff] (!%p1460_p3) }
 0x303   : > { %1055 = vst.msk [vmem:[#allocation3 + $0x50] sm:$0xff] %vm1044_vm1, %v1038_v27 }
 0x304   : > { %1056 = vst.msk [vmem:[#allocation3 + $0x58] sm:$0xff] %vm1044_vm1, %v1039_v18  ;;  %v999_v14 = vpop.xlane.xlu0 %998 }
 0x305   : > { %v997_v20 = vpop.xlane.xlu1 %996  ;;  %v1029_v12 = vadd.f32 %v999_v14, %v853_v0 }
 0x306   : > { %v1028_v21 = vadd.f32 %v997_v20, %v852_v7  ;;  %v1100_v39 = vld [vmem:[#allocation3 + $0x18] sm:$0xff] (!%p1460_p3) }
 0x307   : > { %1046 = vst.msk [vmem:[#allocation3 + $0x8] sm:$0xff] %vm1044_vm1, %v1029_v12 }
 0x308   : > { %1045 = vst.msk [vmem:[#allocation3] sm:$0xff] %vm1044_vm1, %v1028_v21  ;;  %v1013_v11 = vpop.xlane.xlu0 %1012 }
 0x309   : > { %v1015_v58 = vpop.xlane.xlu1 %1014  ;;  %v1036_v34 = vadd.f32 %v1013_v11, %v860_v47 }
 0x30a   : > { %v1037_v40 = vadd.f32 %v1015_v58, %v861_v36  ;;  %v1107_v47 = vld [vmem:[#allocation3 + $0x50] sm:$0xff] (!%p1460_p3) }
 0x30b   : > { %1053 = vst.msk [vmem:[#allocation3 + $0x40] sm:$0xff] %vm1044_vm1, %v1036_v34  ;;  %v1108_v3 = vld [vmem:[#allocation3 + $0x58] sm:$0xff] (!%p1460_p3)  ;;  %v1082_v34 = vld [vmem:[#allocation2 + $0x8] sm:$0xff] (!%p1460_p3) }
 0x30c   : > { %1054 = vst.msk [vmem:[#allocation3 + $0x48] sm:$0xff] %vm1044_vm1, %v1037_v40  ;;  %v1009_v42 = vpop.xlane.xlu0 %1008 }
 0x30d   : > { %v1034_v55 = vadd.f32 %v1009_v42, %v858_v28  ;;  %v1083_v28 = vld [vmem:[#allocation2 + $0x10] sm:$0xff] (!%p1460_p3) }
 0x30e   : > { %v1098_v14 = vld [vmem:[#allocation3 + $0x8] sm:$0xff] (!%p1460_p3) }
 0x30f   : > { %1051 = vst.msk [vmem:[#allocation3 + $0x30] sm:$0xff] %vm1044_vm1, %v1034_v55  ;;  %v1097_v7 = vld [vmem:[#allocation3] sm:$0xff] (!%p1460_p3) }
 0x310   : > { %v1011_v44 = vpop.xlane.xlu1 %1010  ;;  %1752 = vlog2.f32 (!%p1460_p3), %v1097_v7 }
 0x311   : > { %v1035_v35 = vadd.f32 %v1011_v44, %v859_v43  ;;  %1754 = vlog2.f32 (!%p1460_p3), %v1098_v14  ;;  %v1085_v43 = vld [vmem:[#allocation2 + $0x20] sm:$0xff] (!%p1460_p3) }
 0x312   : > { %1756 = vlog2.f32 (!%p1460_p3), %v1099_v38  ;;  %v1105_v51 = vld [vmem:[#allocation3 + $0x40] sm:$0xff] (!%p1460_p3) }
 0x313   : > { %1052 = vst.msk [vmem:[#allocation3 + $0x38] sm:$0xff] %vm1044_vm1, %v1035_v35  ;;  %1758 = vlog2.f32 (!%p1460_p3), %v1100_v39  ;;  %v1106_v21 = vld [vmem:[#allocation3 + $0x48] sm:$0xff] (!%p1460_p3) }
 0x314   : > { %v1005_v41 = vpop.xlane.xlu0 %1004  ;;  %v1086_v35 = vld [vmem:[#allocation2 + $0x28] sm:$0xff] (!%p1460_p3) }
 0x315   : > { %v1032_v63 = vadd.f32 %v1005_v41, %v856_v30  ;;  %v1094_v39 = vld [vmem:[#allocation2 + $0x68] sm:$0xff] (!%p1460_p3) }
 0x316   : > { %v1103_v56 = vld [vmem:[#allocation3 + $0x30] sm:$0xff] (!%p1460_p3) }
 0x317   : > { %1049 = vst.msk [vmem:[#allocation3 + $0x20] sm:$0xff] %vm1044_vm1, %v1032_v63 }
 0x318   : > { %v1007_v23 = vpop.xlane.xlu1 %1006 }
 0x319   : > { %v1033_v62 = vadd.f32 %v1007_v23, %v857_v59 }
 0x31a   : > { %v1104_v5 = vld [vmem:[#allocation3 + $0x38] sm:$0xff] (!%p1460_p3)  ;;  %v1753_v11 = vpop.eup (!%p1460_p3), %1752 }
 0x31b   : > { %1050 = vst.msk [vmem:[#allocation3 + $0x28] sm:$0xff] %vm1044_vm1, %v1033_v62  ;;  %v1755_v33 = vpop.eup (!%p1460_p3), %1754  ;;  %v1114_v58 = vmul.f32 (!%p1460_p3), 0.6931472, %v1753_v11  ;;  %v1089_v62 = vld [vmem:[#allocation2 + $0x40] sm:$0xff] (!%p1460_p3) }
 0x31c   : > { %v1023_v9 = vpop.xlane.xlu1 %1022  ;;  %v1021_v4 = vpop.xlane.xlu0 %1020  ;;  %v1116_v40 = vmul.f32 (!%p1460_p3), 0.6931472, %v1755_v33 }
 0x31d   : > { %v1041_v13 = vadd.f32 %v1023_v9, %v865_v25  ;;  %v1040_v27 = vadd.f32 %v1021_v4, %v864_v53  ;;  %1080 = sbr.rel (%p1460_p3) target bundleno = 829 (0x33d), region = 81  ;;  %v1757_v46 = vpop.eup (!%p1460_p3), %1756  ;;  %v1145_v48 = vadd.f32 (!%p1460_p3), %v1114_v58, %v1081_v19 }
 0x31e   : > { %v1101_v20 = vld [vmem:[#allocation3 + $0x20] sm:$0xff] (!%p1460_p3)  ;;  %v1759_v42 = vpop.eup (!%p1460_p3), %1758  ;;  %v1118_v31 = vmul.f32 (!%p1460_p3), 0.6931472, %v1757_v46  ;;  %v1146_v45 = vadd.f32 (!%p1460_p3), %v1116_v40, %v1082_v34 }
 0x31f   : > { %1058 = vst.msk [vmem:[#allocation3 + $0x68] sm:$0xff] %vm1044_vm1, %v1041_v13  ;;  %1057 = vst.msk [vmem:[#allocation3 + $0x60] sm:$0xff] %vm1044_vm1, %v1040_v27  ;;  %1760 = vlog2.f32 (!%p1460_p3), %v1101_v20  ;;  %v1120_v6 = vmul.f32 (!%p1460_p3), 0.6931472, %v1759_v42 }
 0x320   : > { %v1027_v17 = vpop.xlane.xlu1 %1026  ;;  %v1025_v18 = vpop.xlane.xlu0 %1024  ;;  %1161 = vst.msk [vmem:[%s2003_s28] sm:$0xff] (!%p1460_p3), %vm1044_vm1, %v1145_v48  ;;  %v1147_v44 = vadd.f32 (!%p1460_p3), %v1118_v31, %v1083_v28  ;;  %1162 = vst.msk [vmem:[%s2003_s28 + $0x8] sm:$0xff] (!%p1460_p3), %vm1044_vm1, %v1146_v45 }
 0x321   : > { %v1043_v0 = vadd.f32 %v1027_v17, %v867_v37  ;;  %v1042_v8 = vadd.f32 %v1025_v18, %v866_v54  ;;  %v1148_v60 = vadd.f32 (!%p1460_p3), %v1120_v6, %v1084_v61  ;;  %v1092_v54 = vld [vmem:[#allocation2 + $0x58] sm:$0xff] (!%p1460_p3) }
 0x322   : > { %v1102_v12 = vld [vmem:[#allocation3 + $0x28] sm:$0xff] (!%p1460_p3)  ;;  %1163 = vst.msk [vmem:[%s2003_s28 + $0x10] sm:$0xff] (!%p1460_p3), %vm1044_vm1, %v1147_v44 }
 0x323   : > { %1060 = vst.msk [vmem:[#allocation3 + $0x78] sm:$0xff] %vm1044_vm1, %v1043_v0  ;;  %1059 = vst.msk [vmem:[#allocation3 + $0x70] sm:$0xff] %vm1044_vm1, %v1042_v8  ;;  %1762 = vlog2.f32 (!%p1460_p3), %v1102_v12  ;;  %v1093_v8 = vld [vmem:[#allocation2 + $0x60] sm:$0xff] (!%p1460_p3) }
 0x324   : > { %1764 = vlog2.f32 %v1103_v56  ;;  %1164 = vst.msk [vmem:[%s2003_s28 + $0x18] sm:$0xff] %vm1044_vm1, %v1148_v60 }
 0x325   : > { %1766 = vlog2.f32 %v1104_v5  ;;  %v1095_v5 = vld [vmem:[#allocation2 + $0x70] sm:$0xff] }
 0x326   : > { %1768 = vlog2.f32 %v1105_v51  ;;  %v1109_v36 = vld [vmem:[#allocation3 + $0x60] sm:$0xff]  ;;  %v1110_v29 = vld [vmem:[#allocation3 + $0x68] sm:$0xff] }
 0x327   : > { %1770 = vlog2.f32 %v1106_v21 }
 0x328   : > { %1772 = vlog2.f32 %v1107_v47 }
 0x329   : > { %1774 = vlog2.f32 %v1108_v3  ;;  %v1761_v55 = vpop.eup %1760  ;;  %v1096_v3 = vld [vmem:[#allocation2 + $0x78] sm:$0xff] }
 0x32a   : > { %v1111_v10 = vld [vmem:[#allocation3 + $0x70] sm:$0xff]  ;;  %1776 = vlog2.f32 %v1109_v36  ;;  %v1112_v32 = vld [vmem:[#allocation3 + $0x78] sm:$0xff]  ;;  %v1122_v52 = vmul.f32 0.6931472, %v1761_v55 }
 0x32b   : > { %1778 = vlog2.f32 %v1110_v29 }
 0x32c   : > { %1780 = vlog2.f32 %v1111_v10  ;;  %v1149_v15 = vadd.f32 %v1122_v52, %v1085_v43 }
 0x32d   : > { %v1763_v49 = vpop.eup %1762  ;;  %1782 = vlog2.f32 %v1112_v32 }
 0x32e   : > { %v1765_v30 = vpop.eup %1764  ;;  %v1124_v41 = vmul.f32 0.6931472, %v1763_v49  ;;  %1165 = vst.msk [vmem:[%s2003_s28 + $0x20] sm:$0xff] %vm1044_vm1, %v1149_v15 }
 0x32f   : > { %v1767_v63 = vpop.eup %1766  ;;  %v1126_v59 = vmul.f32 0.6931472, %v1765_v30 }
 0x330   : > { %v1769_v23 = vpop.eup %1768  ;;  %v1150_v24 = vadd.f32 %v1124_v41, %v1086_v35  ;;  %v1128_v50 = vmul.f32 0.6931472, %v1767_v63 }
 0x331   : > { %v1771_v16 = vpop.eup %1770  ;;  %v1151_v25 = vadd.f32 %v1126_v59, %v1087_v57  ;;  %v1130_v53 = vmul.f32 0.6931472, %v1769_v23 }
 0x332   : > { %v1773_v9 = vpop.eup %1772  ;;  %1166 = vst.msk [vmem:[%s2003_s28 + $0x28] sm:$0xff] %vm1044_vm1, %v1150_v24  ;;  %v1152_v4 = vadd.f32 %v1128_v50, %v1088_v2  ;;  %v1132_v22 = vmul.f32 0.6931472, %v1771_v16 }
 0x333   : > { %v1775_v13 = vpop.eup %1774  ;;  %1167 = vst.msk [vmem:[%s2003_s28 + $0x30] sm:$0xff] %vm1044_vm1, %v1151_v25  ;;  %v1153_v27 = vadd.f32 %v1130_v53, %v1089_v62  ;;  %v1134_v37 = vmul.f32 0.6931472, %v1773_v9 }
 0x334   : > { %v1777_v17 = vpop.eup %1776  ;;  %1168 = vst.msk [vmem:[%s2003_s28 + $0x38] sm:$0xff] %vm1044_vm1, %v1152_v4  ;;  %v1154_v18 = vadd.f32 %v1132_v22, %v1090_v1  ;;  %v1136_v0 = vmul.f32 0.6931472, %v1775_v13 }
 0x335   : > { %v1779_v7 = vpop.eup %1778  ;;  %1169 = vst.msk [vmem:[%s2003_s28 + $0x40] sm:$0xff] %vm1044_vm1, %v1153_v27  ;;  %v1155_v14 = vadd.f32 %v1134_v37, %v1091_v26  ;;  %v1138_v38 = vmul.f32 0.6931472, %v1777_v17 }
 0x336   : > { %v1781_v20 = vpop.eup %1780  ;;  %1170 = vst.msk [vmem:[%s2003_s28 + $0x48] sm:$0xff] %vm1044_vm1, %v1154_v18  ;;  %v1156_v12 = vadd.f32 %v1136_v0, %v1092_v54  ;;  %v1140_v56 = vmul.f32 0.6931472, %v1779_v7 }
 0x337   : > { %v1783_v51 = vpop.eup %1782  ;;  %1171 = vst.msk [vmem:[%s2003_s28 + $0x50] sm:$0xff] %vm1044_vm1, %v1155_v14  ;;  %v1157_v21 = vadd.f32 %v1138_v38, %v1093_v8  ;;  %v1142_v47 = vmul.f32 0.6931472, %v1781_v20 }
 0x338   : > { %1172 = vst.msk [vmem:[%s2003_s28 + $0x58] sm:$0xff] %vm1044_vm1, %v1156_v12  ;;  %v1158_v36 = vadd.f32 %v1140_v56, %v1094_v39  ;;  %v1144_v11 = vmul.f32 0.6931472, %v1783_v51 }
 0x339   : > { %1173 = vst.msk [vmem:[%s2003_s28 + $0x60] sm:$0xff] %vm1044_vm1, %v1157_v21  ;;  %v1159_v19 = vadd.f32 %v1142_v47, %v1095_v5 }
 0x33a   : > { %1174 = vst.msk [vmem:[%s2003_s28 + $0x68] sm:$0xff] %vm1044_vm1, %v1158_v36  ;;  %v1160_v29 = vadd.f32 %v1144_v11, %v1096_v3 }
 0x33b   : > { %1175 = vst.msk [vmem:[%s2003_s28 + $0x70] sm:$0xff] %vm1044_vm1, %v1159_v19 }
 0x33c   : > { %1176 = vst.msk [vmem:[%s2003_s28 + $0x78] sm:$0xff] %vm1044_vm1, %v1160_v29 }
 0x33d PF: > { %1188 = sbr.rel (!%p1951_p9) target bundleno = 841 (0x349), region = 85  ;;  %s1483_s29 = sshll.u32 (%p1951_p9), %s1842_s20, 5  ;;  %v1209_v33 = vld [vmem:[%s2007_s25] sm:$0xf] (%p1951_p9)  ;;  %v1211_v58 = vld [vmem:[%s2007_s25 + $0x4] sm:$0xf] (%p1951_p9) }
 0x33e   : > { %s1191_s5 = sadd.s32 (%p1951_p9), %s1838_s19, %s1483_s29  ;;  %v1213_v34 = vld [vmem:[%s2007_s25 + $0x8] sm:$0xf] (%p1951_p9)  ;;  %v1215_v10 = vld [vmem:[%s2007_s25 + $0xc] sm:$0xf] (%p1951_p9)  ;;  %v1217_v46 = vld [vmem:[%s2007_s25 + $0x10] sm:$0xf] (%p1951_p9) }
 0x33f   : > { %s1464_s7 = sshll.u32 (%p1951_p9), %s1191_s5, 2  ;;  %v1219_v40 = vld [vmem:[%s2007_s25 + $0x14] sm:$0xf] (%p1951_p9)  ;;  %v1221_v28 = vld [vmem:[%s2007_s25 + $0x18] sm:$0xf] (%p1951_p9) }
 0x340   : > { %s1193_s10 = scalar_lea.vmem (%p1951_p9), %s2485_s3, %s1464_s7  ;;  %v1223_v32 = vld [vmem:[%s2007_s25 + $0x1c] sm:$0xf] (%p1951_p9)  ;;  %v1225_v42 = vld [vmem:[%s2007_s25 + $0x20] sm:$0xf] (%p1951_p9)  ;;  %v1227_v48 = vld [vmem:[%s2007_s25 + $0x24] sm:$0xf] (%p1951_p9) }
 0x341   : > { %1210 = vst [vmem:[%s1193_s10] sm:$0xf] (%p1951_p9), %v1209_v33  ;;  %1212 = vst [vmem:[%s1193_s10 + $0x8] sm:$0xf] (%p1951_p9), %v1211_v58  ;;  %v1229_v31 = vld [vmem:[%s2007_s25 + $0x28] sm:$0xf] (%p1951_p9) }
 0x342   : > { %1214 = vst [vmem:[%s1193_s10 + $0x10] sm:$0xf] (%p1951_p9), %v1213_v34  ;;  %1216 = vst [vmem:[%s1193_s10 + $0x18] sm:$0xf] (%p1951_p9), %v1215_v10  ;;  %v1231_v61 = vld [vmem:[%s2007_s25 + $0x2c] sm:$0xf] (%p1951_p9) }
 0x343   : > { %1218 = vst [vmem:[%s1193_s10 + $0x20] sm:$0xf] (%p1951_p9), %v1217_v46  ;;  %1220 = vst [vmem:[%s1193_s10 + $0x28] sm:$0xf] (%p1951_p9), %v1219_v40  ;;  %v1233_v55 = vld [vmem:[%s2007_s25 + $0x30] sm:$0xf] (%p1951_p9) }
 0x344   : > { %1222 = vst [vmem:[%s1193_s10 + $0x30] sm:$0xf] %v1221_v28  ;;  %1224 = vst [vmem:[%s1193_s10 + $0x38] sm:$0xf] %v1223_v32  ;;  %v1235_v45 = vld [vmem:[%s2007_s25 + $0x34] sm:$0xf] }
 0x345   : > { %1226 = vst [vmem:[%s1193_s10 + $0x40] sm:$0xf] %v1225_v42  ;;  %1228 = vst [vmem:[%s1193_s10 + $0x48] sm:$0xf] %v1227_v48  ;;  %v1237_v6 = vld [vmem:[%s2007_s25 + $0x38] sm:$0xf] }
 0x346   : > { %1230 = vst [vmem:[%s1193_s10 + $0x50] sm:$0xf] %v1229_v31  ;;  %1232 = vst [vmem:[%s1193_s10 + $0x58] sm:$0xf] %v1231_v61  ;;  %v1239_v43 = vld [vmem:[%s2007_s25 + $0x3c] sm:$0xf] }
 0x347   : > { %1234 = vst [vmem:[%s1193_s10 + $0x60] sm:$0xf] %v1233_v55  ;;  %1236 = vst [vmem:[%s1193_s10 + $0x68] sm:$0xf] %v1235_v45 }
 0x348   : > { %1238 = vst [vmem:[%s1193_s10 + $0x70] sm:$0xf] %v1237_v6  ;;  %1240 = vst [vmem:[%s1193_s10 + $0x78] sm:$0xf] %v1239_v43 }
 0x349 PF: > { %s15_s23 = sadd.s32 1, %s1854_s23   ;;  %s2520_s11 = sld [smem:[#allocation6_spill]] }
 0x34a   : > { %p12_p4 = scmp.ge.s32.totalorder %s15_s23, 6   ;;  %s2521_s12 = sld [smem:[#allocation7_spill]] }
 0x34b   : > { %s2522_s15 = smov %s1826_s16  ;;  %s2523_s16 = smov %s1956_s8 }
 0x34c   : > { %s2524_s17 = smov %s1834_s18  ;;  %s2525_s18 = smov %s1945_s30 }
 0x34d   : > { %s2526_s19 = smov %s1846_s21  ;;  %s2527_s20 = smov %s1850_s22 }
 0x34e   :  { %14 = sbr.rel (!%p12_p4) target bundleno = 7 (0x7), region = 175 }
 0x34f   : > { %s2528_s21 = smov %s2520_s11 }
 0x350   : > { %s2529_s22 = smov %s2521_s12 }

// kernel: vae_forward.3
= control target key start
LH: loop header
LB: loop body
LE: loop exit
PB: predicated region body
PF: predicated region fallthrough
CT: control target
= control target key end

     0   :  { %s3165_s0 = inlined_call_operand.vmem [shape: bf16[256,256], index: 0, kind: input, shape index: {}]   ;;  %s3166_s1 = inlined_call_operand.vmem [shape: bf16[256,128], index: 1, kind: input, shape index: {}]   ;;  %s3167_s2 = inlined_call_operand.vmem [shape: f32[1,128], index: 2, kind: input, shape index: {}]   ;;  %s3168_s3 = inlined_call_operand.vmem [shape: bf16[128,256], index: 3, kind: input, shape index: {}]   ;;  %s3169_s4 = inlined_call_operand.vmem [shape: f32[1,256], index: 4, kind: input, shape index: {}]   ;;  %s3170_s5 = inlined_call_operand.vmem [shape: bf16[128,128], index: 5, kind: input, shape index: {}]   ;;  %s3171_s6 = inlined_call_operand.vmem [shape: f32[1,128], index: 6, kind: input, shape index: {}]   ;;  %s3172_s7 = inlined_call_operand.vmem [shape: bf16[256,128], index: 7, kind: input, shape index: {}]   ;;  %s3173_s8 = inlined_call_operand.vmem [shape: bf16[256,128], index: 8, kind: output, shape index: {0}]   ;;  %s3174_s9 = inlined_call_operand.vmem [shape: f32[256,1], index: 9, kind: output, shape index: {1}]  }
   0x1   :  { %3178 = sst [smem:[#allocation7_spill]] %s3165_s0 }
   0x2   :  { %s2489_s30 = smov 0   ;;  %s2491_s10 = smov 0  }
   0x3   :  { %s2493_s11 = smov 0   ;;  %s2495_s12 = smov 0  }
   0x4   :  { %s2497_s13 = smov 0   ;;  %s2499_s14 = smov 0  }
   0x5   :  { %s2501_s15 = smov 0  }
   0x6 LB: > { %3179 = sst [smem:[#allocation4_spill]] %s2431_s14  ;;  %s29_s16 = sadd.s32 1, %s2427_s13  ;;  %s2435_s15 = sphi %s2501_s15, %s20_s15   ;;  %s2431_s14 = sphi %s2499_s14, %s3190_s14   ;;  %s2427_s13 = sphi %s2497_s13, %s3189_s13   ;;  %s2423_s12 = sphi %s2495_s12, %s3183_s12   ;;  %s2419_s11 = sphi %s2493_s11, %s3188_s11   ;;  %s2415_s10 = sphi %s2491_s10, %s3187_s10   ;;  %s2411_s30 = sphi %s2489_s30, %s3186_s30  }
   0x7   : > { %p30_p0 = scmp.ge.s32.totalorder %s29_s16, 2  ;;  %s32_s17 = sadd.s32 1, %s2431_s14 }
   0x8   : > { %p48_p1 = scmp.ne.s32.totalorder %s2415_s10, %s2411_s30  ;;  %p49_p2 = scmp.eq.s32.totalorder %s2435_s15, 0 }
   0x9   : > { %s3192_s16 = smov (%p30_p0, %s29_s16), 0  ;;  %s3194_s17 = smov (!%p30_p0, %s32_s17), %s2431_s14 }
   0xa   : > { %3180 = sst [smem:[#allocation5_spill]] %s3192_s16  ;;  %p50_p3 = por %p49_p2, %p48_p1 }
   0xb   : > { %p34_p4 = scmp.ge.s32.totalorder %s3194_s17, 2  ;;  %s37_s18 = ssub.s32 %s2427_s13, %s3192_s16 }
   0xc   : > { %s41_s21 = sadd.s32 1, %s2415_s10  ;;  %p1839_p6 = scmp.ge.s32.totalorder %s2435_s15, 4 }
   0xd   : > { %s3196_s17 = smov (%p34_p4, %s3194_s17), 0 }
   0xe   : > { %3181 = sst [smem:[#allocation6_spill]] %s3196_s17  ;;  %s36_s19 = ssub.s32 %s2431_s14, %s3196_s17 }
   0xf   : > { %s38_s20 = sor.u32 %s37_s18, %s36_s19  ;;  %298 = sbr.rel (%p1839_p6) target bundleno = 42 (0x2a), region = 36 }
  0x10   : > { %p39_p5 = scmp.eq.s32.totalorder %s38_s20, 0 }
  0x12   : > { %s2540_s22 = scalar_select %p39_p5, %s2415_s10, %s41_s21  }
  0x16   : > { %301 = sbr.rel (!%p50_p3) target bundleno = 42 (0x2a), region = 40  ;;  %s303_s23 = sand.u32 (%p50_p3), 1, %s2415_s10  }
  0x17   : > { %s1932_s24 = sshll.u32 (%p50_p3), %s2431_s14, 5  ;;  %s1840_s25 = sshll.u32 (%p50_p3), %s303_s23, 6 }
  0x18   : > { %s308_s26 = sadd.s32 (%p50_p3), %s2427_s13, %s1932_s24  ;;  %s3182_s0 = sld [smem:[#allocation7_spill]] (%p50_p3) }
  0x19   : > { %s1843_s27 = sshll.u32 (%p50_p3), %s308_s26, 2  ;;  %s305_s19 = scalar_lea.vmem (%p50_p3), [#allocation3], %s1840_s25 }
  0x1e   : > { %s2549_s18 = scalar_lea.vmem %s3182_s0, %s1843_s27 }
  0x1f   : > { %v326_v0 = vld [vmem:[%s2549_s18] sm:$0xf]  ;;  %v328_v1 = vld [vmem:[%s2549_s18 + $0x8] sm:$0xf]  ;;  %v330_v2 = vld [vmem:[%s2549_s18 + $0x10] sm:$0xf] }
  0x20   : > { %327 = vst [vmem:[%s305_s19] sm:$0xf] %v326_v0  ;;  %329 = vst [vmem:[%s305_s19 + $0x4] sm:$0xf] %v328_v1  ;;  %v332_v3 = vld [vmem:[%s2549_s18 + $0x18] sm:$0xf] }
  0x21   : > { %331 = vst [vmem:[%s305_s19 + $0x8] sm:$0xf] %v330_v2  ;;  %v334_v4 = vld [vmem:[%s2549_s18 + $0x20] sm:$0xf]  ;;  %v336_v5 = vld [vmem:[%s2549_s18 + $0x28] sm:$0xf] }
  0x22   : > { %333 = vst [vmem:[%s305_s19 + $0xc] sm:$0xf] %v332_v3  ;;  %335 = vst [vmem:[%s305_s19 + $0x10] sm:$0xf] %v334_v4  ;;  %v338_v6 = vld [vmem:[%s2549_s18 + $0x30] sm:$0xf] }
  0x23   : > { %337 = vst [vmem:[%s305_s19 + $0x14] sm:$0xf] %v336_v5  ;;  %v340_v7 = vld [vmem:[%s2549_s18 + $0x38] sm:$0xf]  ;;  %v342_v8 = vld [vmem:[%s2549_s18 + $0x40] sm:$0xf] }
  0x24   : > { %339 = vst [vmem:[%s305_s19 + $0x18] sm:$0xf] %v338_v6  ;;  %341 = vst [vmem:[%s305_s19 + $0x1c] sm:$0xf] %v340_v7  ;;  %v344_v9 = vld [vmem:[%s2549_s18 + $0x48] sm:$0xf] }
  0x25   : > { %343 = vst [vmem:[%s305_s19 + $0x20] sm:$0xf] %v342_v8  ;;  %v346_v10 = vld [vmem:[%s2549_s18 + $0x50] sm:$0xf]  ;;  %v348_v11 = vld [vmem:[%s2549_s18 + $0x58] sm:$0xf] }
  0x26   : > { %345 = vst [vmem:[%s305_s19 + $0x24] sm:$0xf] %v344_v9  ;;  %347 = vst [vmem:[%s305_s19 + $0x28] sm:$0xf] %v346_v10  ;;  %v350_v12 = vld [vmem:[%s2549_s18 + $0x60] sm:$0xf] }
  0x27   : > { %349 = vst [vmem:[%s305_s19 + $0x2c] sm:$0xf] %v348_v11  ;;  %v352_v13 = vld [vmem:[%s2549_s18 + $0x68] sm:$0xf]  ;;  %v354_v14 = vld [vmem:[%s2549_s18 + $0x70] sm:$0xf] }
  0x28   : > { %351 = vst [vmem:[%s305_s19 + $0x30] sm:$0xf] %v350_v12  ;;  %353 = vst [vmem:[%s305_s19 + $0x34] sm:$0xf] %v352_v13  ;;  %v356_v15 = vld [vmem:[%s2549_s18 + $0x78] sm:$0xf] }
  0x29   : > { %355 = vst [vmem:[%s305_s19 + $0x38] sm:$0xf] %v354_v14  ;;  %357 = vst [vmem:[%s305_s19 + $0x3c] sm:$0xf] %v356_v15 }
  0x2a PF: > { %p1844_p7 = scmp.ge.s32.totalorder %s2435_s15, 1  ;;  %p429_p8 = scmp.lt.s32.totalorder %s2435_s15, 5 }
  0x2c   : > { %p430_p9 = pnand %p1844_p7, %p429_p8 }
  0x2d   : > { %s436_s20 = sand.u32 (!%p430_p9), 1, %s2411_s30   ;;  %s1846_s21 = sshll.u32 (!%p430_p9), %s2419_s11, 4 }
  0x2e   : > { %433 = sbr.rel (%p430_p9) target bundleno = 876 (0x36c), region = 89  ;;  %s1845_s23 = sshll.u32 (!%p430_p9), %s436_s20, 6 }
  0x2f   : > { %p488_p10 = scmp.lt.s32.totalorder (!%p430_p9), %s1846_s21, 31  ;;  %s1848_s24 = sshll.u32 (!%p430_p9), %s2423_s12, 4 }
  0x30   : > { %p494_p11 = scmp.lt.s32.totalorder (!%p430_p9), %s1848_s24, 31  ;;  %p1854_p12 = scmp.ne.s32.totalorder (!%p430_p9), %s2419_s11, 0 }
  0x35   : > { %s3198_s21 = smov (!%p488_p10, %s1846_s21), 31  ;;  %s3200_s24 = smov (!%p494_p11, %s1848_s24), 31 }
  0x36   : > { %s1847_s25 = sshll.u32 %s3198_s21, 2  ;;  %s1849_s29 = sshll.u32 %s3200_s24, 2  ;;  %v2437_v16 = vmov (!%p1854_p12), 0.0  }
  0x37   : > { %s2575_s28 = scalar_lea.vmem %s3166_s1, %s1847_s25  ;;  %s1853_s18 = sshll.u32 %s3200_s24, 3  ;;  %516 = vst [vmem:[#allocation2] sm:$0xff] (!%p1854_p12), %v2437_v16  ;;  %517 = vst [vmem:[#allocation2 + $0x8] sm:$0xff] (!%p1854_p12), %v2437_v16 }
  0x38   : > { %s2580_s17 = scalar_lea.vmem %s3172_s7, %s1849_s29  ;;  %s2585_s12 = scalar_lea.vmem %s3173_s8, %s1849_s29  ;;  %518 = vst [vmem:[#allocation2 + $0x10] sm:$0xff] (!%p1854_p12), %v2437_v16  ;;  %519 = vst [vmem:[#allocation2 + $0x18] sm:$0xff] (!%p1854_p12), %v2437_v16 }
  0x39   : > { %s2590_s14 = scalar_lea.vmem %s3174_s9, %s1853_s18  ;;  %s2592_s25 = scalar_lea.vmem [#allocation3], %s1845_s23  ;;  %520 = vst [vmem:[#allocation2 + $0x20] sm:$0xff] (!%p1854_p12), %v2437_v16  ;;  %521 = vst [vmem:[#allocation2 + $0x28] sm:$0xff] (!%p1854_p12), %v2437_v16 }
  0x3a   : > { %515 = sbr.rel (%p1854_p12) target bundleno = 65 (0x41), region = 97  ;;  %522 = vst [vmem:[#allocation2 + $0x30] sm:$0xff] (!%p1854_p12), %v2437_v16  ;;  %523 = vst [vmem:[#allocation2 + $0x38] sm:$0xff] (!%p1854_p12), %v2437_v16 }
  0x3b   : > { %524 = vst [vmem:[#allocation2 + $0x40] sm:$0xff] (!%p1854_p12), %v2437_v16  ;;  %525 = vst [vmem:[#allocation2 + $0x48] sm:$0xff] (!%p1854_p12), %v2437_v16 }
  0x3c   : > { %526 = vst [vmem:[#allocation2 + $0x50] sm:$0xff] (!%p1854_p12), %v2437_v16  ;;  %527 = vst [vmem:[#allocation2 + $0x58] sm:$0xff] (!%p1854_p12), %v2437_v16 }
  0x3d   : > { %528 = vst [vmem:[#allocation2 + $0x60] sm:$0xff] (!%p1854_p12), %v2437_v16  ;;  %529 = vst [vmem:[#allocation2 + $0x68] sm:$0xff] (!%p1854_p12), %v2437_v16 }
  0x3e   : > { %530 = vst [vmem:[#allocation2 + $0x70] sm:$0xff] (!%p1854_p12), %v2437_v16  ;;  %531 = vst [vmem:[#allocation2 + $0x78] sm:$0xff] (!%p1854_p12), %v2437_v16 }
  0x41 PF: > { %v2205_v17 = vld [vmem:[%s2575_s28] sm:$0xff]   ;;  %v2206_v18 = vld [vmem:[%s2575_s28 + $0x8] sm:$0xff]   ;;  %v2207_v19 = vld [vmem:[%s2575_s28 + $0x10] sm:$0xff]   ;;  %p1871_p13 = scmp.ne.s32.totalorder %s2419_s11, 1 }
  0x42   : > { %2067 = vmatprep.subr.bf16.mxu0 %v2205_v17  ;;  %2131 = vmatprep.subr.bf16.mxu1 %v2205_v17  ;;  %v2208_v20 = vld [vmem:[%s2575_s28 + $0x18] sm:$0xff]   ;;  %v2213_v21 = vld [vmem:[%s2592_s25] sm:$0xff]   ;;  %v2210_v24 = vld [vmem:[%s2575_s28 + $0x28] sm:$0xff]  }
  0x43   : > { %2068 = vmatpush3.bf16.msra.mxu0 %v2205_v17  ;;  %2139 = vmatpush3.bf16.msra.mxu1 %v2205_v17  ;;  %v2214_v22 = vld [vmem:[%s2592_s25 + $0x20] sm:$0xff]   ;;  %v2211_v25 = vld [vmem:[%s2575_s28 + $0x30] sm:$0xff]   ;;  %v2212_v26 = vld [vmem:[%s2575_s28 + $0x38] sm:$0xff]  }
  0x44   : > { %2069 = vmatprep.subr.bf16.mxu0 %v2206_v18  ;;  %2132 = vmatprep.subr.bf16.mxu1 %v2206_v18  ;;  %v2209_v23 = vld [vmem:[%s2575_s28 + $0x20] sm:$0xff]   ;;  %v2215_v27 = vld [vmem:[%s2592_s25 + $0x8] sm:$0xff]   ;;  %v2217_v29 = vld [vmem:[%s2592_s25 + $0x10] sm:$0xff]  }
  0x45   : > { %2083 = vmatprep.mubr.bf16.mxu0 %v2213_v21  ;;  %2091 = vmatprep.mubr.bf16.mxu1 %v2214_v22  ;;  %v2216_v28 = vld [vmem:[%s2592_s25 + $0x28] sm:$0xff]   ;;  %v2218_v30 = vld [vmem:[%s2592_s25 + $0x30] sm:$0xff]   ;;  %v2219_v31 = vld [vmem:[%s2592_s25 + $0x18] sm:$0xff]  }
  0x46   : > { %v2220_v32 = vld [vmem:[%s2592_s25 + $0x38] sm:$0xff]   ;;  %v534_v33 = vld [vmem:[#allocation2 + $0x10] sm:$0xff]  ;;  %v532_v35 = vld [vmem:[#allocation2] sm:$0xff] }
  0x47   : > { %2070 = vmatpush3.bf16.msra.mxu0 %v2206_v18  ;;  %2140 = vmatpush3.bf16.msra.mxu1 %v2206_v18  ;;  %v542_v34 = vld [vmem:[#allocation2 + $0x50] sm:$0xff]  ;;  %v540_v36 = vld [vmem:[#allocation2 + $0x40] sm:$0xff]  ;;  %v535_v39 = vld [vmem:[#allocation2 + $0x18] sm:$0xff] }
  0x48   : > { %2071 = vmatprep.subr.bf16.mxu0 %v2207_v19  ;;  %2133 = vmatprep.subr.bf16.mxu1 %v2207_v19  ;;  %v543_v40 = vld [vmem:[#allocation2 + $0x58] sm:$0xff]  ;;  %v533_v45 = vld [vmem:[#allocation2 + $0x8] sm:$0xff]  ;;  %v538_v57 = vld [vmem:[#allocation2 + $0x30] sm:$0xff] }
  0x49   : > { %v541_v46 = vld [vmem:[#allocation2 + $0x48] sm:$0xff]  ;;  %v546_v58 = vld [vmem:[#allocation2 + $0x70] sm:$0xff]  ;;  %v536_v59 = vld [vmem:[#allocation2 + $0x20] sm:$0xff] }
  0x4a   : > { %v544_v60 = vld [vmem:[#allocation2 + $0x60] sm:$0xff]  ;;  %v539_v63 = vld [vmem:[#allocation2 + $0x38] sm:$0xff]  ;;  %v537_v5 = vld [vmem:[#allocation2 + $0x28] sm:$0xff] }
  0x4b   : > { %2072 = vmatpush3.bf16.msra.mxu0 %v2207_v19  ;;  %2141 = vmatpush3.bf16.msra.mxu1 %v2207_v19  ;;  %v547_v0 = vld [vmem:[#allocation2 + $0x78] sm:$0xff]  ;;  %v545_v6 = vld [vmem:[#allocation2 + $0x68] sm:$0xff]  ;;  %v2438_v19 = vmov (!%p1871_p13), 0  }
  0x4c   : > { %2073 = vmatprep.subr.bf16.mxu0 %v2208_v20  ;;  %2134 = vmatprep.subr.bf16.mxu1 %v2208_v20  ;;  %v2221_v17 = vld [vmem:[%s3168_s3 + $0x4] ss:$8 sps:$4 sm:$0xff] (!%p1871_p13)   ;;  %v2223_v18 = vld [vmem:[%s3168_s3] ss:$8 sps:$4 sm:$0xff] (!%p1871_p13)   ;;  %v2226_v21 = vld [vmem:[%s3168_s3 + $0x10] ss:$8 sps:$4 sm:$0xff] (!%p1871_p13)  }
  0x4d   : > { %v2227_v22 = vld [vmem:[%s3168_s3 + $0x24] ss:$8 sps:$4 sm:$0xff] (!%p1871_p13)  }
  0x4f   : > { %2074 = vmatpush3.bf16.msra.mxu0 %v2208_v20  ;;  %2142 = vmatpush3.bf16.msra.mxu1 %v2208_v20  ;;  %v2224_v20 = vld [vmem:[%s3168_s3 + $0x14] ss:$8 sps:$4 sm:$0xff] (!%p1871_p13)  }
  0x50   : > { %2075 = vmatprep.subr.bf16.mxu0 %v2209_v23  ;;  %2135 = vmatprep.subr.bf16.mxu1 %v2209_v23 }
  0x53   : > { %2076 = vmatpush3.bf16.msra.mxu0 %v2209_v23  ;;  %2143 = vmatpush3.bf16.msra.mxu1 %v2209_v23  ;;  %v2229_v23 = vld [vmem:[%s3168_s3 + $0x20] ss:$8 sps:$4 sm:$0xff] (!%p1871_p13)  }
  0x54   : > { %2077 = vmatprep.subr.bf16.mxu0 %v2210_v24  ;;  %2136 = vmatprep.subr.bf16.mxu1 %v2210_v24 }
  0x57   : > { %2078 = vmatpush3.bf16.msra.mxu0 %v2210_v24  ;;  %2144 = vmatpush3.bf16.msra.mxu1 %v2210_v24  ;;  %v2230_v24 = vld [vmem:[%s3168_s3 + $0x34] ss:$8 sps:$4 sm:$0xff] (!%p1871_p13)  }
  0x58   : > { %2079 = vmatprep.subr.bf16.mxu0 %v2211_v25  ;;  %2137 = vmatprep.subr.bf16.mxu1 %v2211_v25 }
  0x5b   : > { %2080 = vmatpush3.bf16.msra.mxu0 %v2211_v25  ;;  %2145 = vmatpush3.bf16.msra.mxu1 %v2211_v25 }
  0x5c   : > { %2081 = vmatprep.subr.bf16.mxu0 %v2212_v26  ;;  %2138 = vmatprep.subr.bf16.mxu1 %v2212_v26 }
  0x5f   : > { %2082 = vmatpush3.bf16.msra.mxu0 %v2212_v26  ;;  %2146 = vmatpush3.bf16.msra.mxu1 %v2212_v26  ;;  %v2232_v26 = vld [vmem:[%s3168_s3 + $0x30] ss:$8 sps:$4 sm:$0xff] (!%p1871_p13)  }
  0x60   : > { %980 = vmatprep.subr.bf16.mxu0 (!%p1871_p13), %v2221_v17 }
  0x62   : > { %2084 = vmatmul.mubr.bf16.vlgmr.msra.gmra.mrb[0].mxu0 %v2215_v27  ;;  %2092 = vmatmul.mubr.bf16.vlgmr.msra.gmra.mrb[0].mxu1 %v2216_v28  ;;  %v2640_v28 = vld [vmem:[%s3167_s2] ss:$0 sm:$0xff] (!%p1871_p13) }
  0x63   : > { %2087 = vmatprep.mubr.bf16.mxu0 %v2217_v29  ;;  %2095 = vmatprep.mubr.bf16.mxu1 %v2218_v30  ;;  %v2233_v29 = vld [vmem:[%s3168_s3 + $0x44] ss:$8 sps:$4 sm:$0xff] (!%p1871_p13)  }
  0x64   : > { %981 = vmatpush1.bf16.msra.mxu0 (!%p1871_p13), %v2223_v18 }
  0x65   : > { %982 = vmatprep.subr.bf16.mxu0 (!%p1871_p13), %v2224_v20 }
  0x68   : > { %983 = vmatpush1.bf16.msra.mxu0 (!%p1871_p13), %v2226_v21 }
  0x69   : > { %984 = vmatprep.subr.bf16.mxu0 (!%p1871_p13), %v2227_v22 }
  0x6a   : > { %2088 = vmatmul.mubr.bf16.gmra.mrb[4].mxu0 %v2219_v31  ;;  %2096 = vmatmul.mubr.bf16.gmra.mrb[4].mxu1 %v2220_v32  ;;  %v2235_v32 = vld [vmem:[%s3168_s3 + $0x40] ss:$8 sps:$4 sm:$0xff] (!%p1871_p13)  }
  0x6b   : > { %1012 = vmatprep.mubr.bf16.mxu0 (!%p1871_p13), %v2438_v19 }
  0x6c   : > { %985 = vmatpush1.bf16.msra.mxu0 (!%p1871_p13), %v2229_v23 }
  0x6d   : > { %986 = vmatprep.subr.bf16.mxu0 (!%p1871_p13), %v2230_v24 }
  0x70   : > { %987 = vmatpush1.bf16.msra.mxu0 (!%p1871_p13), %v2232_v26 }
  0x71   : > { %988 = vmatprep.subr.bf16.mxu0 (!%p1871_p13), %v2233_v29  ;;  %v2246_v29 = vld [vmem:[%s3170_s5 + $0x8] sm:$0xff] (!%p1871_p13)  }
  0x74   : > { %989 = vmatpush1.bf16.msra.mxu0 (!%p1871_p13), %v2235_v32  ;;  %v2250_v32 = vld [vmem:[%s3170_s5 + $0x28] sm:$0xff] (!%p1871_p13)  }
 0x135   : > { %v2085_v37 = vpop.f32.mrb[0].mxu0  ;;  %v2093_v38 = vpop.f32.mrb[0].mxu1 }
 0x136   : > { %v775_v41 = vadd.f32 %v2085_v37, %v534_v33  ;;  %v783_v42 = vadd.f32 %v2093_v38, %v542_v34  ;;  %v710_v43 = vpop.f32.mrb[1].mxu0  ;;  %v742_v44 = vpop.f32.mrb[1].mxu1  ;;  %v2236_v33 = vld [vmem:[%s3168_s3 + $0x54] ss:$8 sps:$4 sm:$0xff] (!%p1871_p13)   ;;  %v2239_v37 = vld [vmem:[%s3168_s3 + $0x64] ss:$8 sps:$4 sm:$0xff] (!%p1871_p13)  }
 0x137   : > { %v773_v47 = vadd.f32 %v710_v43, %v532_v35  ;;  %v781_v48 = vadd.f32 %v742_v44, %v540_v36  ;;  %v2086_v49 = vpop.f32.mrb[2].mxu0  ;;  %v2094_v50 = vpop.f32.mrb[2].mxu1  ;;  %v2238_v36 = vld [vmem:[%s3168_s3 + $0x50] ss:$8 sps:$4 sm:$0xff] (!%p1871_p13)   ;;  %990 = vmatprep.subr.bf16.mxu0 (!%p1871_p13), %v2236_v33 }
 0x138   : > { %791 = vst [vmem:[#allocation2 + $0x10] sm:$0xff] %v775_v41  ;;  %799 = vst [vmem:[#allocation2 + $0x50] sm:$0xff] %v783_v42  ;;  %v776_v51 = vadd.f32 %v2086_v49, %v535_v39  ;;  %v784_v52 = vadd.f32 %v2094_v50, %v543_v40  ;;  %v713_v53 = vpop.f32.mrb[3].mxu0  ;;  %v745_v54 = vpop.f32.mrb[3].mxu1  ;;  %991 = vmatpush1.bf16.msra.mxu0 (!%p1871_p13), %v2238_v36  ;;  %v2241_v40 = vld [vmem:[%s3168_s3 + $0x60] ss:$8 sps:$4 sm:$0xff] (!%p1871_p13)  }
 0x139   : > { %789 = vst [vmem:[#allocation2] sm:$0xff] %v773_v47  ;;  %797 = vst [vmem:[#allocation2 + $0x40] sm:$0xff] %v781_v48  ;;  %v774_v55 = vadd.f32 %v713_v53, %v533_v45  ;;  %v782_v56 = vadd.f32 %v745_v54, %v541_v46  ;;  %992 = vmatprep.subr.bf16.mxu0 (!%p1871_p13), %v2239_v37  ;;  %v2242_v41 = vld [vmem:[%s3168_s3 + $0x74] ss:$8 sps:$4 sm:$0xff] (!%p1871_p13)   ;;  %v2244_v46 = vld [vmem:[%s3168_s3 + $0x70] ss:$8 sps:$4 sm:$0xff] (!%p1871_p13)  }
 0x13a   : > { %792 = vst [vmem:[#allocation2 + $0x18] sm:$0xff] %v776_v51  ;;  %800 = vst [vmem:[#allocation2 + $0x58] sm:$0xff] %v784_v52  ;;  %v2251_v33 = vld [vmem:[%s3170_s5 + $0x30] sm:$0xff] (!%p1871_p13)  }
 0x13b   : > { %790 = vst [vmem:[#allocation2 + $0x8] sm:$0xff] %v774_v55  ;;  %798 = vst [vmem:[#allocation2 + $0x48] sm:$0xff] %v782_v56 }
 0x13c   : > { %993 = vmatpush1.bf16.msra.mxu0 (!%p1871_p13), %v2241_v40 }
 0x13d   : > { %v2089_v61 = vpop.f32.mrb[4].mxu0  ;;  %v2097_v62 = vpop.f32.mrb[4].mxu1  ;;  %808 = sbr.rel (%p1871_p13) target bundleno = 876 (0x36c), region = 101  ;;  %994 = vmatprep.subr.bf16.mxu0 (!%p1871_p13), %v2242_v41 }
 0x13e   : > { %v779_v1 = vadd.f32 %v2089_v61, %v538_v57  ;;  %v787_v2 = vadd.f32 %v2097_v62, %v546_v58  ;;  %v726_v3 = vpop.f32.mrb[5].mxu0  ;;  %v758_v4 = vpop.f32.mrb[5].mxu1 }
 0x13f   : > { %v777_v7 = vadd.f32 %v726_v3, %v536_v59  ;;  %v785_v8 = vadd.f32 %v758_v4, %v544_v60  ;;  %v2090_v9 = vpop.f32.mrb[6].mxu0  ;;  %v2098_v10 = vpop.f32.mrb[6].mxu1  ;;  %v811_v34 = vld [vmem:[#allocation2 + $0x10] sm:$0xff] (!%p1871_p13) }
 0x140   : > { %795 = vst [vmem:[#allocation2 + $0x30] sm:$0xff] %v779_v1  ;;  %803 = vst [vmem:[#allocation2 + $0x70] sm:$0xff] %v787_v2  ;;  %v780_v11 = vadd.f32 %v2090_v9, %v539_v63  ;;  %v788_v12 = vadd.f32 %v2098_v10, %v547_v0  ;;  %v729_v13 = vpop.f32.mrb[7].mxu0  ;;  %v761_v14 = vpop.f32.mrb[7].mxu1  ;;  %v809_v25 = vld [vmem:[#allocation2] sm:$0xff] (!%p1871_p13)  ;;  %v834_v38 = vadd.f32 (!%p1871_p13), %v2640_v28, %v811_v34  ;;  %995 = vmatpush1.bf16.msra.mxu0 (!%p1871_p13), %v2244_v46  ;;  %v819_v0 = vld [vmem:[#allocation2 + $0x50] sm:$0xff] (!%p1871_p13) }
 0x141   : > { %793 = vst [vmem:[#allocation2 + $0x20] sm:$0xff] %v777_v7  ;;  %801 = vst [vmem:[#allocation2 + $0x60] sm:$0xff] %v785_v8  ;;  %v778_v15 = vadd.f32 %v729_v13, %v537_v5  ;;  %v786_v16 = vadd.f32 %v761_v14, %v545_v6  ;;  %v832_v30 = vadd.f32 (!%p1871_p13), %v2640_v28, %v809_v25  ;;  %v812_v35 = vld [vmem:[#allocation2 + $0x18] sm:$0xff] (!%p1871_p13)  ;;  %v817_v57 = vld [vmem:[#allocation2 + $0x40] sm:$0xff] (!%p1871_p13) }
 0x142   : > { %796 = vst [vmem:[#allocation2 + $0x38] sm:$0xff] %v780_v11  ;;  %804 = vst [vmem:[#allocation2 + $0x78] sm:$0xff] %v788_v12  ;;  %v810_v27 = vld [vmem:[#allocation2 + $0x8] sm:$0xff] (!%p1871_p13)  ;;  %v835_v39 = vadd.f32 (!%p1871_p13), %v2640_v28, %v812_v35  ;;  %v840_v61 = vadd.f32 (!%p1871_p13), %v2640_v28, %v817_v57  ;;  %v820_v2 = vld [vmem:[#allocation2 + $0x58] sm:$0xff] (!%p1871_p13)  ;;  %v842_v4 = vadd.f32 (!%p1871_p13), %v2640_v28, %v819_v0  ;;  %v890_v35 = vlaneseq (!%p1871_p13) }
 0x143   : > { %794 = vst [vmem:[#allocation2 + $0x28] sm:$0xff] %v778_v15  ;;  %802 = vst [vmem:[#allocation2 + $0x68] sm:$0xff] %v786_v16  ;;  %v833_v31 = vadd.f32 (!%p1871_p13), %v2640_v28, %v810_v27  ;;  %2253 = vtanh.f32 (!%p1871_p13), %v832_v30  ;;  %v818_v59 = vld [vmem:[#allocation2 + $0x48] sm:$0xff] (!%p1871_p13)  ;;  %v843_v5 = vadd.f32 (!%p1871_p13), %v2640_v28, %v820_v2  ;;  %v2247_v30 = vld [vmem:[%s3170_s5 + $0x10] sm:$0xff] (!%p1871_p13)  }
 0x144   : > { %v841_v62 = vadd.f32 %v2640_v28, %v818_v59  ;;  %v2252_v34 = vld [vmem:[%s3170_s5 + $0x38] sm:$0xff]   ;;  %v891_v36 = vshrl.u32 %v890_v35, 7 }
 0x145   : > { %2255 = vtanh.f32 %v833_v31  ;;  %v2249_v31 = vld [vmem:[%s3170_s5 + $0x20] sm:$0xff]  }
 0x146   : > { %2257 = vtanh.f32 %v834_v38  ;;  %v896_v37 = vsub.s32 1, %v891_v36  ;;  %v888_v38 = vld [vmem:[%s3169_s4] sm:$0x3] }
 0x147   : > { %2259 = vtanh.f32 %v835_v39  ;;  %v815_v50 = vld [vmem:[#allocation2 + $0x30] sm:$0xff] }
 0x148   : > { %v813_v42 = vld [vmem:[#allocation2 + $0x20] sm:$0xff]  ;;  %v838_v54 = vadd.f32 %v2640_v28, %v815_v50  ;;  %v823_v14 = vld [vmem:[#allocation2 + $0x70] sm:$0xff]  ;;  %v2716_v39 = vrot.slane %v888_v38, %v896_v37 }
 0x149   : > { %v836_v47 = vadd.f32 %v2640_v28, %v813_v42  ;;  %v816_v52 = vld [vmem:[#allocation2 + $0x38] sm:$0xff]  ;;  %v821_v7 = vld [vmem:[#allocation2 + $0x60] sm:$0xff]  ;;  %v846_v18 = vadd.f32 %v2640_v28, %v823_v14  ;;  %v2765_v14 = vld [vmem:[%s2580_s17 + $0x8] sm:$0xff]  }
 0x14a   : > { %v814_v44 = vld [vmem:[#allocation2 + $0x28] sm:$0xff]  ;;  %v839_v55 = vadd.f32 %v2640_v28, %v816_v52  ;;  %v844_v11 = vadd.f32 %v2640_v28, %v821_v7  ;;  %v824_v16 = vld [vmem:[#allocation2 + $0x78] sm:$0xff] }
 0x14b   : > { %v837_v48 = vadd.f32 %v2640_v28, %v814_v44  ;;  %2261 = vtanh.f32 %v836_v47  ;;  %v822_v9 = vld [vmem:[#allocation2 + $0x68] sm:$0xff]  ;;  %v847_v20 = vadd.f32 %v2640_v28, %v824_v16  ;;  %v892_v44 = vsub.s32 0, %v891_v36 }
 0x14c   : > { %v845_v12 = vadd.f32 %v2640_v28, %v822_v9  ;;  %v2245_v28 = vld [vmem:[%s3170_s5] sm:$0xff]  }
 0x14d   : > { %v2254_v43 = vpop.eup %2253  ;;  %2263 = vtanh.f32 %v837_v48  ;;  %2099 = vmatprep.subr.bf16.mxu1 %v2245_v28 }
 0x14e   : > { %2265 = vtanh.f32 %v838_v54  ;;  %2100 = vmatpush3.bf16.msra.mxu1 %v2245_v28 }
 0x14f   : > { %v2256_v45 = vpop.eup %2255  ;;  %2267 = vtanh.f32 %v839_v55  ;;  %2101 = vmatprep.subr.bf16.mxu1 %v2246_v29 }
 0x150   : > { %v864_v49 = vpack.c.bf16 %v2256_v45, %v2254_v43  ;;  %v2258_v51 = vpop.eup %2257  ;;  %2269 = vtanh.f32 %v840_v61 }
 0x151   : > { %v2260_v53 = vpop.eup %2259  ;;  %2271 = vtanh.f32 %v841_v62 }
 0x152   : > { %1013 = vmatmul.mubr.bf16.vlgmr.msra.gmra.mrb[0].mxu0 %v864_v49  ;;  %v865_v56 = vpack.c.bf16 %v2260_v53, %v2258_v51  ;;  %2273 = vtanh.f32 %v842_v4  ;;  %2102 = vmatpush3.bf16.msra.mxu1 %v2246_v29  ;;  %v2720_v49 = vrot.slane %v888_v38, %v892_v44 }
 0x153   : > { %1022 = vmatprep.mubr.bf16.mxu0 %v2438_v19  ;;  %2275 = vtanh.f32 %v843_v5  ;;  %2103 = vmatprep.subr.bf16.mxu1 %v2247_v30 }
 0x154   : > { %2277 = vtanh.f32 %v844_v11  ;;  %v2759_v11 = vld [vmem:[%s2580_s17] sm:$0xff]  }
 0x155   : > { %v2262_v58 = vpop.eup %2261  ;;  %2279 = vtanh.f32 %v845_v12 }
 0x156   : > { %2281 = vtanh.f32 %v846_v18  ;;  %2104 = vmatpush3.bf16.msra.mxu1 %v2247_v30  ;;  %v1951_v18 = vunpack.c.l.bf16 %v2759_v11 }
 0x157   : > { %v2264_v60 = vpop.eup %2263  ;;  %2283 = vtanh.f32 %v847_v20  ;;  %v1952_v20 = vunpack.c.h.bf16 %v2759_v11 }
 0x158   : > { %v866_v63 = vpack.c.bf16 %v2264_v60, %v2262_v58  ;;  %v2266_v1 = vpop.eup %2265 }
 0x159   : > { %v2268_v3 = vpop.eup %2267 }
 0x15a   : > { %1023 = vmatmul.mubr.bf16.gmra.mrb[4].mxu0 %v865_v56  ;;  %v867_v6 = vpack.c.bf16 %v2268_v3, %v2266_v1  ;;  %v2270_v8 = vpop.eup %2269 }
 0x15b   : > { %1032 = vmatprep.mubr.bf16.mxu0 %v2438_v19  ;;  %v2272_v10 = vpop.eup %2271 }
 0x15c   : > { %v868_v13 = vpack.c.bf16 %v2272_v10, %v2270_v8  ;;  %v2274_v15 = vpop.eup %2273 }
 0x15d   : > { %v2276_v17 = vpop.eup %2275 }
 0x15e   : > { %v869_v21 = vpack.c.bf16 %v2276_v17, %v2274_v15  ;;  %v2278_v22 = vpop.eup %2277  ;;  %v2768_v15 = vld [vmem:[%s2580_s17 + $0x10] sm:$0xff]  }
 0x15f   : > { %v2280_v23 = vpop.eup %2279 }
 0x160   : > { %v870_v24 = vpack.c.bf16 %v2280_v23, %v2278_v22  ;;  %v2282_v25 = vpop.eup %2281 }
 0x161   : > { %v2284_v26 = vpop.eup %2283 }
 0x162   : > { %1033 = vmatmul.mubr.bf16.gmra.mrb[8].mxu0 %v866_v63  ;;  %v871_v27 = vpack.c.bf16 %v2284_v26, %v2282_v25  ;;  %v1956_v25 = vunpack.c.h.bf16 %v2765_v14  ;;  %v1959_v26 = vunpack.c.l.bf16 %v2768_v15 }
 0x163   : > { %1042 = vmatprep.mubr.bf16.mxu0 %v2438_v19 }
 0x16a   : > { %1043 = vmatmul.mubr.bf16.gmra.mrb[12].mxu0 %v867_v6 }
 0x16b   : > { %1052 = vmatprep.mubr.bf16.mxu0 %v2438_v19 }
 0x172   : > { %1053 = vmatmul.mubr.bf16.gmra.mrb[16].mxu0 %v868_v13 }
 0x173   : > { %1062 = vmatprep.mubr.bf16.mxu0 %v2438_v19 }
 0x17a   : > { %1063 = vmatmul.mubr.bf16.gmra.mrb[20].mxu0 %v869_v21  ;;  %v2776_v21 = vld [vmem:[%s2580_s17 + $0x18] sm:$0xff]  }
 0x17b   : > { %1072 = vmatprep.mubr.bf16.mxu0 %v2438_v19  ;;  %v1963_v35 = vunpack.c.l.bf16 %v2776_v21  ;;  %v1964_v36 = vunpack.c.h.bf16 %v2776_v21 }
 0x182   : > { %1073 = vmatmul.mubr.bf16.gmra.mrb[24].mxu0 %v870_v24  ;;  %v1955_v24 = vunpack.c.l.bf16 %v2765_v14 }
 0x183   : > { %1082 = vmatprep.mubr.bf16.mxu0 %v2438_v19  ;;  %v2248_v19 = vld [vmem:[%s3170_s5 + $0x18] sm:$0xff]  }
 0x184   : > { %2105 = vmatprep.subr.bf16.mxu1 %v2248_v19 }
 0x185   : > { %2106 = vmatpush3.bf16.msra.mxu1 %v2248_v19  ;;  %v1960_v19 = vunpack.c.h.bf16 %v2768_v15 }
 0x186   : > { %2107 = vmatprep.subr.bf16.mxu1 %v2249_v31 }
 0x189   : > { %2108 = vmatpush3.bf16.msra.mxu1 %v2249_v31 }
 0x18a   : > { %1083 = vmatmul.mubr.bf16.gmra.mrb[28].mxu0 %v871_v27  ;;  %2109 = vmatprep.subr.bf16.mxu1 %v2250_v32  ;;  %v2784_v27 = vld [vmem:[%s2580_s17 + $0x20] sm:$0xff]  }
 0x18d   : > { %2110 = vmatpush3.bf16.msra.mxu1 %v2250_v32 }
 0x18e   : > { %2111 = vmatprep.subr.bf16.mxu1 %v2251_v33 }
 0x191   : > { %2112 = vmatpush3.bf16.msra.mxu1 %v2251_v33 }
 0x192   : > { %2113 = vmatprep.subr.bf16.mxu1 %v2252_v34 }
 0x195   : > { %2114 = vmatpush3.bf16.msra.mxu1 %v2252_v34 }
 0x225   : > { %v1014_v40 = vpop.f32.mrb[0].mxu0 }
 0x226   : > { %v1016_v41 = vpop.f32.mrb[1].mxu0  ;;  %v2726_v54 = vadd.f32 %v1014_v40, %v2720_v49 }
 0x227   : > { %v1017_v42 = vadd.f32 %v1016_v41, %v2716_v39  ;;  %v1018_v43 = vpop.f32.mrb[2].mxu0 }
 0x228   : > { %v1020_v45 = vpop.f32.mrb[3].mxu0  ;;  %v2733_v58 = vadd.f32 %v1018_v43, %v2720_v49  ;;  %v1237_v60 = vmul.f32 %v2726_v54, %v2726_v54  ;;  %v1967_v43 = vunpack.c.l.bf16 %v2784_v27 }
 0x229   : > { %v1093_v46 = vmul.f32 1.442695, %v1017_v42  ;;  %v1021_v47 = vadd.f32 %v1020_v45, %v2716_v39 }
 0x22a   : > { %v1238_v63 = vmul.f32 %v2733_v58, %v2733_v58 }
 0x22b   : > { %2285 = vpow2.f32 %v1093_v46  ;;  %v1095_v48 = vmul.f32 1.442695, %v1021_v47 }
 0x22d   : > { %2287 = vpow2.f32 %v1095_v48  ;;  %v1024_v50 = vpop.f32.mrb[4].mxu0 }
 0x22e   : > { %v1026_v51 = vpop.f32.mrb[5].mxu0  ;;  %v2750_v5 = vadd.f32 %v1024_v50, %v2720_v49 }
 0x22f   : > { %v2723_v52 = vadd.f32 %v1026_v51, %v2716_v39  ;;  %v1028_v53 = vpop.f32.mrb[6].mxu0 }
 0x230   : > { %v1030_v55 = vpop.f32.mrb[7].mxu0  ;;  %v2762_v12 = vadd.f32 %v1028_v53, %v2720_v49  ;;  %v1239_v17 = vmul.f32 %v2750_v5, %v2750_v5 }
 0x231   : > { %v1097_v56 = vmul.f32 1.442695, %v2723_v52  ;;  %v2730_v57 = vadd.f32 %v1030_v55, %v2716_v39 }
 0x232   : > { %v1240_v28 = vmul.f32 %v2762_v12, %v2762_v12 }
 0x233   : > { %2289 = vpow2.f32 %v1097_v56  ;;  %v1099_v59 = vmul.f32 1.442695, %v2730_v57 }
 0x235   : > { %v2738_v61 = vpop.eup %2285  ;;  %2291 = vpow2.f32 %v1099_v59  ;;  %v1034_v62 = vpop.f32.mrb[8].mxu0 }
 0x236   : > { %v1036_v0 = vpop.f32.mrb[9].mxu0  ;;  %v1253_v1 = vadd.f32 %v2738_v61, %v1237_v60  ;;  %2293 = vrsqrt.f32 %v2738_v61  ;;  %v2794_v32 = vadd.f32 %v1034_v62, %v2720_v49  ;;  %vm1127_vm0 = vcmp.eq.f32.partialorder %v2738_v61, inf }
 0x237   : > { %v2744_v2 = vpop.eup %2287  ;;  %v2747_v3 = vadd.f32 %v1036_v0, %v2716_v39  ;;  %v1038_v4 = vpop.f32.mrb[10].mxu0  ;;  %vm1129_vm1 = vcmp.eq.f32.partialorder %v2738_v61, 0.0  ;;  %v1130_v48 = vand.u32 2147483648, %v2738_v61 }
 0x238   : > { %v1040_v6 = vpop.f32.mrb[11].mxu0  ;;  %v1269_v7 = vsub.f32 %v1253_v1, %v1017_v42  ;;  %v1254_v8 = vadd.f32 %v2744_v2, %v1238_v63  ;;  %2295 = vrsqrt.f32 %v2744_v2  ;;  %v2802_v38 = vadd.f32 %v1038_v4, %v2720_v49 }
 0x239   : > { %v1101_v9 = vmul.f32 1.442695, %v2747_v3  ;;  %v2755_v10 = vadd.f32 %v1040_v6, %v2716_v39  ;;  %v1241_v51 = vmul.f32 %v2794_v32, %v2794_v32  ;;  %vm1134_vm2 = vcmp.eq.f32.partialorder %v2744_v2, inf }
 0x23a   : > { %1285 = vadd.xlane.f32.xlu0 %v1269_v7  ;;  %v1270_v13 = vsub.f32 %v1254_v8, %v1021_v47  ;;  %v1242_v55 = vmul.f32 %v2802_v38, %v2802_v38  ;;  %vm1136_vm3 = vcmp.eq.f32.partialorder %v2744_v2, 0.0  ;;  %v1137_v62 = vand.u32 2147483648, %v2744_v2 }
 0x23b   : > { %2297 = vpow2.f32 %v1101_v9  ;;  %v1103_v16 = vmul.f32 1.442695, %v2755_v10 }
 0x23d   : > { %v2778_v22 = vpop.eup %2289  ;;  %2299 = vpow2.f32 %v1103_v16  ;;  %v1044_v23 = vpop.f32.mrb[12].mxu0  ;;  %v1968_v16 = vunpack.c.h.bf16 %v2784_v27 }
 0x23e   : > { %v1046_v29 = vpop.f32.mrb[13].mxu0  ;;  %1287 = vadd.xlane.f32.xlu0 %v1270_v13  ;;  %v1255_v30 = vadd.f32 %v2778_v22, %v1239_v17  ;;  %2301 = vrsqrt.f32 %v2778_v22  ;;  %v2830_v0 = vadd.f32 %v1044_v23, %v2720_v49  ;;  %vm1141_vm4 = vcmp.eq.f32.partialorder %v2778_v22, inf }
 0x23f   : > { %v2791_v31 = vpop.eup %2291  ;;  %v2797_v33 = vadd.f32 %v1046_v29, %v2716_v39  ;;  %v1048_v34 = vpop.f32.mrb[14].mxu0  ;;  %vm1143_vm5 = vcmp.eq.f32.partialorder %v2778_v22, 0.0 }
 0x240   : > { %v2294_v37 = vpop.eup %2293  ;;  %v1050_v40 = vpop.f32.mrb[15].mxu0  ;;  %v1271_v41 = vsub.f32 %v1255_v30, %v2723_v52  ;;  %v1256_v42 = vadd.f32 %v2791_v31, %v1240_v28  ;;  %2303 = vrsqrt.f32 %v2791_v31  ;;  %vm1148_vm6 = vcmp.eq.f32.partialorder %v2791_v31, inf }
 0x241   : > { %v1105_v44 = vmul.f32 1.442695, %v2797_v33  ;;  %v2809_v45 = vadd.f32 %v1050_v40, %v2716_v39  ;;  %v1126_v46 = vmul.f32 %v2294_v37, %v2738_v61  ;;  %v1243_v37 = vmul.f32 %v2830_v0, %v2830_v0 }
 0x242   : > { %1289 = vadd.xlane.f32.xlu1 %v1271_v41  ;;  %v1272_v47 = vsub.f32 %v1256_v42, %v2730_v57  ;;  %v2296_v50 = vpop.eup %2295  ;;  %v1144_v41 = vand.u32 2147483648, %v2778_v22  ;;  %vm1150_vm7 = vcmp.eq.f32.partialorder %v2791_v31, 0.0 }
 0x243   : > { %2305 = vpow2.f32 %v1105_v44  ;;  %v1107_v52 = vmul.f32 1.442695, %v2809_v45  ;;  %v1128_v53 = vsel %vm1127_vm0, %v2738_v61, %v1126_v46  ;;  %v1133_v57 = vmul.f32 %v2296_v50, %v2744_v2 }
 0x244   : > { %v1131_v56 = vsel %vm1129_vm1, %v1130_v48, %v1128_v53  ;;  %v1151_v50 = vand.u32 2147483648, %v2791_v31 }
 0x245   : > { %v2825_v59 = vpop.eup %2297  ;;  %2307 = vpow2.f32 %v1107_v52  ;;  %v1054_v60 = vpop.f32.mrb[16].mxu0  ;;  %v1398_v63 = vmul.f32 %v1951_v18, %v1131_v56  ;;  %v1135_v4 = vsel %vm1134_vm2, %v2744_v2, %v1133_v57 }
 0x246   : > { %v1056_v61 = vpop.f32.mrb[17].mxu0  ;;  %1291 = vadd.xlane.f32.xlu1 %v1272_v47  ;;  %v1257_v1 = vadd.f32 %v2825_v59, %v1241_v51  ;;  %2309 = vrsqrt.f32 %v2825_v59  ;;  %v1138_v9 = vsel %vm1136_vm3, %v1137_v62, %v1135_v4  ;;  %vm1155_vm8 = vcmp.eq.f32.partialorder %v2825_v59, inf }
 0x247   : > { %v2835_v6 = vpop.eup %2299  ;;  %v2838_v7 = vadd.f32 %v1056_v61, %v2716_v39  ;;  %v1058_v8 = vpop.f32.mrb[18].mxu0  ;;  %v1414_v13 = vadd.f32 %v1398_v63, %v2726_v54  ;;  %v1399_v54 = vmul.f32 %v1952_v20, %v1138_v9  ;;  %v2886_v61 = vadd.f32 %v1054_v60, %v2720_v49 }
 0x248   : > { %v2302_v17 = vpop.eup %2301  ;;  %v1060_v18 = vpop.f32.mrb[19].mxu0  ;;  %v1273_v23 = vsub.f32 %v1257_v1, %v2747_v3  ;;  %v1258_v28 = vadd.f32 %v2835_v6, %v1242_v55  ;;  %v2856_v3 = vadd.f32 %v1048_v34, %v2720_v49  ;;  %v2902_v60 = vadd.f32 %v1058_v8, %v2720_v49 }
 0x249   : > { %v1109_v2 = vmul.f32 1.442695, %v2838_v7  ;;  %v2848_v29 = vadd.f32 %v1060_v18, %v2716_v39  ;;  %v1140_v30 = vmul.f32 %v2302_v17, %v2778_v22  ;;  %v1415_v11 = vadd.f32 %v1399_v54, %v2733_v58  ;;  %v2899_v18 = vld [vmem:[%s2580_s17 + $0x28] sm:$0xff]  }
 0x24a   : > { %1293 = vadd.xlane.f32.xlu0 %v1273_v23  ;;  %v1274_v40 = vsub.f32 %v1258_v28, %v2755_v10  ;;  %v2304_v42 = vpop.eup %2303  ;;  %vm1157_vm9 = vcmp.eq.f32.partialorder %v2825_v59, 0.0  ;;  %v1158_v23 = vand.u32 2147483648, %v2825_v59  ;;  %vm1162_vm10 = vcmp.eq.f32.partialorder %v2835_v6, inf }
 0x24b   : > { %2311 = vpow2.f32 %v1109_v2  ;;  %v1111_v44 = vmul.f32 1.442695, %v2848_v29  ;;  %v1142_v20 = vsel %vm1141_vm4, %v2778_v22, %v1140_v30  ;;  %v1147_v34 = vmul.f32 %v2304_v42, %v2791_v31 }
 0x24c   : > { %1295 = vadd.xlane.f32.xlu1 %v1274_v40  ;;  %v1145_v46 = vsel %vm1143_vm5, %v1144_v41, %v1142_v20  ;;  %2313 = vrsqrt.f32 %v2835_v6  ;;  %v1430_v48 = vpack.c.bf16 %v1415_v11, %v1414_v13  ;;  %v1244_v22 = vmul.f32 %v2856_v3, %v2856_v3 }
 0x24d   : > { %v2868_v10 = vpop.eup %2305  ;;  %2315 = vpow2.f32 %v1111_v44  ;;  %v1064_v47 = vpop.f32.mrb[20].mxu0  ;;  %v1400_v58 = vmul.f32 %v1955_v24, %v1145_v46  ;;  %v1149_v53 = vsel %vm1148_vm6, %v2791_v31, %v1147_v34  ;;  %v1245_v2 = vmul.f32 %v2886_v61, %v2886_v61 }
 0x24e   : > { %v1066_v51 = vpop.f32.mrb[21].mxu0  ;;  %v1259_v52 = vadd.f32 %v2868_v10, %v1243_v37  ;;  %2115 = vmatprep.mubr.bf16.mxu1 %v1430_v48  ;;  %v1152_v62 = vsel %vm1150_vm7, %v1151_v50, %v1149_v53  ;;  %2317 = vrsqrt.f32 %v2868_v10  ;;  %v2917_v30 = vadd.f32 %v1064_v47, %v2720_v49 }
 0x24f   : > { %v2878_v55 = vpop.eup %2307  ;;  %v2881_v56 = vadd.f32 %v1066_v51, %v2716_v39  ;;  %v1068_v57 = vpop.f32.mrb[22].mxu0  ;;  %v1416_v24 = vadd.f32 %v1400_v58, %v2750_v5  ;;  %v1401_v5 = vmul.f32 %v1956_v25, %v1152_v62  ;;  %v1246_v41 = vmul.f32 %v2902_v60, %v2902_v60 }
 0x250   : > { %v2310_v63 = vpop.eup %2309  ;;  %v1070_v1 = vpop.f32.mrb[23].mxu0  ;;  %v1275_v31 = vsub.f32 %v1259_v52, %v2797_v33  ;;  %v1260_v4 = vadd.f32 %v2878_v55, %v1244_v22  ;;  %vm1164_vm11 = vcmp.eq.f32.partialorder %v2835_v6, 0.0  ;;  %v2935_v47 = vadd.f32 %v1068_v57, %v2720_v49 }
 0x251   : > { %v1113_v9 = vmul.f32 1.442695, %v2881_v56  ;;  %v2893_v13 = vadd.f32 %v1070_v1, %v2716_v39  ;;  %v1154_v17 = vmul.f32 %v2310_v63, %v2825_v59  ;;  %v1417_v14 = vadd.f32 %v1401_v5, %v2762_v12 }
 0x252   : > { %1297 = vadd.xlane.f32.xlu0 %v1275_v31  ;;  %v1276_v33 = vsub.f32 %v1260_v4, %v2809_v45  ;;  %v1971_v45 = vunpack.c.l.bf16 %v2899_v18  ;;  %v1165_v22 = vand.u32 2147483648, %v2835_v6  ;;  %v1247_v52 = vmul.f32 %v2917_v30, %v2917_v30 }
 0x253   : > { %2319 = vpow2.f32 %v1113_v9  ;;  %v1115_v28 = vmul.f32 1.442695, %v2893_v13  ;;  %v1156_v25 = vsel %vm1155_vm8, %v2825_v59, %v1154_v17  ;;  %v1431_v40 = vpack.c.bf16 %v1417_v14, %v1416_v24 }
 0x254   : > { %1299 = vadd.xlane.f32.xlu1 %v1276_v33  ;;  %v1159_v8 = vsel %vm1157_vm9, %v1158_v23, %v1156_v25  ;;  %2321 = vrsqrt.f32 %v2878_v55  ;;  %vm1169_vm12 = vcmp.eq.f32.partialorder %v2868_v10, inf  ;;  %v1172_v31 = vand.u32 2147483648, %v2868_v10 }
 0x255   : > { %v2914_v54 = vpop.eup %2311  ;;  %2323 = vpow2.f32 %v1115_v28  ;;  %v1074_v37 = vpop.f32.mrb[24].mxu0  ;;  %v1402_v12 = vmul.f32 %v1959_v26, %v1159_v8  ;;  %2116 = vmatmul.mubr.bf16.vlgmr.msra.gmra.mrb[0].mxu1 %v1431_v40  ;;  %v1248_v4 = vmul.f32 %v2935_v47, %v2935_v47  ;;  %vm1171_vm13 = vcmp.eq.f32.partialorder %v2868_v10, 0.0 }
 0x256   : > { %v2314_v59 = vpop.eup %2313  ;;  %v1076_v42 = vpop.f32.mrb[25].mxu0  ;;  %v1261_v44 = vadd.f32 %v2914_v54, %v1245_v2  ;;  %2325 = vrsqrt.f32 %v2914_v54  ;;  %vm1176_vm14 = vcmp.eq.f32.partialorder %v2878_v55, inf  ;;  %vm1178_vm15 = vcmp.eq.f32.partialorder %v2878_v55, 0.0 }
 0x257   : > { %v2926_v11 = vpop.eup %2315  ;;  %v2929_v20 = vadd.f32 %v1076_v42, %v2716_v39  ;;  %v1078_v46 = vpop.f32.mrb[26].mxu0  ;;  %v1161_v26 = vmul.f32 %v2314_v59, %v2835_v6  ;;  %v1418_v34 = vadd.f32 %v1402_v12, %v2794_v32  ;;  %v2973_v28 = vadd.f32 %v1074_v37, %v2720_v49 }
 0x258   : > { %v1080_v48 = vpop.f32.mrb[27].mxu0  ;;  %v1277_v50 = vsub.f32 %v1261_v44, %v2838_v7  ;;  %v1262_v58 = vadd.f32 %v2926_v11, %v1246_v41  ;;  %v2318_v51 = vpop.eup %2317  ;;  %v2980_v40 = vadd.f32 %v1078_v46, %v2720_v49  ;;  %v1179_v41 = vand.u32 2147483648, %v2878_v55 }
 0x259   : > { %v1117_v53 = vmul.f32 1.442695, %v2929_v20  ;;  %v2944_v62 = vadd.f32 %v1080_v48, %v2716_v39  ;;  %v1163_v32 = vsel %vm1162_vm10, %v2835_v6, %v1161_v26  ;;  %v1168_v24 = vmul.f32 %v2318_v51, %v2868_v10 }
 0x25a   : > { %1301 = vadd.xlane.f32.xlu0 %v1277_v50  ;;  %v1278_v7 = vsub.f32 %v1262_v58, %v2848_v29  ;;  %v1166_v57 = vsel %vm1164_vm11, %v1165_v22, %v1163_v32  ;;  %vm1183_vm0 = vcmp.eq.f32.partialorder %v2914_v54, inf  ;;  %v1186_v50 = vand.u32 2147483648, %v2914_v54 }
 0x25b   : > { %2327 = vpow2.f32 %v1117_v53  ;;  %v1119_v63 = vmul.f32 1.442695, %v2944_v62  ;;  %v1403_v1 = vmul.f32 %v1960_v19, %v1166_v57  ;;  %v1170_v6 = vsel %vm1169_vm12, %v2868_v10, %v1168_v24 }
 0x25c   : > { %1303 = vadd.xlane.f32.xlu1 %v1278_v7  ;;  %2329 = vrsqrt.f32 %v2926_v11  ;;  %v1173_v15 = vsel %vm1171_vm13, %v1172_v31, %v1170_v6  ;;  %vm1185_vm1 = vcmp.eq.f32.partialorder %v2914_v54, 0.0  ;;  %v1250_v58 = vmul.f32 %v2980_v40, %v2980_v40 }
 0x25d   : > { %v2961_v29 = vpop.eup %2319  ;;  %2331 = vpow2.f32 %v1119_v63  ;;  %v1084_v9 = vpop.f32.mrb[28].mxu0  ;;  %v1419_v5 = vadd.f32 %v1403_v1, %v2802_v38  ;;  %v1404_v10 = vmul.f32 %v1963_v35, %v1173_v15  ;;  %vm1190_vm2 = vcmp.eq.f32.partialorder %v2926_v11, inf }
 0x25e   : > { %v2322_v19 = vpop.eup %2321  ;;  %v1086_v17 = vpop.f32.mrb[29].mxu0  ;;  %v1263_v33 = vadd.f32 %v2961_v29, %v1247_v52  ;;  %2333 = vrsqrt.f32 %v2961_v29  ;;  %vm1192_vm3 = vcmp.eq.f32.partialorder %v2926_v11, 0.0  ;;  %v3023_v57 = vadd.f32 %v1084_v9, %v2720_v49 }
 0x25f   : > { %v2970_v23 = vpop.eup %2323  ;;  %v1432_v38 = vpack.c.bf16 %v1419_v5, %v1418_v34  ;;  %v2976_v14 = vadd.f32 %v1086_v17, %v2716_v39  ;;  %v1088_v25 = vpop.f32.mrb[30].mxu0  ;;  %v1175_v2 = vmul.f32 %v2322_v19, %v2878_v55  ;;  %v1420_v46 = vadd.f32 %v1404_v10, %v2830_v0 }
 0x260   : > { %v2326_v8 = vpop.eup %2325  ;;  %v1090_v12 = vpop.f32.mrb[31].mxu0  ;;  %v1279_v35 = vsub.f32 %v1263_v33, %v2881_v56  ;;  %v1264_v59 = vadd.f32 %v2970_v23, %v1248_v4  ;;  %v1249_v0 = vmul.f32 %v2973_v28, %v2973_v28  ;;  %vm1197_vm4 = vcmp.eq.f32.partialorder %v2961_v29, inf  ;;  %v2026_v33 = vld [vmem:[%s2580_s17 + $0x30] sm:$0xff]  }
 0x261   : > { %2119 = vmatprep.mubr.bf16.mxu1 %v1432_v38  ;;  %v1121_v37 = vmul.f32 1.442695, %v2976_v14  ;;  %v2987_v42 = vadd.f32 %v1090_v12, %v2716_v39  ;;  %v1177_v44 = vsel %vm1176_vm14, %v2878_v55, %v1175_v2  ;;  %v1182_v34 = vmul.f32 %v2326_v8, %v2914_v54 }
 0x262   : > { %1305 = vadd.xlane.f32.xlu0 %v1279_v35  ;;  %v1280_v26 = vsub.f32 %v1264_v59, %v2893_v13  ;;  %v1180_v56 = vsel %vm1178_vm15, %v1179_v41, %v1177_v44  ;;  %v3033_v4 = vadd.f32 %v1088_v25, %v2720_v49  ;;  %v1200_v9 = vand.u32 2147483648, %v2961_v29 }
 0x263   : > { %2335 = vpow2.f32 %v1121_v37  ;;  %v1123_v39 = vmul.f32 1.442695, %v2987_v42  ;;  %v1405_v48 = vmul.f32 %v1964_v36, %v1180_v56  ;;  %v1184_v13 = vsel %vm1183_vm0, %v2914_v54, %v1182_v34 }
 0x264   : > { %1307 = vadd.xlane.f32.xlu1 %v1280_v26  ;;  %2337 = vrsqrt.f32 %v2970_v23  ;;  %v1187_v36 = vsel %vm1185_vm1, %v1186_v50, %v1184_v13  ;;  %vm1199_vm5 = vcmp.eq.f32.partialorder %v2961_v29, 0.0  ;;  %v1251_v5 = vmul.f32 %v3023_v57, %v3023_v57  ;;  %v2027_v50 = vld [vmem:[%s2580_s17 + $0x38] sm:$0xff]  }
 0x265   : > { %v3007_v55 = vpop.eup %2327  ;;  %2339 = vpow2.f32 %v1123_v39  ;;  %v1421_v21 = vadd.f32 %v1405_v48, %v2856_v3  ;;  %v1406_v52 = vmul.f32 %v1967_v43, %v1187_v36  ;;  %v1193_v3 = vand.u32 2147483648, %v2926_v11 }
 0x266   : > { %v2330_v22 = vpop.eup %2329  ;;  %v1265_v51 = vadd.f32 %v3007_v55, %v1249_v0  ;;  %2341 = vrsqrt.f32 %v3007_v55  ;;  %v1252_v27 = vmul.f32 %v3033_v4, %v3033_v4  ;;  %vm1204_vm6 = vcmp.eq.f32.partialorder %v2970_v23, inf }
 0x267   : > { %v3017_v54 = vpop.eup %2331  ;;  %v1433_v53 = vpack.c.bf16 %v1421_v21, %v1420_v46  ;;  %v1189_v32 = vmul.f32 %v2330_v22, %v2926_v11  ;;  %v1422_v43 = vadd.f32 %v1406_v52, %v2886_v61  ;;  %v1207_v12 = vand.u32 2147483648, %v2970_v23 }
 0x268   : > { %v2334_v7 = vpop.eup %2333  ;;  %v1281_v24 = vsub.f32 %v1265_v51, %v2929_v20  ;;  %v1266_v63 = vadd.f32 %v3017_v54, %v1250_v58  ;;  %2343 = vrsqrt.f32 %v3017_v54  ;;  %vm1206_vm7 = vcmp.eq.f32.partialorder %v2970_v23, 0.0 }
 0x269   : > { %2120 = vmatmul.mubr.bf16.gmra.mrb[4].mxu1 %v1433_v53  ;;  %v1191_v1 = vsel %vm1190_vm2, %v2926_v11, %v1189_v32  ;;  %v1196_v31 = vmul.f32 %v2334_v7, %v2961_v29  ;;  %v1975_v59 = vunpack.c.l.bf16 %v2026_v33  ;;  %vm1211_vm8 = vcmp.eq.f32.partialorder %v3007_v55, inf }
 0x26a   : > { %1309 = vadd.xlane.f32.xlu0 %v1281_v24  ;;  %v1282_v6 = vsub.f32 %v1266_v63, %v2944_v62  ;;  %v1194_v20 = vsel %vm1192_vm3, %v1193_v3, %v1191_v1  ;;  %vm1213_vm9 = vcmp.eq.f32.partialorder %v3007_v55, 0.0  ;;  %v1976_v56 = vunpack.c.h.bf16 %v2026_v33 }
 0x26b   : > { %v1407_v61 = vmul.f32 %v1968_v16, %v1194_v20  ;;  %v1198_v11 = vsel %vm1197_vm4, %v2961_v29, %v1196_v31  ;;  %v1972_v29 = vunpack.c.h.bf16 %v2899_v18  ;;  %vm1218_vm10 = vcmp.eq.f32.partialorder %v3017_v54, inf }
 0x26c   : > { %1311 = vadd.xlane.f32.xlu1 %v1282_v6  ;;  %v1201_v49 = vsel %vm1199_vm5, %v1200_v9, %v1198_v11  ;;  %vm1220_vm11 = vcmp.eq.f32.partialorder %v3017_v54, 0.0  ;;  %v1980_v32 = vunpack.c.h.bf16 %v2027_v50  ;;  %vm1349_vm0 = vcmask 7168  }
 0x26d   : > { %v3043_v15 = vpop.eup %2335  ;;  %v1423_v62 = vadd.f32 %v1407_v61, %v2902_v60  ;;  %v1408_v19 = vmul.f32 %v1971_v45, %v1201_v49 }
 0x26e   : > { %v2338_v17 = vpop.eup %2337  ;;  %v1267_v16 = vadd.f32 %v3043_v15, %v1251_v5  ;;  %2345 = vrsqrt.f32 %v3043_v15  ;;  %vm1225_vm12 = vcmp.eq.f32.partialorder %v3043_v15, inf  ;;  %v1228_v52 = vand.u32 2147483648, %v3043_v15 }
 0x26f   : > { %v2340_v10 = vpop.eup %2339  ;;  %v1434_v38 = vpack.c.bf16 %v1423_v62, %v1422_v43  ;;  %v1203_v25 = vmul.f32 %v2338_v17, %v2970_v23  ;;  %v1424_v60 = vadd.f32 %v1408_v19, %v2917_v30  ;;  %v1214_v30 = vand.u32 2147483648, %v3007_v55 }
 0x270   : > { %v2342_v45 = vpop.eup %2341  ;;  %v1283_v2 = vsub.f32 %v1267_v16, %v2976_v14  ;;  %v1268_v8 = vadd.f32 %v2340_v10, %v1252_v27  ;;  %2347 = vrsqrt.f32 %v2340_v10  ;;  %vm1227_vm13 = vcmp.eq.f32.partialorder %v3043_v15, 0.0 }
 0x271   : > { %2123 = vmatprep.mubr.bf16.mxu1 %v1434_v38  ;;  %v1205_v18 = vsel %vm1204_vm6, %v2970_v23, %v1203_v25  ;;  %v1210_v35 = vmul.f32 %v2342_v45, %v3007_v55  ;;  %vm1232_vm14 = vcmp.eq.f32.partialorder %v2340_v10, inf  ;;  %v1235_v7 = vand.u32 2147483648, %v2340_v10 }
 0x272   : > { %1313 = vadd.xlane.f32.xlu0 %v1283_v2  ;;  %v1284_v41 = vsub.f32 %v1268_v8, %v2987_v42  ;;  %v1208_v37 = vsel %vm1206_vm7, %v1207_v12, %v1205_v18  ;;  %v2344_v14 = vpop.eup %2343  ;;  %v1221_v42 = vand.u32 2147483648, %v3017_v54  ;;  %vm1234_vm15 = vcmp.eq.f32.partialorder %v2340_v10, 0.0 }
 0x273   : > { %v1409_v44 = vmul.f32 %v1972_v29, %v1208_v37  ;;  %v1212_v46 = vsel %vm1211_vm8, %v3007_v55, %v1210_v35  ;;  %v1217_v26 = vmul.f32 %v2344_v14, %v3017_v54 }
 0x274   : > { %1315 = vadd.xlane.f32.xlu1 %v1284_v41  ;;  %v1215_v23 = vsel %vm1213_vm9, %v1214_v30, %v1212_v46 }
 0x275   : > { %v1425_v34 = vadd.f32 %v1409_v44, %v2935_v47  ;;  %v1410_v39 = vmul.f32 %v1975_v59, %v1215_v23  ;;  %v1219_v48 = vsel %vm1218_vm10, %v3017_v54, %v1217_v26  ;;  %v1979_v47 = vunpack.c.l.bf16 %v2027_v50 }
 0x276   : > { %v1222_v13 = vsel %vm1220_vm11, %v1221_v42, %v1219_v48 }
 0x277   : > { %v1435_v0 = vpack.c.bf16 %v1425_v34, %v1424_v60  ;;  %v1426_v55 = vadd.f32 %v1410_v39, %v2973_v28  ;;  %v1411_v21 = vmul.f32 %v1976_v56, %v1222_v13 }
 0x278   : > { %v2346_v58 = vpop.eup %2345 }
 0x279   : > { %2124 = vmatmul.mubr.bf16.gmra.mrb[8].mxu1 %v1435_v0  ;;  %v1224_v36 = vmul.f32 %v2346_v58, %v3043_v15  ;;  %v1427_v51 = vadd.f32 %v1411_v21, %v2980_v40 }
 0x27a   : > { %v2348_v22 = vpop.eup %2347 }
 0x27b   : > { %v1226_v54 = vsel %vm1225_vm12, %v3043_v15, %v1224_v36  ;;  %v1231_v53 = vmul.f32 %v2348_v22, %v2340_v10  ;;  %v1436_v28 = vpack.c.bf16 %v1427_v51, %v1426_v55  ;;  %v3118_v22 = vld [vmem:[%s3171_s6] ss:$0 sm:$0xff] }
 0x27c   : > { %v1229_v3 = vsel %vm1227_vm13, %v1228_v52, %v1226_v54 }
 0x27d   : > { %v1233_v24 = vsel %vm1232_vm14, %v2340_v10, %v1231_v53  ;;  %v1412_v63 = vmul.f32 %v1979_v47, %v1229_v3  ;;  %2127 = vmatprep.mubr.bf16.mxu1 %v1436_v28 }
 0x27e   : > { %v1236_v40 = vsel %vm1234_vm15, %v1235_v7, %v1233_v24 }
 0x27f   : > { %v1413_v43 = vmul.f32 %v1980_v32, %v1236_v40  ;;  %v1428_v1 = vadd.f32 %v1412_v63, %v3023_v57 }
 0x281   : > { %v1429_v31 = vadd.f32 %v1413_v43, %v3033_v4 }
 0x283   : > { %v1437_v6 = vpack.c.bf16 %v1429_v31, %v1428_v1 }
 0x285   : > { %2128 = vmatmul.mubr.bf16.gmra.mrb[12].mxu1 %v1437_v6 }
 0x2c7   : > { %v1286_v20 = vpop.xlane.xlu0 %1285 }
 0x2c8   : > { %v1889_v9 = vadd.f32 -128.0, %v1286_v20 }
 0x2ca   : > { %v1333_v61 = vmul.f32 0.5, %v1889_v9 }
 0x2cb   : > { %v1288_v11 = vpop.xlane.xlu0 %1287 }
 0x2cc   : > { %1350 = vst.msk [vmem:[%s2590_s14] sm:$0xff] %vm1349_vm0, %v1333_v61  ;;  %v1890_v5 = vadd.f32 -128.0, %v1288_v11 }
 0x2ce   : > { %v1334_v49 = vmul.f32 0.5, %v1890_v5 }
 0x2cf   : > { %v1290_v15 = vpop.xlane.xlu1 %1289 }
 0x2d0   : > { %1351 = vst.msk [vmem:[%s2590_s14 + $0x8] sm:$0xff] %vm1349_vm0, %v1334_v49  ;;  %v1891_v57 = vadd.f32 -128.0, %v1290_v15 }
 0x2d2   : > { %v1335_v4 = vmul.f32 0.5, %v1891_v57 }
 0x2d3   : > { %v1292_v62 = vpop.xlane.xlu1 %1291 }
 0x2d4   : > { %1352 = vst.msk [vmem:[%s2590_s14 + $0x10] sm:$0xff] %vm1349_vm0, %v1335_v4  ;;  %v1892_v19 = vadd.f32 -128.0, %v1292_v62 }
 0x2d6   : > { %v1336_v17 = vmul.f32 0.5, %v1892_v19 }
 0x2d7   : > { %v1294_v27 = vpop.xlane.xlu0 %1293 }
 0x2d8   : > { %1353 = vst.msk [vmem:[%s2590_s14 + $0x18] sm:$0xff] %vm1349_vm0, %v1336_v17  ;;  %v1893_v16 = vadd.f32 -128.0, %v1294_v27 }
 0x2d9   : > { %v1296_v29 = vpop.xlane.xlu1 %1295 }
 0x2da   : > { %v1337_v33 = vmul.f32 0.5, %v1893_v16  ;;  %v1894_v10 = vadd.f32 -128.0, %v1296_v29 }
 0x2dc   : > { %1354 = vst.msk [vmem:[%s2590_s14 + $0x20] sm:$0xff] %vm1349_vm0, %v1337_v33  ;;  %v1338_v38 = vmul.f32 0.5, %v1894_v10 }
 0x2de   : > { %1355 = vst.msk [vmem:[%s2590_s14 + $0x28] sm:$0xff] %vm1349_vm0, %v1338_v38 }
 0x2df   : > { %v1298_v25 = vpop.xlane.xlu0 %1297 }
 0x2e0   : > { %v1895_v60 = vadd.f32 -128.0, %v1298_v25 }
 0x2e1   : > { %v1300_v45 = vpop.xlane.xlu1 %1299 }
 0x2e2   : > { %v1339_v2 = vmul.f32 0.5, %v1895_v60  ;;  %v1896_v8 = vadd.f32 -128.0, %v1300_v45 }
 0x2e4   : > { %1356 = vst.msk [vmem:[%s2590_s14 + $0x30] sm:$0xff] %vm1349_vm0, %v1339_v2  ;;  %v1340_v12 = vmul.f32 0.5, %v1896_v8 }
 0x2e6   : > { %1357 = vst.msk [vmem:[%s2590_s14 + $0x38] sm:$0xff] %vm1349_vm0, %v1340_v12 }
 0x2e7   : > { %v1302_v18 = vpop.xlane.xlu0 %1301 }
 0x2e8   : > { %v1897_v35 = vadd.f32 -128.0, %v1302_v18 }
 0x2e9   : > { %v1304_v59 = vpop.xlane.xlu1 %1303 }
 0x2ea   : > { %v1341_v41 = vmul.f32 0.5, %v1897_v35  ;;  %v1898_v37 = vadd.f32 -128.0, %v1304_v59 }
 0x2ec   : > { %1358 = vst.msk [vmem:[%s2590_s14 + $0x40] sm:$0xff] %vm1349_vm0, %v1341_v41  ;;  %v1342_v30 = vmul.f32 0.5, %v1898_v37 }
 0x2ee   : > { %1359 = vst.msk [vmem:[%s2590_s14 + $0x48] sm:$0xff] %vm1349_vm0, %v1342_v30 }
 0x2ef   : > { %v1306_v14 = vpop.xlane.xlu0 %1305 }
 0x2f0   : > { %v1899_v44 = vadd.f32 -128.0, %v1306_v14 }
 0x2f1   : > { %v1308_v46 = vpop.xlane.xlu1 %1307 }
 0x2f2   : > { %v1343_v23 = vmul.f32 0.5, %v1899_v44  ;;  %v1900_v26 = vadd.f32 -128.0, %v1308_v46 }
 0x2f4   : > { %1360 = vst.msk [vmem:[%s2590_s14 + $0x50] sm:$0xff] %vm1349_vm0, %v1343_v23  ;;  %v1344_v56 = vmul.f32 0.5, %v1900_v26 }
 0x2f6   : > { %1361 = vst.msk [vmem:[%s2590_s14 + $0x58] sm:$0xff] %vm1349_vm0, %v1344_v56 }
 0x2f7   : > { %v1310_v34 = vpop.xlane.xlu0 %1309 }
 0x2f8   : > { %v1901_v42 = vadd.f32 -128.0, %v1310_v34 }
 0x2f9   : > { %v1312_v39 = vpop.xlane.xlu1 %1311 }
 0x2fa   : > { %v1345_v48 = vmul.f32 0.5, %v1901_v42  ;;  %v1902_v50 = vadd.f32 -128.0, %v1312_v39 }
 0x2fc   : > { %1362 = vst.msk [vmem:[%s2590_s14 + $0x60] sm:$0xff] %vm1349_vm0, %v1345_v48  ;;  %v1346_v0 = vmul.f32 0.5, %v1902_v50 }
 0x2fe   : > { %1363 = vst.msk [vmem:[%s2590_s14 + $0x68] sm:$0xff] %vm1349_vm0, %v1346_v0 }
 0x2ff   : > { %v1314_v13 = vpop.xlane.xlu0 %1313 }
 0x300   : > { %v1903_v55 = vadd.f32 -128.0, %v1314_v13 }
 0x301   : > { %v1316_v58 = vpop.xlane.xlu1 %1315 }
 0x302   : > { %v1347_v21 = vmul.f32 0.5, %v1903_v55  ;;  %v1904_v36 = vadd.f32 -128.0, %v1316_v58 }
 0x304   : > { %1364 = vst.msk [vmem:[%s2590_s14 + $0x70] sm:$0xff] %vm1349_vm0, %v1347_v21  ;;  %v1348_v47 = vmul.f32 0.5, %v1904_v36 }
 0x306   : > { %1365 = vst.msk [vmem:[%s2590_s14 + $0x78] sm:$0xff] %vm1349_vm0, %v1348_v47 }
 0x328   : > { %v2117_v51 = vpop.f32.mrb[0].mxu1 }
 0x329   : > { %v1552_v52 = vadd.f32 %v2117_v51, %v3118_v22  ;;  %v1543_v54 = vpop.f32.mrb[1].mxu1 }
 0x32a   : > { %v1544_v53 = vadd.f32 %v3118_v22, %v1543_v54  ;;  %v2118_v32 = vpop.f32.mrb[2].mxu1 }
 0x32b   : > { %2349 = vtanh.f32 %v1552_v52  ;;  %v1555_v28 = vadd.f32 %v2118_v32, %v3118_v22  ;;  %v1546_v3 = vpop.f32.mrb[3].mxu1 }
 0x32c   : > { %2351 = vtanh.f32 %v1544_v53  ;;  %v1547_v7 = vadd.f32 %v3118_v22, %v1546_v3 }
 0x32d   : > { %2353 = vtanh.f32 %v1555_v28 }
 0x32e   : > { %2355 = vtanh.f32 %v1547_v7 }
 0x335   : > { %v2350_v24 = vpop.eup %2349 }
 0x336   : > { %v2352_v63 = vpop.eup %2351 }
 0x337   : > { %v2354_v40 = vpop.eup %2353 }
 0x338   : > { %v2356_v43 = vpop.eup %2355  ;;  %v1989_v1 = vpack.c.bf16 %v2354_v40, %v2350_v24 }
 0x339   : > { %v1984_v31 = vpack.c.bf16 %v2356_v43, %v2352_v63 }
 0x33a   : > { %2028 = vst [vmem:[%s2585_s12 + $0x8] sm:$0xff] %v1989_v1  }
 0x33b   : > { %1985 = vst [vmem:[%s2585_s12] sm:$0xff] %v1984_v31  }
 0x33c   : > { %v2121_v6 = vpop.f32.mrb[4].mxu1 }
 0x33d   : > { %v1568_v20 = vadd.f32 %v2121_v6, %v3118_v22  ;;  %v1559_v9 = vpop.f32.mrb[5].mxu1 }
 0x33e   : > { %v1560_v61 = vadd.f32 %v3118_v22, %v1559_v9  ;;  %v2122_v11 = vpop.f32.mrb[6].mxu1 }
 0x33f   : > { %2357 = vtanh.f32 %v1568_v20  ;;  %v1571_v5 = vadd.f32 %v2122_v11, %v3118_v22  ;;  %v1562_v49 = vpop.f32.mrb[7].mxu1 }
 0x340   : > { %2359 = vtanh.f32 %v1560_v61  ;;  %v1563_v15 = vadd.f32 %v3118_v22, %v1562_v49 }
 0x341   : > { %2361 = vtanh.f32 %v1571_v5 }
 0x342   : > { %2363 = vtanh.f32 %v1563_v15 }
 0x349   : > { %v2358_v57 = vpop.eup %2357 }
 0x34a   : > { %v2360_v4 = vpop.eup %2359 }
 0x34b   : > { %v2362_v62 = vpop.eup %2361 }
 0x34c   : > { %v2364_v19 = vpop.eup %2363  ;;  %v1999_v17 = vpack.c.bf16 %v2362_v62, %v2358_v57  ;;  %v2125_v27 = vpop.f32.mrb[8].mxu1 }
 0x34d   : > { %v1994_v16 = vpack.c.bf16 %v2364_v19, %v2360_v4  ;;  %v1584_v29 = vadd.f32 %v2125_v27, %v3118_v22  ;;  %v1575_v33 = vpop.f32.mrb[9].mxu1 }
 0x34e   : > { %2030 = vst [vmem:[%s2585_s12 + $0x18] sm:$0xff] %v1999_v17   ;;  %v1576_v10 = vadd.f32 %v3118_v22, %v1575_v33  ;;  %v2126_v38 = vpop.f32.mrb[10].mxu1 }
 0x34f   : > { %2029 = vst [vmem:[%s2585_s12 + $0x10] sm:$0xff] %v1994_v16   ;;  %2365 = vtanh.f32 %v1584_v29  ;;  %v1587_v25 = vadd.f32 %v2126_v38, %v3118_v22  ;;  %v1578_v60 = vpop.f32.mrb[11].mxu1 }
 0x350   : > { %2367 = vtanh.f32 %v1576_v10  ;;  %v1579_v45 = vadd.f32 %v3118_v22, %v1578_v60 }
 0x351   : > { %2369 = vtanh.f32 %v1587_v25 }
 0x352   : > { %2371 = vtanh.f32 %v1579_v45 }
 0x358   : > { %v2129_v2 = vpop.f32.mrb[12].mxu1 }
 0x359   : > { %v2366_v8 = vpop.eup %2365  ;;  %v1600_v12 = vadd.f32 %v2129_v2, %v3118_v22  ;;  %v1591_v18 = vpop.f32.mrb[13].mxu1 }
 0x35a   : > { %v2368_v35 = vpop.eup %2367  ;;  %v1592_v59 = vadd.f32 %v3118_v22, %v1591_v18  ;;  %v2130_v41 = vpop.f32.mrb[14].mxu1 }
 0x35b   : > { %v2370_v37 = vpop.eup %2369  ;;  %2373 = vtanh.f32 %v1600_v12  ;;  %v1603_v30 = vadd.f32 %v2130_v41, %v3118_v22  ;;  %v1594_v14 = vpop.f32.mrb[15].mxu1 }
 0x35c   : > { %v2372_v44 = vpop.eup %2371  ;;  %v2009_v46 = vpack.c.bf16 %v2370_v37, %v2366_v8  ;;  %2375 = vtanh.f32 %v1592_v59  ;;  %v1595_v23 = vadd.f32 %v3118_v22, %v1594_v14 }
 0x35d   : > { %v2004_v26 = vpack.c.bf16 %v2372_v44, %v2368_v35  ;;  %2377 = vtanh.f32 %v1603_v30 }
 0x35e   : > { %2032 = vst [vmem:[%s2585_s12 + $0x28] sm:$0xff] %v2009_v46   ;;  %2379 = vtanh.f32 %v1595_v23 }
 0x35f   : > { %2031 = vst [vmem:[%s2585_s12 + $0x20] sm:$0xff] %v2004_v26  }
 0x365   : > { %v2374_v56 = vpop.eup %2373 }
 0x366   : > { %v2376_v34 = vpop.eup %2375 }
 0x367   : > { %v2378_v42 = vpop.eup %2377 }
 0x368   : > { %v2380_v39 = vpop.eup %2379  ;;  %v2019_v48 = vpack.c.bf16 %v2378_v42, %v2374_v56 }
 0x369   : > { %v2014_v50 = vpack.c.bf16 %v2380_v39, %v2376_v34 }
 0x36a   : > { %2034 = vst [vmem:[%s2585_s12 + $0x38] sm:$0xff] %v2019_v48  }
 0x36b   : > { %2033 = vst [vmem:[%s2585_s12 + $0x30] sm:$0xff] %v2014_v50  }
 0x36c PF: > { %s20_s15 = sadd.s32 1, %s2435_s15   ;;  %s3183_s12 = sld [smem:[#allocation4_spill]] }
 0x36d   : > { %p17_p0 = scmp.ge.s32.totalorder %s20_s15, 6   ;;  %s3184_s14 = sld [smem:[#allocation5_spill]] }
 0x36e   : > { %s3185_s29 = sld [smem:[#allocation6_spill]]  ;;  %s3186_s30 = smov %s2415_s10 }
 0x36f   : > { %s3187_s10 = smov %s2540_s22  ;;  %s3188_s11 = smov %s2427_s13 }
 0x370   :  { %19 = sbr.rel (!%p17_p0) target bundleno = 6 (0x6), region = 154 }
 0x373   : > { %s3189_s13 = smov %s3184_s14 }
 0x374   : > { %s3190_s14 = smov %s3185_s29 }

</bundles_post_ra>
